<compile_context>
chip_gen: v7x
topology: tpu7x:2x2x1
jax: 0.10.0
libtpu: 0.0.40
codegen_flags: <defaults>
</compile_context>

<pallas_src>
import functools

import jax
import jax.numpy as jnp
from jax.experimental import pallas as pl
from jax.experimental.pallas import tpu as pltpu

# --- constants from the PyTorch module ---------------------------------------
P1 = 0.00021055145112023832
P2 = 0.0657994674459573
P3 = 3.317174544176429e-06
P4 = 0.07431025643281813
P5 = 0.08732437094329396
P6 = 0.007333800255491885
P7 = 0.0061655100719614575
P8 = 0.03157413109338753

VRANGE = 100.0
NETSCALE = 1000.0
LEAKY_SLOPE = 0.01          # torch.nn.LeakyReLU default negative_slope
V_FALLBACK = -80.0          # module's except-branch voltage

# padded MLP dimensions (hidden 200 -> 256; zero padding + LeakyReLU(0)=0 keeps
# the math exactly equal to the unpadded network)
HID_PAD = 256
OUT_LANES = 128             # lane-dense output slab width
DEFAULT_BATCH_BLOCK = 256   # >=128 rows per block keeps the MXU full-height


def _leaky(h):
    return jnp.where(h > 0, h, LEAKY_SLOPE * h)


# --- shared RHS (weights VMEM-resident; k1..k4/b1_eff precomputed) ------------
def _rhs(a, r, k1, k2, k3, k4, b1_eff, w1a, wm_ref, bm_ref, w7, b7):
    """a, r: (B, 1) f32 -> (dadt, drdt), each (B, 1) f32."""
    # Layer 1 (2 -> 200) on the VPU; the nv*W1 + b1 part is pre-folded into b1_eff.
    h = _leaky(a * w1a + b1_eff)                                     # (B, HID)

    # Five 200x200 hidden layers on the MXU, bf16 weights, f32 accumulation.
    for i in range(5):
        h = _leaky(
            jnp.dot(h.astype(jnp.bfloat16), wm_ref[i],
                    preferred_element_type=jnp.float32)
            + bm_ref[i:i + 1, :])

    # Last layer (200 -> 1) as VPU multiply + XLU lane reduction.
    o = jnp.sum(h * w7, axis=-1, keepdims=True) + b7                 # (B, 1)

    dadt = k1 * (1.0 - a) - k2 * a + o * (1.0 / NETSCALE)
    drdt = -k3 * r + k4 * (1.0 - r)
    return dadt, drdt


def _write_lane_dense(out_ref, dadt, drdt):
    b, lanes = out_ref.shape
    lane = jax.lax.broadcasted_iota(jnp.int32, (b, lanes), 1)
    out_ref[...] = jnp.where(lane == 0, dadt, jnp.where(lane == 1, drdt, 0.0))


# --- kernels ------------------------------------------------------------------
def _forward_kernel(y_ref, k1_ref, k2_ref, k3_ref, k4_ref, b1e_ref, w1a_ref,
                    wm_ref, bm_ref, w7_ref, b7_ref, out_ref):
    a = y_ref[:, 0:1]
    r = y_ref[:, 1:2]
    dadt, drdt = _rhs(a, r, k1_ref[...], k2_ref[...], k3_ref[...], k4_ref[...],
                      b1e_ref[...], w1a_ref[...], wm_ref, bm_ref,
                      w7_ref[...], b7_ref[...])
    _write_lane_dense(out_ref, dadt, drdt)


def _rollout_kernel(y_ref, k1_ref, k2_ref, k3_ref, k4_ref, b1e_ref, w1a_ref,
                    wm_ref, bm_ref, w7_ref, b7_ref, out_ref,
                    *, num_steps, dt, unroll):
    """Fused explicit-Euler time loop: weights DMA'd once, y carried in vregs."""
    # Loop-invariant operands hoisted above the time loop.
    k1 = k1_ref[...]
    k2 = k2_ref[...]
    k3 = k3_ref[...]
    k4 = k4_ref[...]
    b1_eff = b1e_ref[...]
    w1a = w1a_ref[...]
    w7 = w7_ref[...]
    b7 = b7_ref[...]
    a0 = y_ref[:, 0:1]
    r0 = y_ref[:, 1:2]

    def step(_, carry):
        a, r = carry
        dadt, drdt = _rhs(a, r, k1, k2, k3, k4, b1_eff, w1a,
                          wm_ref, bm_ref, w7, b7)
        return (a + dt * dadt, r + dt * drdt)

    # Unrolled so step t+1's layer-1 MXU weight push overlaps step t's tail work.
    a, r = jax.lax.fori_loop(0, num_steps, step, (a0, r0), unroll=unroll)
    _write_lane_dense(out_ref, a, r)


# --- call-time operand preparation ---------------------------------------------
def _kernel_operands(params, v):
    """Runtime rate constants + folded layer-1 bias (dynamic v, no recompile)."""
    v = jnp.asarray(v, jnp.float32)
    k1 = (P1 * jnp.exp(P2 * v)).reshape(1, 1)
    k2 = (P3 * jnp.exp(-P4 * v)).reshape(1, 1)
    k3 = (P5 * jnp.exp(P6 * v)).reshape(1, 1)
    k4 = (P7 * jnp.exp(-P8 * v)).reshape(1, 1)
    nv = v / VRANGE
    b1_eff = nv * params["w1nv"] + params["b1"]          # (1, HID_PAD)
    return (k1, k2, k3, k4, b1_eff, params["w1a"], params["wm"],
            params["bm"], params["w7"], params["b7"])


def _const_spec(arr):
    zeros = (0,) * arr.ndim
    return pl.BlockSpec(arr.shape, lambda i, _z=zeros: _z)


def _pick_block(batch, batch_block):
    if batch % 8 != 0:
        raise ValueError("batch size must be a multiple of 8 (pad on the caller side)")
    blk = DEFAULT_BATCH_BLOCK if batch_block is None else int(batch_block)
    blk = min(blk, batch)
    if blk % 8 != 0 or batch % blk != 0:
        blk = batch          # fallback: single block (caller should pass a divisor)
    return blk


def _batched_call(kernel, y, operands, blk):
    batch = y.shape[0]
    in_specs = [pl.BlockSpec((blk, 2), lambda i: (i, 0))]
    in_specs += [_const_spec(op) for op in operands]
    out = pl.pallas_call(
        kernel,
        out_shape=jax.ShapeDtypeStruct((batch, OUT_LANES), jnp.float32),
        grid=(batch // blk,),
        in_specs=in_specs,
        out_specs=pl.BlockSpec((blk, OUT_LANES), lambda i: (i, 0)),
        compiler_params=pltpu.CompilerParams(
            dimension_semantics=("parallel",)),
    )(y, *operands)
    return out[:, :2]


# --- public wrappers ------------------------------------------------------------
def odefunc_forward(t, y, params, v=V_FALLBACK, batch_block=None):
    """Pallas forward of ODEFunc1_6_2.forward(t, y) for B independent states.

    y: (B, 2) f32 rows = [a, r]; returns (B, 2) f32 = [dadt, drdt] per row.
    The batch is tiled over a "parallel" grid axis (both TCs on v7x).
    """
    del t  # TODO(synk): real voltage protocol v(t); caller passes v explicitly.
    y = y.astype(jnp.float32)
    blk = _pick_block(y.shape[0], batch_block)
    return _batched_call(_forward_kernel, y, _kernel_operands(params, v), blk)


def odefunc_euler_rollout(y0, params, num_steps, dt, v=V_FALLBACK,
                          batch_block=None, unroll=2):
    """num_steps explicit-Euler steps of the ODE inside one (gridded) kernel."""
    y0 = y0.astype(jnp.float32)
    blk = _pick_block(y0.shape[0], batch_block)
    num_steps = int(num_steps)
    unroll = max(1, min(int(unroll), max(num_steps, 1)))
    kernel = functools.partial(_rollout_kernel, num_steps=num_steps,
                               dt=float(dt), unroll=unroll)
    return _batched_call(kernel, y0, _kernel_operands(params, v), blk)


# --- deterministic parameter init (matches nn.init.normal_(std=0.001), bias=0) -
def init_params(key):
    dims = [(2, 200)] + [(200, 200)] * 5 + [(200, 1)]   # (in, out) per Linear
    keys = jax.random.split(key, len(dims))
    # PyTorch nn.Linear stores weight as (out, in); biases initialized to 0.
    raw_w = [jax.random.normal(k, (dout, din), dtype=jnp.float32) * 0.001
             for k, (din, dout) in zip(keys, dims)]

    def pad2(w, rows, cols):
        out = jnp.zeros((rows, cols), jnp.float32)
        return out.at[:w.shape[0], :w.shape[1]].set(w)

    w1_t = raw_w[0].T  # (2, 200): row 0 multiplies nv, row 1 multiplies a
    params = {
        "w1nv": pad2(w1_t[0:1, :], 1, HID_PAD),
        "w1a":  pad2(w1_t[1:2, :], 1, HID_PAD),
        "b1":   jnp.zeros((1, HID_PAD), jnp.float32),
        # bf16 hidden weights halve DMA; o/NETSCALE contribution keeps the
        # absolute error far below 1e-6.  Use f32 here if bit parity is needed.
        "wm":   jnp.stack([pad2(raw_w[i].T, HID_PAD, HID_PAD)
                           for i in range(1, 6)]).astype(jnp.bfloat16),
        "bm":   jnp.zeros((5, HID_PAD), jnp.float32),
        "w7":   pad2(raw_w[6], 1, HID_PAD),   # (1, 200) output row, padded
        "b7":   jnp.zeros((1, 1), jnp.float32),
    }
    return params, raw_w


# --- pure-JAX reference (unpadded, f32 weights) --------------------------------
def reference_forward(y, raw_w, v=V_FALLBACK):
    a = y[:, 0:1]
    r = y[:, 1:2]
    v = jnp.asarray(v, jnp.float32)
    k1 = P1 * jnp.exp(P2 * v)
    k2 = P3 * jnp.exp(-P4 * v)
    k3 = P5 * jnp.exp(P6 * v)
    k4 = P7 * jnp.exp(-P8 * v)
    dadt = k1 * (1.0 - a) - k2 * a
    drdt = -k3 * r + k4 * (1.0 - r)
    h = jnp.concatenate([jnp.full_like(a, v / VRANGE), a], axis=-1)  # (B, 2)
    for i in range(6):
        h = h @ raw_w[i].T
        h = jnp.where(h > 0, h, LEAKY_SLOPE * h)
    o = h @ raw_w[6].T                                               # (B, 1)
    dadt = dadt + o / NETSCALE
    return jnp.concatenate([dadt, drdt], axis=-1)


def reference_euler(y0, raw_w, num_steps, dt, v=V_FALLBACK):
    y = y0
    for _ in range(num_steps):
        y = y + dt * reference_forward(y, raw_w, v=v)
    return y


if __name__ == "__main__":
    key = jax.random.PRNGKey(0)
    pkey, ykey, y2key = jax.random.split(key, 3)
    params, raw_w = init_params(pkey)
    t = jnp.float32(0.0)

    # 1) gridded forward: 256 independent [a, r] states, 128-row blocks
    #    -> grid=(2,), "parallel" (shards across both TensorCores on v7x)
    y = jax.random.uniform(ykey, (256, 2), dtype=jnp.float32)
    out = jax.block_until_ready(odefunc_forward(t, y, params, batch_block=128))
    ref = reference_forward(y, raw_w)
    assert out.shape == (256, 2) and out.dtype == jnp.float32
    if not jnp.allclose(out, ref, rtol=1e-4, atol=1e-6):
        raise AssertionError("forward mismatch")

    # 2) small batch + non-default (runtime) voltage
    y8 = jax.random.uniform(y2key, (8, 2), dtype=jnp.float32)
    out8 = jax.block_until_ready(odefunc_forward(t, y8, params, v=-40.0))
    ref8 = reference_forward(y8, raw_w, v=-40.0)
    if not jnp.allclose(out8, ref8, rtol=1e-4, atol=1e-6):
        raise AssertionError("small-batch forward mismatch")

    # 3) fused Euler rollout: 8 RHS evaluations per launch, gridded + unrolled
    yT = jax.block_until_ready(
        odefunc_euler_rollout(y, params, num_steps=8, dt=0.01,
                              batch_block=128, unroll=2))
    yT_ref = reference_euler(y, raw_w, 8, 0.01)
    if not jnp.allclose(yT, yT_ref, rtol=1e-4, atol=1e-6):
        raise AssertionError("rollout mismatch")

    print("KERNEL_OK")
</pallas_src>

<mosaic_0001>
module attributes {stable_mosaic.version = 11 : i64} {
  func.func @_forward_kernel(%arg0: i32, %arg1: memref<128x2xf32, #tpu.memory_space<vmem>>, %arg2: memref<1x1xf32, #tpu.memory_space<vmem>>, %arg3: memref<1x1xf32, #tpu.memory_space<vmem>>, %arg4: memref<1x1xf32, #tpu.memory_space<vmem>>, %arg5: memref<1x1xf32, #tpu.memory_space<vmem>>, %arg6: memref<1x256xf32, #tpu.memory_space<vmem>>, %arg7: memref<1x256xf32, #tpu.memory_space<vmem>>, %arg8: memref<5x256x256xbf16, #tpu.memory_space<vmem>>, %arg9: memref<5x256xf32, #tpu.memory_space<vmem>>, %arg10: memref<1x256xf32, #tpu.memory_space<vmem>>, %arg11: memref<1x1xf32, #tpu.memory_space<vmem>>, %arg12: memref<128x128xf32, #tpu.memory_space<vmem>>) attributes {dimension_semantics = [#tpu.dimension_semantics<parallel>], iteration_bounds = array<i64: 2>, scalar_prefetch = 0 : i64, scratch_operands = 0 : i64, tpu.core_type = #tpu.core_type<tc>, window_params = [{transform_indices = @transform_0, window_bounds = array<i64: 128, 2>}, {pipeline_mode = #tpu.pipeline_mode<synchronous>, transform_indices = @transform_1, window_bounds = array<i64: 1, 1>}, {pipeline_mode = #tpu.pipeline_mode<synchronous>, transform_indices = @transform_2, window_bounds = array<i64: 1, 1>}, {pipeline_mode = #tpu.pipeline_mode<synchronous>, transform_indices = @transform_3, window_bounds = array<i64: 1, 1>}, {pipeline_mode = #tpu.pipeline_mode<synchronous>, transform_indices = @transform_4, window_bounds = array<i64: 1, 1>}, {pipeline_mode = #tpu.pipeline_mode<synchronous>, transform_indices = @transform_5, window_bounds = array<i64: 1, 256>}, {pipeline_mode = #tpu.pipeline_mode<synchronous>, transform_indices = @transform_6, window_bounds = array<i64: 1, 256>}, {pipeline_mode = #tpu.pipeline_mode<synchronous>, transform_indices = @transform_7, window_bounds = array<i64: 5, 256, 256>}, {pipeline_mode = #tpu.pipeline_mode<synchronous>, transform_indices = @transform_8, window_bounds = array<i64: 5, 256>}, {pipeline_mode = #tpu.pipeline_mode<synchronous>, transform_indices = @transform_9, window_bounds = array<i64: 1, 256>}, {pipeline_mode = #tpu.pipeline_mode<synchronous>, transform_indices = @transform_10, window_bounds = array<i64: 1, 1>}, {transform_indices = @transform_11, window_bounds = array<i64: 128, 128>}]} {
    %c0 = arith.constant 0 : index
    %c0_0 = arith.constant 0 : index
    %0 = vector.load %arg1[%c0, %c0_0] : memref<128x2xf32, #tpu.memory_space<vmem>>, vector<128x1xf32>
    %c0_1 = arith.constant 0 : index
    %c1 = arith.constant 1 : index
    %1 = vector.load %arg1[%c0_1, %c1] : memref<128x2xf32, #tpu.memory_space<vmem>>, vector<128x1xf32>
    %c0_2 = arith.constant 0 : index
    %c0_3 = arith.constant 0 : index
    %2 = vector.load %arg2[%c0_2, %c0_3] : memref<1x1xf32, #tpu.memory_space<vmem>>, vector<1x1xf32>
    %c0_4 = arith.constant 0 : index
    %c0_5 = arith.constant 0 : index
    %3 = vector.load %arg3[%c0_4, %c0_5] : memref<1x1xf32, #tpu.memory_space<vmem>>, vector<1x1xf32>
    %c0_6 = arith.constant 0 : index
    %c0_7 = arith.constant 0 : index
    %4 = vector.load %arg4[%c0_6, %c0_7] : memref<1x1xf32, #tpu.memory_space<vmem>>, vector<1x1xf32>
    %c0_8 = arith.constant 0 : index
    %c0_9 = arith.constant 0 : index
    %5 = vector.load %arg5[%c0_8, %c0_9] : memref<1x1xf32, #tpu.memory_space<vmem>>, vector<1x1xf32>
    %c0_10 = arith.constant 0 : index
    %c0_11 = arith.constant 0 : index
    %6 = vector.load %arg6[%c0_10, %c0_11] : memref<1x256xf32, #tpu.memory_space<vmem>>, vector<1x256xf32>
    %c0_12 = arith.constant 0 : index
    %c0_13 = arith.constant 0 : index
    %7 = vector.load %arg7[%c0_12, %c0_13] : memref<1x256xf32, #tpu.memory_space<vmem>>, vector<1x256xf32>
    %c0_14 = arith.constant 0 : index
    %c0_15 = arith.constant 0 : index
    %8 = vector.load %arg10[%c0_14, %c0_15] : memref<1x256xf32, #tpu.memory_space<vmem>>, vector<1x256xf32>
    %c0_16 = arith.constant 0 : index
    %c0_17 = arith.constant 0 : index
    %9 = vector.load %arg11[%c0_16, %c0_17] : memref<1x1xf32, #tpu.memory_space<vmem>>, vector<1x1xf32>
    %10 = vector.broadcast %0 : vector<128x1xf32> to vector<128x256xf32>
    %11 = vector.broadcast %7 : vector<1x256xf32> to vector<128x256xf32>
    %12 = arith.mulf %10, %11 : vector<128x256xf32>
    %13 = vector.broadcast %6 : vector<1x256xf32> to vector<128x256xf32>
    %14 = arith.addf %12, %13 : vector<128x256xf32>
    %cst = arith.constant 0.000000e+00 : f32
    %15 = vector.broadcast %cst : f32 to vector<128x256xf32>
    %16 = arith.cmpf ogt, %14, %15 : vector<128x256xf32>
    %cst_18 = arith.constant 0.00999999977 : f32
    %17 = vector.broadcast %cst_18 : f32 to vector<128x256xf32>
    %18 = arith.mulf %17, %14 : vector<128x256xf32>
    %19 = arith.select %16, %14, %18 : vector<128x256xi1>, vector<128x256xf32>
    %20 = arith.truncf %19 : vector<128x256xf32> to vector<128x256xbf16>
    %c0_19 = arith.constant 0 : index
    %c0_20 = arith.constant 0 : index
    %c0_21 = arith.constant 0 : index
    %21 = vector.load %arg8[%c0_19, %c0_20, %c0_21] : memref<5x256x256xbf16, #tpu.memory_space<vmem>>, vector<1x256x256xbf16>
    %22 = vector.shape_cast %21 : vector<1x256x256xbf16> to vector<256x256xbf16>
    %cst_22 = arith.constant dense<0.000000e+00> : vector<128x256xf32>
    %23 = tpu.matmul %20, %22, %cst_22 {dimension_numbers = #tpu.dot_dimension_numbers<[1], [0], [0], [1], [0, 0, 1, 1], [], []>} : vector<128x256xbf16>, vector<256x256xbf16>, vector<128x256xf32> -> vector<128x256xf32>
    %c0_23 = arith.constant 0 : index
    %c0_24 = arith.constant 0 : index
    %24 = vector.load %arg9[%c0_23, %c0_24] : memref<5x256xf32, #tpu.memory_space<vmem>>, vector<1x256xf32>
    %25 = vector.broadcast %24 : vector<1x256xf32> to vector<128x256xf32>
    %26 = arith.addf %23, %25 : vector<128x256xf32>
    %cst_25 = arith.constant 0.000000e+00 : f32
    %27 = vector.broadcast %cst_25 : f32 to vector<128x256xf32>
    %28 = arith.cmpf ogt, %26, %27 : vector<128x256xf32>
    %cst_26 = arith.constant 0.00999999977 : f32
    %29 = vector.broadcast %cst_26 : f32 to vector<128x256xf32>
    %30 = arith.mulf %29, %26 : vector<128x256xf32>
    %31 = arith.select %28, %26, %30 : vector<128x256xi1>, vector<128x256xf32>
    %32 = arith.truncf %31 : vector<128x256xf32> to vector<128x256xbf16>
    %c1_27 = arith.constant 1 : index
    %c0_28 = arith.constant 0 : index
    %c0_29 = arith.constant 0 : index
    %33 = vector.load %arg8[%c1_27, %c0_28, %c0_29] : memref<5x256x256xbf16, #tpu.memory_space<vmem>>, vector<1x256x256xbf16>
    %34 = vector.shape_cast %33 : vector<1x256x256xbf16> to vector<256x256xbf16>
    %cst_30 = arith.constant dense<0.000000e+00> : vector<128x256xf32>
    %35 = tpu.matmul %32, %34, %cst_30 {dimension_numbers = #tpu.dot_dimension_numbers<[1], [0], [0], [1], [0, 0, 1, 1], [], []>} : vector<128x256xbf16>, vector<256x256xbf16>, vector<128x256xf32> -> vector<128x256xf32>
    %c1_31 = arith.constant 1 : index
    %c0_32 = arith.constant 0 : index
    %36 = vector.load %arg9[%c1_31, %c0_32] : memref<5x256xf32, #tpu.memory_space<vmem>>, vector<1x256xf32>
    %37 = vector.broadcast %36 : vector<1x256xf32> to vector<128x256xf32>
    %38 = arith.addf %35, %37 : vector<128x256xf32>
    %cst_33 = arith.constant 0.000000e+00 : f32
    %39 = vector.broadcast %cst_33 : f32 to vector<128x256xf32>
    %40 = arith.cmpf ogt, %38, %39 : vector<128x256xf32>
    %cst_34 = arith.constant 0.00999999977 : f32
    %41 = vector.broadcast %cst_34 : f32 to vector<128x256xf32>
    %42 = arith.mulf %41, %38 : vector<128x256xf32>
    %43 = arith.select %40, %38, %42 : vector<128x256xi1>, vector<128x256xf32>
    %44 = arith.truncf %43 : vector<128x256xf32> to vector<128x256xbf16>
    %c2 = arith.constant 2 : index
    %c0_35 = arith.constant 0 : index
    %c0_36 = arith.constant 0 : index
    %45 = vector.load %arg8[%c2, %c0_35, %c0_36] : memref<5x256x256xbf16, #tpu.memory_space<vmem>>, vector<1x256x256xbf16>
    %46 = vector.shape_cast %45 : vector<1x256x256xbf16> to vector<256x256xbf16>
    %cst_37 = arith.constant dense<0.000000e+00> : vector<128x256xf32>
    %47 = tpu.matmul %44, %46, %cst_37 {dimension_numbers = #tpu.dot_dimension_numbers<[1], [0], [0], [1], [0, 0, 1, 1], [], []>} : vector<128x256xbf16>, vector<256x256xbf16>, vector<128x256xf32> -> vector<128x256xf32>
    %c2_38 = arith.constant 2 : index
    %c0_39 = arith.constant 0 : index
    %48 = vector.load %arg9[%c2_38, %c0_39] : memref<5x256xf32, #tpu.memory_space<vmem>>, vector<1x256xf32>
    %49 = vector.broadcast %48 : vector<1x256xf32> to vector<128x256xf32>
    %50 = arith.addf %47, %49 : vector<128x256xf32>
    %cst_40 = arith.constant 0.000000e+00 : f32
    %51 = vector.broadcast %cst_40 : f32 to vector<128x256xf32>
    %52 = arith.cmpf ogt, %50, %51 : vector<128x256xf32>
    %cst_41 = arith.constant 0.00999999977 : f32
    %53 = vector.broadcast %cst_41 : f32 to vector<128x256xf32>
    %54 = arith.mulf %53, %50 : vector<128x256xf32>
    %55 = arith.select %52, %50, %54 : vector<128x256xi1>, vector<128x256xf32>
    %56 = arith.truncf %55 : vector<128x256xf32> to vector<128x256xbf16>
    %c3 = arith.constant 3 : index
    %c0_42 = arith.constant 0 : index
    %c0_43 = arith.constant 0 : index
    %57 = vector.load %arg8[%c3, %c0_42, %c0_43] : memref<5x256x256xbf16, #tpu.memory_space<vmem>>, vector<1x256x256xbf16>
    %58 = vector.shape_cast %57 : vector<1x256x256xbf16> to vector<256x256xbf16>
    %cst_44 = arith.constant dense<0.000000e+00> : vector<128x256xf32>
    %59 = tpu.matmul %56, %58, %cst_44 {dimension_numbers = #tpu.dot_dimension_numbers<[1], [0], [0], [1], [0, 0, 1, 1], [], []>} : vector<128x256xbf16>, vector<256x256xbf16>, vector<128x256xf32> -> vector<128x256xf32>
    %c3_45 = arith.constant 3 : index
    %c0_46 = arith.constant 0 : index
    %60 = vector.load %arg9[%c3_45, %c0_46] : memref<5x256xf32, #tpu.memory_space<vmem>>, vector<1x256xf32>
    %61 = vector.broadcast %60 : vector<1x256xf32> to vector<128x256xf32>
    %62 = arith.addf %59, %61 : vector<128x256xf32>
    %cst_47 = arith.constant 0.000000e+00 : f32
    %63 = vector.broadcast %cst_47 : f32 to vector<128x256xf32>
    %64 = arith.cmpf ogt, %62, %63 : vector<128x256xf32>
    %cst_48 = arith.constant 0.00999999977 : f32
    %65 = vector.broadcast %cst_48 : f32 to vector<128x256xf32>
    %66 = arith.mulf %65, %62 : vector<128x256xf32>
    %67 = arith.select %64, %62, %66 : vector<128x256xi1>, vector<128x256xf32>
    %68 = arith.truncf %67 : vector<128x256xf32> to vector<128x256xbf16>
    %c4 = arith.constant 4 : index
    %c0_49 = arith.constant 0 : index
    %c0_50 = arith.constant 0 : index
    %69 = vector.load %arg8[%c4, %c0_49, %c0_50] : memref<5x256x256xbf16, #tpu.memory_space<vmem>>, vector<1x256x256xbf16>
    %70 = vector.shape_cast %69 : vector<1x256x256xbf16> to vector<256x256xbf16>
    %cst_51 = arith.constant dense<0.000000e+00> : vector<128x256xf32>
    %71 = tpu.matmul %68, %70, %cst_51 {dimension_numbers = #tpu.dot_dimension_numbers<[1], [0], [0], [1], [0, 0, 1, 1], [], []>} : vector<128x256xbf16>, vector<256x256xbf16>, vector<128x256xf32> -> vector<128x256xf32>
    %c4_52 = arith.constant 4 : index
    %c0_53 = arith.constant 0 : index
    %72 = vector.load %arg9[%c4_52, %c0_53] : memref<5x256xf32, #tpu.memory_space<vmem>>, vector<1x256xf32>
    %73 = vector.broadcast %72 : vector<1x256xf32> to vector<128x256xf32>
    %74 = arith.addf %71, %73 : vector<128x256xf32>
    %cst_54 = arith.constant 0.000000e+00 : f32
    %75 = vector.broadcast %cst_54 : f32 to vector<128x256xf32>
    %76 = arith.cmpf ogt, %74, %75 : vector<128x256xf32>
    %cst_55 = arith.constant 0.00999999977 : f32
    %77 = vector.broadcast %cst_55 : f32 to vector<128x256xf32>
    %78 = arith.mulf %77, %74 : vector<128x256xf32>
    %79 = arith.select %76, %74, %78 : vector<128x256xi1>, vector<128x256xf32>
    %80 = vector.broadcast %8 : vector<1x256xf32> to vector<128x256xf32>
    %81 = arith.mulf %79, %80 : vector<128x256xf32>
    %cst_56 = arith.constant dense<0.000000e+00> : vector<128xf32>
    %82 = vector.multi_reduction <add>, %81, %cst_56 [1] : vector<128x256xf32> to vector<128xf32>
    %83 = vector.shape_cast %82 : vector<128xf32> to vector<128x1xf32>
    %84 = vector.broadcast %9 : vector<1x1xf32> to vector<128x1xf32>
    %85 = arith.addf %83, %84 : vector<128x1xf32>
    %cst_57 = arith.constant 1.000000e+00 : f32
    %86 = vector.broadcast %cst_57 : f32 to vector<128x1xf32>
    %87 = arith.subf %86, %0 : vector<128x1xf32>
    %88 = vector.broadcast %2 : vector<1x1xf32> to vector<128x1xf32>
    %89 = arith.mulf %88, %87 : vector<128x1xf32>
    %90 = vector.broadcast %3 : vector<1x1xf32> to vector<128x1xf32>
    %91 = arith.mulf %90, %0 : vector<128x1xf32>
    %92 = arith.subf %89, %91 : vector<128x1xf32>
    %cst_58 = arith.constant 1.000000e-03 : f32
    %93 = vector.broadcast %cst_58 : f32 to vector<128x1xf32>
    %94 = arith.mulf %85, %93 : vector<128x1xf32>
    %95 = arith.addf %92, %94 : vector<128x1xf32>
    %cst_59 = arith.constant 0.000000e+00 : f32
    %96 = vector.broadcast %cst_59 : f32 to vector<1x1xf32>
    %97 = arith.subf %96, %4 : vector<1x1xf32>
    %98 = vector.broadcast %97 : vector<1x1xf32> to vector<128x1xf32>
    %99 = arith.mulf %98, %1 : vector<128x1xf32>
    %cst_60 = arith.constant 1.000000e+00 : f32
    %100 = vector.broadcast %cst_60 : f32 to vector<128x1xf32>
    %101 = arith.subf %100, %1 : vector<128x1xf32>
    %102 = vector.broadcast %5 : vector<1x1xf32> to vector<128x1xf32>
    %103 = arith.mulf %102, %101 : vector<128x1xf32>
    %104 = arith.addf %99, %103 : vector<128x1xf32>
    %105 = tpu.iota {dimensions = array<i32: 1>} : vector<128x128xi32>
    %c0_i32 = arith.constant 0 : i32
    %106 = vector.broadcast %c0_i32 : i32 to vector<128x128xi32>
    %107 = arith.cmpi eq, %105, %106 : vector<128x128xi32>
    %c1_i32 = arith.constant 1 : i32
    %108 = vector.broadcast %c1_i32 : i32 to vector<128x128xi32>
    %109 = arith.cmpi eq, %105, %108 : vector<128x128xi32>
    %cst_61 = arith.constant 0.000000e+00 : f32
    %110 = vector.shape_cast %104 : vector<128x1xf32> to vector<128x1xf32>
    %111 = vector.broadcast %110 : vector<128x1xf32> to vector<128x128xf32>
    %112 = vector.broadcast %cst_61 : f32 to vector<128x128xf32>
    %113 = arith.select %109, %111, %112 : vector<128x128xi1>, vector<128x128xf32>
    %114 = vector.shape_cast %95 : vector<128x1xf32> to vector<128x1xf32>
    %115 = vector.broadcast %114 : vector<128x1xf32> to vector<128x128xf32>
    %116 = arith.select %107, %115, %113 : vector<128x128xi1>, vector<128x128xf32>
    %c0_62 = arith.constant 0 : index
    %c0_63 = arith.constant 0 : index
    %117 = vector.load %arg12[%c0_62, %c0_63] : memref<128x128xf32, #tpu.memory_space<vmem>>, vector<128x128xf32>
    tpu.vector_store %arg12[%c0_62, %c0_63], %116 {strides = array<i32>} : memref<128x128xf32, #tpu.memory_space<vmem>>, vector<128x128xf32>,
    return
  }
  func.func @transform_0(%arg0: i32) -> (i32, i32) {
    %c0_i32 = arith.constant 0 : i32
    %c0_i32_0 = arith.constant 0 : i32
    return %arg0, %c0_i32 : i32, i32
  }
  func.func @transform_1(%arg0: i32) -> (i32, i32) {
    %c0_i32 = arith.constant 0 : i32
    %c0_i32_0 = arith.constant 0 : i32
    %c0_i32_1 = arith.constant 0 : i32
    return %c0_i32, %c0_i32_0 : i32, i32
  }
  func.func @transform_2(%arg0: i32) -> (i32, i32) {
    %c0_i32 = arith.constant 0 : i32
    %c0_i32_0 = arith.constant 0 : i32
    %c0_i32_1 = arith.constant 0 : i32
    return %c0_i32, %c0_i32_0 : i32, i32
  }
  func.func @transform_3(%arg0: i32) -> (i32, i32) {
    %c0_i32 = arith.constant 0 : i32
    %c0_i32_0 = arith.constant 0 : i32
    %c0_i32_1 = arith.constant 0 : i32
    return %c0_i32, %c0_i32_0 : i32, i32
  }
  func.func @transform_4(%arg0: i32) -> (i32, i32) {
    %c0_i32 = arith.constant 0 : i32
    %c0_i32_0 = arith.constant 0 : i32
    %c0_i32_1 = arith.constant 0 : i32
    return %c0_i32, %c0_i32_0 : i32, i32
  }
  func.func @transform_5(%arg0: i32) -> (i32, i32) {
    %c0_i32 = arith.constant 0 : i32
    %c0_i32_0 = arith.constant 0 : i32
    %c0_i32_1 = arith.constant 0 : i32
    return %c0_i32, %c0_i32_0 : i32, i32
  }
  func.func @transform_6(%arg0: i32) -> (i32, i32) {
    %c0_i32 = arith.constant 0 : i32
    %c0_i32_0 = arith.constant 0 : i32
    %c0_i32_1 = arith.constant 0 : i32
    return %c0_i32, %c0_i32_0 : i32, i32
  }
  func.func @transform_7(%arg0: i32) -> (i32, i32, i32) {
    %c0_i32 = arith.constant 0 : i32
    %c0_i32_0 = arith.constant 0 : i32
    %c0_i32_1 = arith.constant 0 : i32
    %c0_i32_2 = arith.constant 0 : i32
    return %c0_i32, %c0_i32_0, %c0_i32_1 : i32, i32, i32
  }
  func.func @transform_8(%arg0: i32) -> (i32, i32) {
    %c0_i32 = arith.constant 0 : i32
    %c0_i32_0 = arith.constant 0 : i32
    %c0_i32_1 = arith.constant 0 : i32
    return %c0_i32, %c0_i32_0 : i32, i32
  }
  func.func @transform_9(%arg0: i32) -> (i32, i32) {
    %c0_i32 = arith.constant 0 : i32
    %c0_i32_0 = arith.constant 0 : i32
    %c0_i32_1 = arith.constant 0 : i32
    return %c0_i32, %c0_i32_0 : i32, i32
  }
  func.func @transform_10(%arg0: i32) -> (i32, i32) {
    %c0_i32 = arith.constant 0 : i32
    %c0_i32_0 = arith.constant 0 : i32
    %c0_i32_1 = arith.constant 0 : i32
    return %c0_i32, %c0_i32_0 : i32, i32
  }
  func.func @transform_11(%arg0: i32) -> (i32, i32) {
    %c0_i32 = arith.constant 0 : i32
    %c0_i32_0 = arith.constant 0 : i32
    return %arg0, %c0_i32 : i32, i32
  }
}

</mosaic_0001>

<bundles_post_ra>
// kernel: tpu_custom_call.1
= control target key start
LH: loop header
LB: loop body
LE: loop exit
PB: predicated region body
PF: predicated region fallthrough
CT: control target
= control target key end

     0   :  { %s5343_s0 = inlined_call_operand.vmem [shape: f32[256,2], index: 0, kind: input, shape index: {}]   ;;  %s5344_s1 = inlined_call_operand.<no memory space> [shape: f32[1,1], index: 1, kind: input, shape index: {}]   ;;  %s5345_s5 = inlined_call_operand.vmem [shape: f32[1,256], index: 5, kind: input, shape index: {}]   ;;  %s5346_s6 = inlined_call_operand.vmem [shape: f32[1,256], index: 6, kind: input, shape index: {}]   ;;  %s5347_s7 = inlined_call_operand.hbm [shape: bf16[5,256,256], index: 7, kind: input, shape index: {}]   ;;  %s5348_s8 = inlined_call_operand.vmem [shape: f32[5,256], index: 8, kind: input, shape index: {}]   ;;  %s5349_s9 = inlined_call_operand.vmem [shape: f32[1,256], index: 9, kind: input, shape index: {}]   ;;  %s5350_s11 = inlined_call_operand.hbm [shape: f32[256,128], index: 11, kind: output, shape index: {}]   ;;  %s5351_s2 = inlined_call_operand.<no memory space> [shape: f32[1,1], index: 2, kind: input, shape index: {}]   ;;  %s5352_s3 = inlined_call_operand.<no memory space> [shape: f32[1,1], index: 3, kind: input, shape index: {}]   ;;  %s5353_s4 = inlined_call_operand.<no memory space> [shape: f32[1,1], index: 4, kind: input, shape index: {}]   ;;  %s5354_s10 = inlined_call_operand.<no memory space> [shape: f32[1,1], index: 10, kind: input, shape index: {}]  }
   0x1   :  { %v16_v0 = vstv %s5344_s1  ;;  %v18_v1 = vstv %s5351_s2  ;;  %v20_v2 = vstv %s5352_s3  ;;  %v22_v3 = vstv %s5353_s4 }
   0x2   :  { %17 = vst [vmem:[#allocation2] sm:$0x1] %v16_v0  ;;  %19 = vst [vmem:[#allocation3] sm:$0x1] %v18_v1  ;;  %v24_v4 = vstv %s5354_s10 }
   0x3   :  { %21 = vst [vmem:[#allocation4] sm:$0x1] %v20_v2  ;;  %23 = vst [vmem:[#allocation5] sm:$0x1] %v22_v3 }
   0x4   :  { %25 = vst [vmem:[#allocation6] sm:$0x1] %v24_v4 }
   0x5   :  { %26 = vsyncpa [#allocation8], 0 }
   0x6   :  { %27 = vsyncpa [#allocation9], 0 }
   0x7   :  { %29 = vsyncpa [#allocation9 + $0x1], 0  ;;  %s4254_s1 = smov 0   ;;  %s4256_s2 = smov 0  }
   0x8   :  { %s4258_s3 = smov 0   ;;  %s4260_s27 = smov 0  }
   0x9 LB: > { %s4275_s4 = sadd.s32 4294967295, %s4169_s27   ;;  %s3546_s10 = sadd.s32 4294967294, %s4169_s27   ;;  %s4169_s27 = sphi %s4260_s27, %s5446_s27   ;;  %s4165_s3 = sphi %s4258_s3, %s5445_s3   ;;  %s4161_s2 = sphi %s4256_s2, %s5444_s2   ;;  %s4157_s1 = sphi %s4254_s1, %s5443_s1  }
   0xa   : > { %s4279_s28 = sadd.s32 1, %s4169_s27   ;;  %s278_s29 = sadd.s32 1, %s4165_s3 }
   0xb   : > { %s275_s30 = ssub.s32 %s4169_s27, %s4279_s28  ;;  %p288_p0 = scmp.ne.s32.totalorder %s4165_s3, %s4161_s2 }
   0xc   : > { %p276_p1 = scmp.eq.s32.totalorder %s275_s30, 0  ;;  %p289_p2 = scmp.eq.s32.totalorder %s4275_s4, 1 }
   0xd   : > { %p294_p3 = scmp.ne.s32.totalorder %s4161_s2, %s4157_s1  ;;  %p295_p4 = scmp.eq.s32.totalorder %s3546_s10, 1 }
   0xe   : > { %s4290_s12 = scalar_select %p276_p1, %s4165_s3, %s278_s29  }
   0xf   : > { %p4292_p5 = por %p289_p2, %p288_p0  ;;  %p4296_p6 = por %p295_p4, %p294_p3 }
  0x10   : > { %p3547_p7 = scmp.ge.s32.totalorder %s4169_s27, 1  ;;  %p302_p8 = scmp.lt.s32.totalorder %s4169_s27, 3 }
  0x11   : > { %s5389_s13 = scalar_select %p4292_p5, 1, 0 }
  0x12   : > { %s5390_s14 = scalar_select %p4296_p6, 1, 0 }
  0x13   : > { %p5355_p9 = scmp.eq.s32.totalorder %s4275_s4, 0  ;;  %p4303_p10 = pnand %p3547_p7, %p302_p8 }
  0x14   : > { %s4171_s16 = smov [#allocation7]   ;;  %s4075_s21 = scalar_lea.hbm %s5347_s7, 20480 }
  0x15   : > { %s5391_s15 = scalar_select %p4303_p10, 1, 0 }
  0x16   : > { %s332_s17 = sshll.u32 %s4171_s16, 4  ;;  %p3767_p11 = pneg %p4303_p10  ;;  %s333_s17 = int_to_ptr.vmem [resolvable:$true] %s332_s17 }
  0x17   : > { %p4076_p13 = scmp.ne.s32.totalorder %s5347_s7, %s4075_s21  ;;  %p4082_p3 = scmp.lt.u32.totalorder %s4075_s21, %s5347_s7 }
  0x18   : > { %p4311_p12 = pnand %p5355_p9, %p3767_p11 }
  0x1a   : > { %p4077_p0 = pneg %p4311_p12 }
  0x1c   : > { %p4078_p1 = pnand %p4077_p0, %p4076_p13 }
  0x1e   : > { %p4079_p2 = pneg %p4078_p1 }
  0x20   : > { %p4084_p4 = pnand %p4082_p3, %p4079_p2 }
  0x22   : > { %4087 = shalt.err (!%p4084_p4)
}
  0x23   : > { %s4088_s26 = scalar_lea.vmem %s333_s17, 20480  ;;  %p4096_p9 = scmp.lt.s32.totalorder %s333_s17, %s333_s17 }
  0x24   : > { %p4089_p7 = scmp.ne.s32.totalorder %s333_s17, %s4088_s26  ;;  %p4097_p6 = scmp.lt.s32.totalorder %s4088_s26, %s4088_s26 }
  0x26   : > { %p4091_p8 = pnand %p4089_p7, %p4077_p0  ;;  %p4098_p5 = por %p4097_p6, %p4096_p9 }
  0x28   : > { %p4092_p11 = pneg %p4091_p8 }
  0x2a   : > { %p4099_p10 = pnand %p4098_p5, %p4092_p11 }
  0x2c   : > { %4102 = shalt.err (!%p4099_p10)
}
  0x2d   : > { %s4172_s10 = smov 128   ;;  %s4173_s29 = smov 8  }
  0x2e   : > { %3770 = dma.hbm_to_vmem [thread:$0]  (!%p4311_p12), %s5347_s7, 20480, %s333_s17, [#allocation8], %s4172_s10, %s4172_s10, %s4173_s29  }
  0x2f   : > { %p5393_p13 = scmp.ne.s32.totalorder %s5391_s15, 0 }
  0x31   : > { %366 = sbr.rel (%p5393_p13) target bundleno = 1672 (0x688), region = 64 }
  0x38   : > { %p5394_p1 = scmp.eq.s32.totalorder %s4275_s4, 0 }
  0x3a   : > { %4148 = dma.done.wait (%p5394_p1), [#allocation8], 20480   ;;  %p5395_p0 = pmov %p5394_p1 }
  0x3b   : > { %s3553_s19 = sshll.u32 %s4275_s4, 4  ;;  %v4174_v5 = vmov 0   ;;  %v3819_v12 = vld [vmem:[#allocation7 + $0x4] ss:$8 sps:$4 sm:$0xff]   ;;  %v3821_v13 = vld [vmem:[#allocation7] ss:$8 sps:$4 sm:$0xff]  }
  0x3c   : > { %4150 = vsyncadd (%p5395_p0), [#allocation8], 4294946816  ;;  %3818 = vset.pattern.permute.xlu1 %v4174_v5  ;;  %3817 = vset.pattern.permute.xlu0 %v4174_v5  ;;  %p407_p5 = scmp.lt.s32.totalorder %s3553_s19, 31  ;;  %v3822_v14 = vld [vmem:[#allocation7 + $0x14] ss:$8 sps:$4 sm:$0xff]   ;;  %s4175_s15 = smov 127  }
  0x3d   : > { %919 = vmatprep.subr.bf16.mxu0 %v3819_v12  ;;  %v3824_v17 = vld [vmem:[#allocation7 + $0x10] ss:$8 sps:$4 sm:$0xff]   ;;  %v3825_v18 = vld [vmem:[#allocation7 + $0x24] ss:$8 sps:$4 sm:$0xff]   ;;  %v3827_v21 = vld [vmem:[#allocation7 + $0x20] ss:$8 sps:$4 sm:$0xff]  }
  0x3e   : > { %s5448_s19 = smov (!%p407_p5, %s3553_s19), 31  ;;  %920 = vmatpush1.bf16.msra.mxu0 %v3821_v13  ;;  %v3828_v22 = vld [vmem:[#allocation7 + $0x34] ss:$8 sps:$4 sm:$0xff]   ;;  %v3830_v25 = vld [vmem:[#allocation7 + $0x30] ss:$8 sps:$4 sm:$0xff]   ;;  %s3728_s26 = sshll.u32 %s4275_s4, 11 }
  0x3f   : > { %s3554_s18 = sshll.u32 %s5448_s19, 3  ;;  %921 = vmatprep.subr.bf16.mxu0 %v3822_v14  ;;  %v3831_v26 = vld [vmem:[#allocation7 + $0x44] ss:$8 sps:$4 sm:$0xff]   ;;  %v3833_v29 = vld [vmem:[#allocation7 + $0x40] ss:$8 sps:$4 sm:$0xff]   ;;  %s5289_s16 = scalar_lea.hbm %s5350_s11, %s3728_s26 }
  0x40   : > { %s4341_s17 = scalar_lea.vmem %s5343_s0, %s3554_s18  ;;  %v3834_v30 = vld [vmem:[#allocation7 + $0x54] ss:$8 sps:$4 sm:$0xff]   ;;  %v3836_v33 = vld [vmem:[#allocation7 + $0x50] ss:$8 sps:$4 sm:$0xff]   ;;  %v3837_v34 = vld [vmem:[#allocation7 + $0x64] ss:$8 sps:$4 sm:$0xff]  }
  0x41   : > { %v4344_v6 = vld [vmem:[%s4341_s17 + $0x10] sm:$0xff]  ;;  %v4347_v7 = vld [vmem:[%s4341_s17] sm:$0xff]  ;;  %v4352_v8 = vld [vmem:[%s4341_s17 + $0x18] sm:$0xff]  ;;  %p5441_p9 = scmp.ne.s32.totalorder %s5389_s13, 0  ;;  %s4176_s18 = smov [#allocation10]  }
  0x42   : > { %5396 = vst [vmem:[#allocation13_spill] sm:$0xff] %v4344_v6  ;;  %449 = vperm.xlu1 %3818, %v4344_v6   ;;  %439 = vperm.xlu0 %3817, %v4347_v7   ;;  %5397 = vst [vmem:[#allocation14_spill] sm:$0xff] %v4352_v8  ;;  %v4355_v9 = vld [vmem:[%s4341_s17 + $0x8] sm:$0xff]  ;;  %v4363_v11 = vld [vmem:[%s4341_s17 + $0x20] sm:$0xff]  ;;  %v5374_v50 = vsub.f32 1.0, %v4347_v7  ;;  %v5372_v53 = vsub.f32 1.0, %v4344_v6 }
  0x43   : > { %v4360_v10 = vld [vmem:[%s4341_s17 + $0x28] sm:$0xff]  ;;  %5399 = vst [vmem:[#allocation16_spill] sm:$0xff] %v4363_v11  ;;  %v4368_v15 = vld [vmem:[%s4341_s17 + $0x38] sm:$0xff]  ;;  %v4371_v16 = vld [vmem:[%s4341_s17 + $0x30] sm:$0xff]  ;;  %922 = vmatpush1.bf16.msra.mxu0 %v3824_v17  ;;  %v5373_v56 = vsub.f32 1.0, %v4355_v9  ;;  %v5370_v57 = vsub.f32 1.0, %v4363_v11 }
  0x44   : > { %5398 = vst [vmem:[#allocation15_spill] sm:$0xff] %v4360_v10  ;;  %5400 = vst [vmem:[#allocation17_spill] sm:$0xff] %v4368_v15  ;;  %v4376_v19 = vld [vmem:[%s4341_s17 + $0x48] sm:$0xff]  ;;  %v4379_v20 = vld [vmem:[%s4341_s17 + $0x40] sm:$0xff]  ;;  %923 = vmatprep.subr.bf16.mxu0 %v3825_v18  ;;  %v5371_v58 = vsub.f32 1.0, %v4352_v8  ;;  %v5368_v59 = vsub.f32 1.0, %v4371_v16 }
  0x45   : > { %5401 = vst [vmem:[#allocation18_spill] sm:$0xff] %v4371_v16  ;;  %5402 = vst [vmem:[#allocation19_spill] sm:$0xff] %v4376_v19  ;;  %v4384_v23 = vld [vmem:[%s4341_s17 + $0x58] sm:$0xff]  ;;  %v4387_v24 = vld [vmem:[%s4341_s17 + $0x50] sm:$0xff]  ;;  %v5369_v60 = vsub.f32 1.0, %v4360_v10  ;;  %v5366_v61 = vsub.f32 1.0, %v4379_v20 }
  0x46   : > { %454 = vperm.xlu1 %3818, %v4352_v8   ;;  %444 = vperm.xlu0 %3817, %v4355_v9   ;;  %5403 = vst [vmem:[#allocation20_spill] sm:$0xff] %v4379_v20  ;;  %5404 = vst [vmem:[#allocation21_spill] sm:$0xff] %v4384_v23  ;;  %v4392_v27 = vld [vmem:[%s4341_s17 + $0x68] sm:$0xff]  ;;  %v4395_v28 = vld [vmem:[%s4341_s17 + $0x60] sm:$0xff]  ;;  %v5367_v62 = vsub.f32 1.0, %v4368_v15  ;;  %v5364_v63 = vsub.f32 1.0, %v4387_v24 }
  0x47   : > { %5405 = vst [vmem:[#allocation22_spill] sm:$0xff] %v4387_v24  ;;  %924 = vmatpush1.bf16.msra.mxu0 %v3827_v21  ;;  %5406 = vst [vmem:[#allocation23_spill] sm:$0xff] %v4392_v27  ;;  %v4398_v31 = vld [vmem:[%s4341_s17 + $0x78] sm:$0xff]  ;;  %v4403_v32 = vld [vmem:[%s4341_s17 + $0x70] sm:$0xff]  ;;  %v5365_v0 = vsub.f32 1.0, %v4376_v19  ;;  %v5362_v1 = vsub.f32 1.0, %v4395_v28 }
  0x48   : > { %925 = vmatprep.subr.bf16.mxu0 %v3828_v22  ;;  %5407 = vst [vmem:[#allocation24_spill] sm:$0xff] %v4395_v28  ;;  %5408 = vst [vmem:[#allocation25_spill] sm:$0xff] %v4398_v31  ;;  %v3839_v35 = vld [vmem:[#allocation7 + $0x60] ss:$8 sps:$4 sm:$0xff]   ;;  %v3840_v36 = vld [vmem:[#allocation7 + $0x74] ss:$8 sps:$4 sm:$0xff]  }
  0x49   : > { %5409 = vst [vmem:[#allocation26_spill] sm:$0xff] %v4403_v32  ;;  %v3842_v37 = vld [vmem:[#allocation7 + $0x70] ss:$8 sps:$4 sm:$0xff]   ;;  %v3843_v38 = vld [vmem:[#allocation7 + $0x84] ss:$8 sps:$4 sm:$0xff]   ;;  %v5363_v12 = vsub.f32 1.0, %v4384_v23 }
  0x4a   : > { %464 = vperm.xlu1 %3818, %v4360_v10   ;;  %459 = vperm.xlu0 %3817, %v4363_v11   ;;  %v3845_v39 = vld [vmem:[#allocation7 + $0x80] ss:$8 sps:$4 sm:$0xff]   ;;  %v3846_v40 = vld [vmem:[#allocation7 + $0x94] ss:$8 sps:$4 sm:$0xff]   ;;  %v3848_v41 = vld [vmem:[#allocation7 + $0x90] ss:$8 sps:$4 sm:$0xff]  }
  0x4b   : > { %926 = vmatpush1.bf16.msra.mxu0 %v3830_v25  ;;  %v3849_v42 = vld [vmem:[#allocation7 + $0xa4] ss:$8 sps:$4 sm:$0xff]   ;;  %v3851_v43 = vld [vmem:[#allocation7 + $0xa0] ss:$8 sps:$4 sm:$0xff]   ;;  %v3852_v44 = vld [vmem:[#allocation7 + $0xb4] ss:$8 sps:$4 sm:$0xff]  }
  0x4c   : > { %927 = vmatprep.subr.bf16.mxu0 %v3831_v26  ;;  %v3854_v45 = vld [vmem:[#allocation7 + $0xb0] ss:$8 sps:$4 sm:$0xff]   ;;  %v3855_v46 = vld [vmem:[#allocation7 + $0xc4] ss:$8 sps:$4 sm:$0xff]   ;;  %v3857_v47 = vld [vmem:[#allocation7 + $0xc0] ss:$8 sps:$4 sm:$0xff]  }
  0x4d   : > { %v3858_v48 = vld [vmem:[#allocation7 + $0xd4] ss:$8 sps:$4 sm:$0xff]   ;;  %v3860_v49 = vld [vmem:[#allocation7 + $0xd0] ss:$8 sps:$4 sm:$0xff]   ;;  %v3861_v51 = vld [vmem:[#allocation7 + $0xe4] ss:$8 sps:$4 sm:$0xff]  }
  0x4e   : > { %474 = vperm.xlu1 %3818, %v4368_v15   ;;  %469 = vperm.xlu0 %3817, %v4371_v16   ;;  %v3863_v52 = vld [vmem:[#allocation7 + $0xe0] ss:$8 sps:$4 sm:$0xff]   ;;  %v3864_v54 = vld [vmem:[#allocation7 + $0xf4] ss:$8 sps:$4 sm:$0xff]   ;;  %v3866_v55 = vld [vmem:[#allocation7 + $0xf0] ss:$8 sps:$4 sm:$0xff]  }
  0x4f   : > { %928 = vmatpush1.bf16.msra.mxu0 %v3833_v29  ;;  %v3867_v2 = vld [vmem:[#allocation7 + $0x104] ss:$8 sps:$4 sm:$0xff]   ;;  %v3869_v3 = vld [vmem:[#allocation7 + $0x100] ss:$8 sps:$4 sm:$0xff]   ;;  %v3870_v4 = vld [vmem:[#allocation7 + $0x114] ss:$8 sps:$4 sm:$0xff]  }
  0x50   : > { %929 = vmatprep.subr.bf16.mxu0 %v3834_v30  ;;  %1350 = vmatprep.subr.bf16.mxu1 %v3867_v2  ;;  %v3872_v5 = vld [vmem:[#allocation7 + $0x110] ss:$8 sps:$4 sm:$0xff]   ;;  %v5360_v13 = vsub.f32 1.0, %v4403_v32  ;;  %v3873_v14 = vld [vmem:[#allocation7 + $0x124] ss:$8 sps:$4 sm:$0xff]   ;;  %v5361_v18 = vsub.f32 1.0, %v4392_v27  ;;  %v5358_v30 = vlaneseq }
  0x51   : > { %1351 = vmatpush1.bf16.msra.mxu1 %v3869_v3  ;;  %v3875_v17 = vld [vmem:[#allocation7 + $0x120] ss:$8 sps:$4 sm:$0xff]   ;;  %v3876_v21 = vld [vmem:[#allocation7 + $0x134] ss:$8 sps:$4 sm:$0xff]   ;;  %v3878_v22 = vld [vmem:[#allocation7 + $0x130] ss:$8 sps:$4 sm:$0xff]  }
  0x52   : > { %484 = vperm.xlu1 %3818, %v4376_v19   ;;  %479 = vperm.xlu0 %3817, %v4379_v20   ;;  %v5359_v25 = vsub.f32 1.0, %v4398_v31  ;;  %v3879_v26 = vld [vmem:[#allocation7 + $0x144] ss:$8 sps:$4 sm:$0xff]   ;;  %v3881_v29 = vld [vmem:[#allocation7 + $0x140] ss:$8 sps:$4 sm:$0xff]   ;;  %s4107_s20 = sshll.u32 %s4176_s18, 4  ;;  %s4108_s20 = int_to_ptr.vmem [resolvable:$false] %s4107_s20 }
  0x53   : > { %930 = vmatpush1.bf16.msra.mxu0 %v3836_v33  ;;  %1352 = vmatprep.subr.bf16.mxu1 %v3870_v4  ;;  %v519_v33 = vshrl.u32 %v5358_v30, 7  ;;  %s4109_s21 = scalar_lea.vmem %s4108_s20, 4096 }
  0x54   : > { %931 = vmatprep.subr.bf16.mxu0 %v3837_v34 }
  0x55   : > { %1353 = vmatpush1.bf16.msra.mxu1 %v3872_v5  ;;  %v4504_v34 = vsub.s32 1, %v519_v33 }
  0x56   : > { %494 = vperm.xlu1 %3818, %v4384_v23   ;;  %489 = vperm.xlu0 %3817, %v4387_v24  }
  0x57   : > { %932 = vmatpush1.bf16.msra.mxu0 %v3839_v35  ;;  %1354 = vmatprep.subr.bf16.mxu1 %v3873_v14  ;;  %v434_v35 = vld [vmem:[%s5346_s6] sm:$0x3] }
  0x58   : > { %933 = vmatprep.subr.bf16.mxu0 %v3840_v36  ;;  %v4509_v36 = vsub.s32 0, %v519_v33 }
  0x59   : > { %1355 = vmatpush1.bf16.msra.mxu1 %v3875_v17 }
  0x5a   : > { %504 = vperm.xlu1 %3818, %v4392_v27   ;;  %499 = vperm.xlu0 %3817, %v4395_v28  }
  0x5b   : > { %934 = vmatpush1.bf16.msra.mxu0 %v3842_v37  ;;  %1356 = vmatprep.subr.bf16.mxu1 %v3876_v21  ;;  %v4512_v37 = vrot.slane %v434_v35, %v4504_v34 }
  0x5c   : > { %935 = vmatprep.subr.bf16.mxu0 %v3843_v38  ;;  %v433_v38 = vld [vmem:[%s5345_s5] sm:$0x3] }
  0x5d   : > { %1357 = vmatpush1.bf16.msra.mxu1 %v3878_v22 }
  0x5e   : > { %514 = vperm.xlu1 %3818, %v4398_v31   ;;  %509 = vperm.xlu0 %3817, %v4403_v32  }
  0x5f   : > { %936 = vmatpush1.bf16.msra.mxu0 %v3845_v39  ;;  %1358 = vmatprep.subr.bf16.mxu1 %v3879_v26  ;;  %v4518_v39 = vrot.slane %v434_v35, %v4509_v36 }
  0x60   : > { %937 = vmatprep.subr.bf16.mxu0 %v3846_v40 }
  0x61   : > { %1359 = vmatpush1.bf16.msra.mxu1 %v3881_v29 }
  0x62   : > { %3080 = vrot.lane.b32.xlu1 %v4347_v7, %s4175_s15  ;;  %3082 = vrot.lane.b32.xlu0 %v4355_v9, %s4175_s15 }
  0x63   : > { %938 = vmatpush1.bf16.msra.mxu0 %v3848_v41 }
  0x64   : > { %939 = vmatprep.subr.bf16.mxu0 %v3849_v42 }
  0x66   : > { %3084 = vrot.lane.b32.xlu1 %v4344_v6, %s4175_s15  ;;  %3088 = vrot.lane.b32.xlu0 %v4363_v11, %s4175_s15 }
  0x67   : > { %940 = vmatpush1.bf16.msra.mxu0 %v3851_v43  ;;  %v4522_v43 = vrot.slane %v433_v38, %v4504_v34 }
  0x68   : > { %941 = vmatprep.subr.bf16.mxu0 %v3852_v44 }
  0x6a   : > { %3086 = vrot.lane.b32.xlu1 %v4352_v8, %s4175_s15  ;;  %3092 = vrot.lane.b32.xlu0 %v4371_v16, %s4175_s15 }
  0x6b   : > { %942 = vmatpush1.bf16.msra.mxu0 %v3854_v45  ;;  %v4526_v45 = vrot.slane %v433_v38, %v4509_v36 }
  0x6c   : > { %943 = vmatprep.subr.bf16.mxu0 %v3855_v46 }
  0x6e   : > { %3090 = vrot.lane.b32.xlu1 %v4360_v10, %s4175_s15  ;;  %3096 = vrot.lane.b32.xlu0 %v4379_v20, %s4175_s15 }
  0x6f   : > { %944 = vmatpush1.bf16.msra.mxu0 %v3857_v47 }
  0x70   : > { %945 = vmatprep.subr.bf16.mxu0 %v3858_v48 }
  0x72   : > { %3094 = vrot.lane.b32.xlu1 %v4368_v15, %s4175_s15  ;;  %3100 = vrot.lane.b32.xlu0 %v4387_v24, %s4175_s15 }
  0x73   : > { %946 = vmatpush1.bf16.msra.mxu0 %v3860_v49 }
  0x74   : > { %947 = vmatprep.subr.bf16.mxu0 %v3861_v51 }
  0x76   : > { %3098 = vrot.lane.b32.xlu1 %v4376_v19, %s4175_s15  ;;  %3104 = vrot.lane.b32.xlu0 %v4395_v28, %s4175_s15 }
  0x77   : > { %948 = vmatpush1.bf16.msra.mxu0 %v3863_v52 }
  0x78   : > { %949 = vmatprep.subr.bf16.mxu0 %v3864_v54 }
  0x7a   : > { %3102 = vrot.lane.b32.xlu1 %v4384_v23, %s4175_s15  ;;  %3108 = vrot.lane.b32.xlu0 %v4403_v32, %s4175_s15 }
  0x7b   : > { %950 = vmatpush1.bf16.msra.mxu0 %v3866_v55 }
  0x7e   : > { %3106 = vrot.lane.b32.xlu1 %v4392_v27, %s4175_s15  ;;  %3166 = vrot.lane.b32.xlu0 %v5374_v50, %s4175_s15 }
  0x82   : > { %3110 = vrot.lane.b32.xlu1 %v4398_v31, %s4175_s15  ;;  %3170 = vrot.lane.b32.xlu0 %v5372_v53, %s4175_s15 }
  0x86   : > { %3168 = vrot.lane.b32.xlu1 %v5373_v56, %s4175_s15  ;;  %3174 = vrot.lane.b32.xlu0 %v5370_v57, %s4175_s15 }
  0x8a   : > { %3172 = vrot.lane.b32.xlu1 %v5371_v58, %s4175_s15  ;;  %3178 = vrot.lane.b32.xlu0 %v5368_v59, %s4175_s15 }
  0x8e   : > { %3176 = vrot.lane.b32.xlu1 %v5369_v60, %s4175_s15  ;;  %3182 = vrot.lane.b32.xlu0 %v5366_v61, %s4175_s15 }
  0x92   : > { %3180 = vrot.lane.b32.xlu1 %v5367_v62, %s4175_s15  ;;  %3186 = vrot.lane.b32.xlu0 %v5364_v63, %s4175_s15 }
  0x96   : > { %3184 = vrot.lane.b32.xlu1 %v5365_v0, %s4175_s15  ;;  %3190 = vrot.lane.b32.xlu0 %v5362_v1, %s4175_s15 }
  0x9a   : > { %3188 = vrot.lane.b32.xlu1 %v5363_v12, %s4175_s15  ;;  %3194 = vrot.lane.b32.xlu0 %v5360_v13, %s4175_s15 }
  0x9e   : > { %3192 = vrot.lane.b32.xlu1 %v5361_v18, %s4175_s15 }
  0xa2   : > { %3196 = vrot.lane.b32.xlu1 %v5359_v25, %s4175_s15 }
  0xc1   : > { %v450_v40 = vpop.permute.xlu1 %449  ;;  %v440_v41 = vpop.permute.xlu0 %439 }
  0xc2   : > { %v533_v42 = vmul.f32 %v4512_v37, %v450_v40  ;;  %v529_v44 = vmul.f32 %v4512_v37, %v440_v41  ;;  %v528_v46 = vmul.f32 %v4518_v39, %v440_v41  ;;  %v532_v17 = vmul.f32 %v4518_v39, %v450_v40 }
  0xc4   : > { %v576_v49 = vadd.f32 %v4522_v43, %v533_v42  ;;  %v572_v55 = vadd.f32 %v4522_v43, %v529_v44  ;;  %v571_v2 = vadd.f32 %v4526_v45, %v528_v46  ;;  %v575_v44 = vadd.f32 %v4526_v45, %v532_v17 }
  0xc5   : > { %v455_v47 = vpop.permute.xlu1 %454  ;;  %v445_v48 = vpop.permute.xlu0 %444 }
  0xc6   : > { %v535_v51 = vmul.f32 %v4512_v37, %v455_v47  ;;  %v530_v52 = vmul.f32 %v4518_v39, %v445_v48  ;;  %v531_v54 = vmul.f32 %v4512_v37, %v445_v48  ;;  %v640_v21 = vmul.f32 0.01, %v576_v49 }
  0xc7   : > { %v534_v22 = vmul.f32 %v4518_v39, %v455_v47  ;;  %v636_v33 = vmul.f32 0.01, %v572_v55  ;;  %v635_v38 = vmul.f32 0.01, %v571_v2  ;;  %vm604_vm0 = vcmp.gt.f32.partialorder %v572_v55, 0.0 }
  0xc8   : > { %v573_v3 = vadd.f32 %v4526_v45, %v530_v52  ;;  %v574_v4 = vadd.f32 %v4522_v43, %v531_v54  ;;  %v578_v26 = vadd.f32 %v4522_v43, %v535_v51  ;;  %vm603_vm3 = vcmp.gt.f32.partialorder %v571_v2, 0.0 }
  0xc9   : > { %v465_v5 = vpop.permute.xlu1 %464  ;;  %v460_v14 = vpop.permute.xlu0 %459  ;;  %vm608_vm4 = vcmp.gt.f32.partialorder %v576_v49, 0.0  ;;  %v577_v40 = vadd.f32 %v4526_v45, %v534_v22  ;;  %v668_v48 = vsel %vm604_vm0, %v572_v55, %v636_v33  ;;  %v667_v25 = vsel %vm603_vm3, %v571_v2, %v635_v38 }
  0xca   : > { %v637_v29 = vmul.f32 0.01, %v573_v3  ;;  %v638_v35 = vmul.f32 0.01, %v574_v4  ;;  %vm606_vm1 = vcmp.gt.f32.partialorder %v574_v4, 0.0  ;;  %vm605_vm2 = vcmp.gt.f32.partialorder %v573_v3, 0.0 }
  0xcb   : > { %v642_v46 = vmul.f32 0.01, %v578_v26  ;;  %v537_v47 = vmul.f32 %v4512_v37, %v460_v14  ;;  %vm610_vm5 = vcmp.gt.f32.partialorder %v578_v26, 0.0  ;;  %v539_v54 = vmul.f32 %v4512_v37, %v465_v5 }
  0xcc   : > { %v670_v51 = vsel %vm606_vm1, %v574_v4, %v638_v35  ;;  %v669_v52 = vsel %vm605_vm2, %v573_v3, %v637_v29  ;;  %v672_v18 = vsel %vm608_vm4, %v576_v49, %v640_v21  ;;  %v538_v12 = vmul.f32 %v4518_v39, %v465_v5 }
  0xcd   : > { %v475_v41 = vpop.permute.xlu1 %474  ;;  %v470_v42 = vpop.permute.xlu0 %469  ;;  %v700_v30 = vpack.c.bf16 %v670_v51, %v668_v48  ;;  %v699_v63 = vpack.c.bf16 %v669_v52, %v667_v25  ;;  %v536_v17 = vmul.f32 %v4518_v39, %v460_v14  ;;  %v580_v22 = vadd.f32 %v4522_v43, %v537_v47 }
  0xce   : > { %v674_v0 = vsel %vm610_vm5, %v578_v26, %v642_v46  ;;  %v639_v55 = vmul.f32 0.01, %v575_v44  ;;  %v641_v4 = vmul.f32 0.01, %v577_v40  ;;  %v582_v29 = vadd.f32 %v4522_v43, %v539_v54 }
  0xcf   : > { %951 = vmatprep.mubr.bf16.mxu0 %v700_v30  ;;  %v702_v3 = vpack.c.bf16 %v674_v0, %v672_v18  ;;  %vm607_vm6 = vcmp.gt.f32.partialorder %v575_v44, 0.0  ;;  %vm609_vm7 = vcmp.gt.f32.partialorder %v577_v40, 0.0  ;;  %v581_v25 = vadd.f32 %v4526_v45, %v538_v12 }
  0xd0   : > { %952 = vmatmul.mubr.bf16.vlgmr.msra.gmra.mrb[0].mxu0 %v699_v63  ;;  %v579_v49 = vadd.f32 %v4526_v45, %v536_v17  ;;  %v644_v5 = vmul.f32 0.01, %v580_v22  ;;  %v541_v30 = vmul.f32 %v4512_v37, %v470_v42  ;;  %v542_v14 = vmul.f32 %v4518_v39, %v475_v41 }
  0xd1   : > { %v485_v13 = vpop.permute.xlu1 %484  ;;  %v480_v1 = vpop.permute.xlu0 %479  ;;  %961 = vmatprep.mubr.bf16.mxu0 %v702_v3  ;;  %v671_v63 = vsel %vm607_vm6, %v575_v44, %v639_v55  ;;  %v673_v0 = vsel %vm609_vm7, %v577_v40, %v641_v4  ;;  %vm612_vm8 = vcmp.gt.f32.partialorder %v580_v22, 0.0  ;;  %v646_v18 = vmul.f32 0.01, %v582_v29  ;;  %v431_v4 = vld [vmem:[#allocation4] sm:$0x1] }
  0xd2   : > { %v543_v21 = vmul.f32 %v4512_v37, %v475_v41  ;;  %v645_v38 = vmul.f32 0.01, %v581_v25  ;;  %v701_v12 = vpack.c.bf16 %v673_v0, %v671_v63  ;;  %v540_v46 = vmul.f32 %v4518_v39, %v470_v42 }
  0xd3   : > { %v584_v47 = vadd.f32 %v4522_v43, %v541_v30  ;;  %v547_v48 = vmul.f32 %v4512_v37, %v485_v13  ;;  %v676_v51 = vsel %vm612_vm8, %v580_v22, %v644_v5  ;;  %v643_v52 = vmul.f32 0.01, %v579_v49 }
  0xd4   : > { %v585_v44 = vadd.f32 %v4526_v45, %v542_v14  ;;  %v545_v40 = vmul.f32 %v4512_v37, %v480_v1  ;;  %vm614_vm9 = vcmp.gt.f32.partialorder %v582_v29, 0.0  ;;  %v586_v41 = vadd.f32 %v4522_v43, %v543_v21 }
  0xd5   : > { %v4548_v33 = vpop.permute.xlu1 %494  ;;  %v4550_v2 = vpop.permute.xlu0 %489  ;;  %v678_v54 = vsel %vm614_vm9, %v582_v29, %v646_v18  ;;  %vm611_vm10 = vcmp.gt.f32.partialorder %v579_v49, 0.0  ;;  %vm613_vm11 = vcmp.gt.f32.partialorder %v581_v25, 0.0  ;;  %v583_v22 = vadd.f32 %v4526_v45, %v540_v46 }
  0xd6   : > { %v704_v42 = vpack.c.bf16 %v678_v54, %v676_v51  ;;  %v648_v3 = vmul.f32 0.01, %v584_v47  ;;  %v590_v5 = vadd.f32 %v4522_v43, %v547_v48  ;;  %v588_v30 = vadd.f32 %v4522_v43, %v545_v40 }
  0xd7   : > { %v675_v14 = vsel %vm611_vm10, %v579_v49, %v643_v52  ;;  %v677_v63 = vsel %vm613_vm11, %v581_v25, %v645_v38  ;;  %v649_v0 = vmul.f32 0.01, %v585_v44  ;;  %v650_v29 = vmul.f32 0.01, %v586_v41 }
  0xd8   : > { %962 = vmatmul.mubr.bf16.gmra.mrb[4].mxu0 %v701_v12  ;;  %v3073_v18 = vsub.f32 0.0, %v431_v4  ;;  %v546_v51 = vmul.f32 %v4518_v39, %v485_v13  ;;  %v544_v54 = vmul.f32 %v4518_v39, %v480_v1  ;;  %v703_v46 = vpack.c.bf16 %v677_v63, %v675_v14 }
  0xd9   : > { %v4557_v26 = vpop.permute.xlu1 %504  ;;  %v4559_v35 = vpop.permute.xlu0 %499  ;;  %971 = vmatprep.mubr.bf16.mxu0 %v704_v42  ;;  %vm616_vm12 = vcmp.gt.f32.partialorder %v584_v47, 0.0  ;;  %v647_v61 = vmul.f32 0.01, %v583_v22  ;;  %v654_v48 = vmul.f32 0.01, %v590_v5  ;;  %v551_v40 = vmul.f32 %v4512_v37, %v4548_v33 }
  0xda   : > { %v680_v49 = vsel %vm616_vm12, %v584_v47, %v648_v3  ;;  %v652_v25 = vmul.f32 0.01, %v588_v30  ;;  %v549_v38 = vmul.f32 %v4512_v37, %v4550_v2  ;;  %vm618_vm13 = vcmp.gt.f32.partialorder %v586_v41, 0.0 }
  0xdb   : > { %vm615_vm14 = vcmp.gt.f32.partialorder %v583_v22, 0.0  ;;  %v682_v52 = vsel %vm618_vm13, %v586_v41, %v650_v29  ;;  %vm617_vm15 = vcmp.gt.f32.partialorder %v585_v44, 0.0  ;;  %vm620_vm0 = vcmp.gt.f32.partialorder %v588_v30, 0.0 }
  0xdc   : > { %v589_v1 = vadd.f32 %v4526_v45, %v546_v51  ;;  %v587_v4 = vadd.f32 %v4526_v45, %v544_v54  ;;  %v706_v14 = vpack.c.bf16 %v682_v52, %v680_v49  ;;  %v594_v47 = vadd.f32 %v4522_v43, %v551_v40 }
  0xdd   : > { %v4567_v17 = vpop.permute.xlu1 %514  ;;  %v4569_v55 = vpop.permute.xlu0 %509  ;;  %v679_v3 = vsel %vm615_vm14, %v583_v22, %v647_v61  ;;  %v681_v63 = vsel %vm617_vm15, %v585_v44, %v649_v0  ;;  %vm622_vm1 = vcmp.gt.f32.partialorder %v590_v5, 0.0  ;;  %v4593_v41 = vrot.slane %v3073_v18, %v4509_v36 }
  0xde   : > { %v684_v29 = vsel %vm620_vm0, %v588_v30, %v652_v25  ;;  %v686_v62 = vsel %vm622_vm1, %v590_v5, %v654_v48  ;;  %v550_v59 = vmul.f32 %v4518_v39, %v4548_v33  ;;  %v653_v49 = vmul.f32 0.01, %v589_v1 }
  0xdf   : > { %v548_v61 = vmul.f32 %v4518_v39, %v4550_v2  ;;  %v705_v44 = vpack.c.bf16 %v681_v63, %v679_v3  ;;  %v651_v0 = vmul.f32 0.01, %v587_v4  ;;  %v658_v18 = vmul.f32 0.01, %v594_v47 }
  0xe0   : > { %972 = vmatmul.mubr.bf16.gmra.mrb[8].mxu0 %v703_v46  ;;  %v592_v46 = vadd.f32 %v4522_v43, %v549_v38  ;;  %v555_v30 = vmul.f32 %v4512_v37, %v4557_v26  ;;  %v708_v5 = vpack.c.bf16 %v686_v62, %v684_v29  ;;  %v553_v33 = vmul.f32 %v4512_v37, %v4559_v35 }
  0xe1   : > { %v4574_v21 = vpop.permute.xlu1 %3080  ;;  %v4576_v12 = vpop.permute.xlu0 %3082  ;;  %981 = vmatprep.mubr.bf16.mxu0 %v706_v14  ;;  %vm619_vm2 = vcmp.gt.f32.partialorder %v587_v4, 0.0  ;;  %vm621_vm3 = vcmp.gt.f32.partialorder %v589_v1, 0.0  ;;  %v593_v40 = vadd.f32 %v4526_v45, %v550_v59  ;;  %vm626_vm5 = vcmp.gt.f32.partialorder %v594_v47, 0.0 }
  0xe2   : > { %v656_v48 = vmul.f32 0.01, %v592_v46  ;;  %vm624_vm4 = vcmp.gt.f32.partialorder %v592_v46, 0.0  ;;  %v591_v38 = vadd.f32 %v4526_v45, %v548_v61  ;;  %v598_v62 = vadd.f32 %v4522_v43, %v555_v30 }
  0xe3   : > { %v683_v14 = vsel %vm619_vm2, %v587_v4, %v651_v0  ;;  %v685_v3 = vsel %vm621_vm3, %v589_v1, %v653_v49  ;;  %v596_v63 = vadd.f32 %v4522_v43, %v553_v33  ;;  %v657_v59 = vmul.f32 0.01, %v593_v40 }
  0xe4   : > { %v688_v29 = vsel %vm624_vm4, %v592_v46, %v656_v48  ;;  %v655_v57 = vmul.f32 0.01, %v591_v38  ;;  %v707_v58 = vpack.c.bf16 %v685_v3, %v683_v14  ;;  %v662_v4 = vmul.f32 0.01, %v598_v62 }
  0xe5   : > { %v4584_v42 = vpop.permute.xlu1 %3084  ;;  %v4586_v13 = vpop.permute.xlu0 %3088  ;;  %v552_v1 = vmul.f32 %v4518_v39, %v4559_v35  ;;  %v660_v49 = vmul.f32 0.01, %v596_v63  ;;  %vm623_vm6 = vcmp.gt.f32.partialorder %v591_v38, 0.0  ;;  %vm625_vm7 = vcmp.gt.f32.partialorder %v593_v40, 0.0 }
  0xe6   : > { %vm628_vm8 = vcmp.gt.f32.partialorder %v596_v63, 0.0  ;;  %vm630_vm9 = vcmp.gt.f32.partialorder %v598_v62, 0.0  ;;  %v687_v33 = vsel %vm623_vm6, %v591_v38, %v655_v57 }
  0xe7   : > { %v595_v48 = vadd.f32 %v4526_v45, %v552_v1  ;;  %v692_v3 = vsel %vm628_vm8, %v596_v63, %v660_v49 }
  0xe8   : > { %982 = vmatmul.mubr.bf16.gmra.mrb[12].mxu0 %v705_v44  ;;  %v554_v44 = vmul.f32 %v4518_v39, %v4557_v26  ;;  %v557_v26 = vmul.f32 %v4512_v37, %v4569_v55 }
  0xe9   : > { %v4597_v51 = vpop.permute.xlu1 %3086  ;;  %v3093_v54 = vpop.permute.xlu0 %3092  ;;  %991 = vmatprep.mubr.bf16.mxu0 %v708_v5  ;;  %v659_v57 = vmul.f32 0.01, %v595_v48  ;;  %vm627_vm10 = vcmp.gt.f32.partialorder %v595_v48, 0.0 }
  0xea   : > { %v4602_v22 = vmul.f32 %v3093_v54, %v4593_v41  ;;  %v690_v54 = vsel %vm626_vm5, %v594_v47, %v658_v18  ;;  %v559_v47 = vmul.f32 %v4512_v37, %v4567_v17  ;;  %v597_v0 = vadd.f32 %v4526_v45, %v554_v44 }
  0xeb   : > { %v710_v46 = vpack.c.bf16 %v690_v54, %v688_v29  ;;  %v689_v37 = vsel %vm625_vm7, %v593_v40, %v657_v59  ;;  %v600_v14 = vadd.f32 %v4522_v43, %v557_v26  ;;  %v694_v29 = vsel %vm630_vm9, %v598_v62, %v662_v4  ;;  %v4653_v62 = vld [vmem:[#allocation5] ss:$0 sm:$0xff] }
  0xec   : > { %v661_v54 = vmul.f32 0.01, %v597_v0  ;;  %v556_v40 = vmul.f32 %v4518_v39, %v4569_v55  ;;  %v712_v38 = vpack.c.bf16 %v694_v29, %v692_v3  ;;  %vm629_vm11 = vcmp.gt.f32.partialorder %v597_v0, 0.0 }
  0xed   : > { %v4609_v2 = vpop.permute.xlu1 %3090  ;;  %v3097_v25 = vpop.permute.xlu0 %3096  ;;  %v664_v59 = vmul.f32 0.01, %v600_v14  ;;  %vm632_vm12 = vcmp.gt.f32.partialorder %v600_v14, 0.0  ;;  %v691_v49 = vsel %vm627_vm10, %v595_v48, %v659_v57 }
  0xee   : > { %v4613_v52 = vmul.f32 %v3097_v25, %v4593_v41  ;;  %v693_v26 = vsel %vm629_vm11, %v597_v0, %v661_v54  ;;  %v3129_v0 = vmul.f32 %v4576_v12, %v4593_v41  ;;  %v3887_v12 = vld [vmem:[#allocation7 + $0x160] ss:$8 sps:$4 sm:$0xff]  }
  0xef   : > { %v696_v3 = vsel %vm632_vm12, %v600_v14, %v664_v59 }
  0xf0   : > { %992 = vmatmul.mubr.bf16.gmra.mrb[16].mxu0 %v707_v58  ;;  %v602_v58 = vadd.f32 %v4522_v43, %v559_v47  ;;  %v3128_v43 = vmul.f32 %v4574_v21, %v4593_v41  ;;  %v599_v21 = vadd.f32 %v4526_v45, %v556_v40 }
  0xf1   : > { %v3095_v5 = vpop.permute.xlu1 %3094  ;;  %v3101_v60 = vpop.permute.xlu0 %3100  ;;  %1001 = vmatprep.mubr.bf16.mxu0 %v710_v46  ;;  %v558_v46 = vmul.f32 %v4518_v39, %v4567_v17 }
  0xf2   : > { %v4620_v61 = vmul.f32 %v3095_v5, %v4593_v41  ;;  %v4623_v25 = vmul.f32 %v3101_v60, %v4593_v41  ;;  %v666_v63 = vmul.f32 0.01, %v602_v58  ;;  %vm634_vm13 = vcmp.gt.f32.partialorder %v602_v58, 0.0 }
  0xf3   : > { %v601_v55 = vadd.f32 %v4526_v45, %v558_v46  ;;  %v3882_v46 = vld [vmem:[#allocation7 + $0x154] ss:$8 sps:$4 sm:$0xff]   ;;  %v663_v48 = vmul.f32 0.01, %v599_v21  ;;  %vm631_vm14 = vcmp.gt.f32.partialorder %v599_v21, 0.0 }
  0xf4   : > { %v698_v29 = vsel %vm634_vm13, %v602_v58, %v666_v63  ;;  %v3132_v58 = vmul.f32 %v4586_v13, %v4593_v41  ;;  %1360 = vmatprep.subr.bf16.mxu1 %v3882_v46  ;;  %v3885_v63 = vld [vmem:[#allocation7 + $0x164] ss:$8 sps:$4 sm:$0xff]   ;;  %v3131_v13 = vmul.f32 %v4597_v51, %v4593_v41 }
  0xf5   : > { %v3099_v60 = vpop.permute.xlu1 %3098  ;;  %v3105_v18 = vpop.permute.xlu0 %3104  ;;  %v665_v45 = vmul.f32 0.01, %v601_v55  ;;  %vm633_vm15 = vcmp.gt.f32.partialorder %v601_v55, 0.0  ;;  %v695_v59 = vsel %vm631_vm14, %v599_v21, %v663_v48  ;;  %v3891_v48 = vld [vmem:[#allocation7 + $0x184] ss:$8 sps:$4 sm:$0xff]  }
  0xf6   : > { %v4633_v35 = vmul.f32 %v3099_v60, %v4593_v41  ;;  %v4636_v30 = vmul.f32 %v3105_v18, %v4593_v41  ;;  %v709_v60 = vpack.c.bf16 %v689_v37, %v687_v33  ;;  %v3130_v33 = vmul.f32 %v4584_v42, %v4593_v41 }
  0xf7   : > { %v714_v42 = vpack.c.bf16 %v698_v29, %v696_v3 }
  0xf8   : > { %1002 = vmatmul.mubr.bf16.gmra.mrb[20].mxu0 %v709_v60  ;;  %v711_v60 = vpack.c.bf16 %v693_v26, %v691_v49 }
  0xf9   : > { %v3103_v44 = vpop.permute.xlu1 %3102  ;;  %v3109_v5 = vpop.permute.xlu0 %3108  ;;  %1011 = vmatprep.mubr.bf16.mxu0 %v712_v38 }
  0xfa   : > { %v4644_v18 = vmul.f32 %v3103_v44, %v4593_v41  ;;  %v4647_v1 = vmul.f32 %v3109_v5, %v4593_v41 }
  0xfd   : > { %v3107_v17 = vpop.permute.xlu1 %3106  ;;  %v3167_v4 = vpop.permute.xlu0 %3166 }
  0xfe   : > { %v4656_v47 = vmul.f32 %v3107_v17, %v4593_v41  ;;  %v3214_v39 = vmul.f32 %v4653_v62, %v3167_v4  ;;  %v3884_v4 = vld [vmem:[#allocation7 + $0x150] ss:$8 sps:$4 sm:$0xff]  }
  0xff   : > { %1361 = vmatpush1.bf16.msra.mxu1 %v3884_v4 }
 0x100   : > { %v3230_v37 = vadd.f32 %v3214_v39, %v3128_v43  ;;  %1012 = vmatmul.mubr.bf16.gmra.mrb[24].mxu0 %v711_v60  ;;  %v697_v39 = vsel %vm633_vm15, %v601_v55, %v665_v45  ;;  %1362 = vmatprep.subr.bf16.mxu1 %v3885_v63  ;;  %v3890_v60 = vld [vmem:[#allocation7 + $0x170] ss:$8 sps:$4 sm:$0xff]   ;;  %v3133_v55 = vmul.f32 %v4609_v2, %v4593_v41 }
 0x101   : > { %v3111_v44 = vpop.permute.xlu1 %3110  ;;  %v3171_v5 = vpop.permute.xlu0 %3170  ;;  %1021 = vmatprep.mubr.bf16.mxu0 %v714_v42  ;;  %v713_v3 = vpack.c.bf16 %v697_v39, %v695_v59  ;;  %v3899_v59 = vld [vmem:[#allocation7 + $0x1a0] ss:$8 sps:$4 sm:$0xff]  }
 0x102   : > { %v4664_v38 = vmul.f32 %v3111_v44, %v4593_v41  ;;  %v3216_v17 = vmul.f32 %v4653_v62, %v3171_v5  ;;  %3252 = vperm.xlu0 %3817, %v3230_v37   ;;  %v3888_v5 = vld [vmem:[#allocation7 + $0x174] ss:$8 sps:$4 sm:$0xff]  }
 0x103   : > { %1363 = vmatpush1.bf16.msra.mxu1 %v3887_v12 }
 0x104   : > { %v3232_v14 = vadd.f32 %v3216_v17, %v3130_v33  ;;  %1364 = vmatprep.subr.bf16.mxu1 %v3888_v5 }
 0x105   : > { %v3169_v54 = vpop.permute.xlu1 %3168  ;;  %v3175_v57 = vpop.permute.xlu0 %3174 }
 0x106   : > { %v3215_v40 = vmul.f32 %v4653_v62, %v3169_v54  ;;  %v3218_v43 = vmul.f32 %v4653_v62, %v3175_v57  ;;  %3262 = vperm.xlu0 %3817, %v3232_v14   ;;  %v3894_v54 = vld [vmem:[#allocation7 + $0x194] ss:$8 sps:$4 sm:$0xff]   ;;  %v3896_v57 = vld [vmem:[#allocation7 + $0x190] ss:$8 sps:$4 sm:$0xff]  }
 0x107   : > { %1365 = vmatpush1.bf16.msra.mxu1 %v3890_v60 }
 0x108   : > { %v3231_v49 = vadd.f32 %v3215_v40, %v3129_v0  ;;  %v3234_v26 = vadd.f32 %v3218_v43, %v3132_v58  ;;  %1022 = vmatmul.mubr.bf16.gmra.mrb[28].mxu0 %v713_v3  ;;  %v3893_v0 = vld [vmem:[#allocation7 + $0x180] ss:$8 sps:$4 sm:$0xff]   ;;  %1366 = vmatprep.subr.bf16.mxu1 %v3891_v48  ;;  %v3897_v40 = vld [vmem:[#allocation7 + $0x1a4] ss:$8 sps:$4 sm:$0xff]  }
 0x109   : > { %v3173_v33 = vpop.permute.xlu1 %3172  ;;  %v3179_v37 = vpop.permute.xlu0 %3178  ;;  %v3911_v48 = vld [vmem:[#allocation7 + $0x1e0] ss:$8 sps:$4 sm:$0xff]  }
 0x10a   : > { %v3217_v29 = vmul.f32 %v4653_v62, %v3173_v33  ;;  %3257 = vperm.xlu1 %3818, %v3231_v49   ;;  %3272 = vperm.xlu0 %3817, %v3234_v26   ;;  %v3220_v44 = vmul.f32 %v4653_v62, %v3179_v37  ;;  %v3900_v49 = vld [vmem:[#allocation7 + $0x1b4] ss:$8 sps:$4 sm:$0xff]   ;;  %v3902_v37 = vld [vmem:[#allocation7 + $0x1b0] ss:$8 sps:$4 sm:$0xff]  }
 0x10b   : > { %1367 = vmatpush1.bf16.msra.mxu1 %v3893_v0  ;;  %v3912_v0 = vld [vmem:[#allocation7 + $0x1f4] ss:$8 sps:$4 sm:$0xff]  }
 0x10c   : > { %v3233_v51 = vadd.f32 %v3217_v29, %v3131_v13  ;;  %v4680_v21 = vadd.f32 %v3220_v44, %v4602_v22  ;;  %1368 = vmatprep.subr.bf16.mxu1 %v3894_v54  ;;  %v3903_v44 = vld [vmem:[#allocation7 + $0x1c4] ss:$8 sps:$4 sm:$0xff]   ;;  %v3924_v54 = vld [vmem:[#allocation7 + $0x230] ss:$8 sps:$4 sm:$0xff]  }
 0x10d   : > { %v3177_v17 = vpop.permute.xlu1 %3176  ;;  %v3183_v46 = vpop.permute.xlu0 %3182 }
 0x10e   : > { %v3219_v4 = vmul.f32 %v4653_v62, %v3177_v17  ;;  %3267 = vperm.xlu1 %3818, %v3233_v51   ;;  %v3222_v45 = vmul.f32 %v4653_v62, %v3183_v46 }
 0x10f   : > { %1369 = vmatpush1.bf16.msra.mxu1 %v3896_v57  ;;  %v3929_v57 = vld [vmem:[#allocation7 + $0x244] ss:$8 sps:$4 sm:$0xff]  }
 0x110   : > { %v3235_v42 = vadd.f32 %v3219_v4, %v3133_v55  ;;  %v4685_v58 = vadd.f32 %v3222_v45, %v4613_v52  ;;  %1370 = vmatprep.subr.bf16.mxu1 %v3897_v40  ;;  %v3908_v45 = vld [vmem:[#allocation7 + $0x1d0] ss:$8 sps:$4 sm:$0xff]   ;;  %v3927_v40 = vld [vmem:[#allocation7 + $0x240] ss:$8 sps:$4 sm:$0xff]  }
 0x111   : > { %v3181_v41 = vpop.permute.xlu1 %3180  ;;  %v3187_v2 = vpop.permute.xlu0 %3186 }
 0x112   : > { %3277 = vperm.xlu1 %3818, %v3235_v42   ;;  %v3221_v22 = vmul.f32 %v4653_v62, %v3181_v41  ;;  %v3224_v14 = vmul.f32 %v4653_v62, %v3187_v2  ;;  %v3914_v42 = vld [vmem:[#allocation7 + $0x1f0] ss:$8 sps:$4 sm:$0xff]   ;;  %v3917_v41 = vld [vmem:[#allocation7 + $0x204] ss:$8 sps:$4 sm:$0xff]   ;;  %v3920_v2 = vld [vmem:[#allocation7 + $0x214] ss:$8 sps:$4 sm:$0xff]  }
 0x113   : > { %1371 = vmatpush1.bf16.msra.mxu1 %v3899_v59  ;;  %1781 = vmatprep.subr.bf16.mxu0 %v3917_v41  ;;  %v3935_v59 = vld [vmem:[#allocation7 + $0x264] ss:$8 sps:$4 sm:$0xff]  }
 0x114   : > { %v4690_v43 = vadd.f32 %v3221_v22, %v4620_v61  ;;  %v4693_v63 = vadd.f32 %v3224_v14, %v4623_v25  ;;  %1372 = vmatprep.subr.bf16.mxu1 %v3900_v49  ;;  %v3921_v22 = vld [vmem:[#allocation7 + $0x220] ss:$8 sps:$4 sm:$0xff]   ;;  %v3926_v14 = vld [vmem:[#allocation7 + $0x234] ss:$8 sps:$4 sm:$0xff]   ;;  %v3936_v49 = vld [vmem:[#allocation7 + $0x270] ss:$8 sps:$4 sm:$0xff]  }
 0x115   : > { %v3185_v52 = vpop.permute.xlu1 %3184  ;;  %v3191_v12 = vpop.permute.xlu0 %3190 }
 0x116   : > { %v3223_v39 = vmul.f32 %v4653_v62, %v3185_v52  ;;  %v3226_v13 = vmul.f32 %v4653_v62, %v3191_v12  ;;  %v3932_v52 = vld [vmem:[#allocation7 + $0x254] ss:$8 sps:$4 sm:$0xff]   ;;  %v3930_v12 = vld [vmem:[#allocation7 + $0x250] ss:$8 sps:$4 sm:$0xff]  }
 0x117   : > { %1373 = vmatpush1.bf16.msra.mxu1 %v3902_v37  ;;  %v3944_v37 = vld [vmem:[#allocation7 + $0x294] ss:$8 sps:$4 sm:$0xff]  }
 0x118   : > { %v4698_v26 = vadd.f32 %v3223_v39, %v4633_v35  ;;  %v4701_v61 = vadd.f32 %v3226_v13, %v4636_v30  ;;  %v3905_v30 = vld [vmem:[#allocation7 + $0x1c0] ss:$8 sps:$4 sm:$0xff]   ;;  %1374 = vmatprep.subr.bf16.mxu1 %v3903_v44  ;;  %v3938_v13 = vld [vmem:[#allocation7 + $0x274] ss:$8 sps:$4 sm:$0xff]  }
 0x119   : > { %v3189_v33 = vpop.permute.xlu1 %3188  ;;  %v3195_v25 = vpop.permute.xlu0 %3194  ;;  %v3933_v39 = vld [vmem:[#allocation7 + $0x260] ss:$8 sps:$4 sm:$0xff]  }
 0x11a   : > { %v3225_v3 = vmul.f32 %v4653_v62, %v3189_v33  ;;  %v3228_v29 = vmul.f32 %v4653_v62, %v3195_v25  ;;  %v3941_v33 = vld [vmem:[#allocation7 + $0x284] ss:$8 sps:$4 sm:$0xff]   ;;  %v3939_v25 = vld [vmem:[#allocation7 + $0x280] ss:$8 sps:$4 sm:$0xff]  }
 0x11b   : > { %1375 = vmatpush1.bf16.msra.mxu1 %v3905_v30  ;;  %v3945_v44 = vld [vmem:[#allocation7 + $0x2a0] ss:$8 sps:$4 sm:$0xff]   ;;  %v3948_v30 = vld [vmem:[#allocation7 + $0x2b0] ss:$8 sps:$4 sm:$0xff]  }
 0x11c   : > { %v4706_v5 = vadd.f32 %v3225_v3, %v4644_v18  ;;  %v4709_v60 = vadd.f32 %v3228_v29, %v4647_v1  ;;  %v3906_v18 = vld [vmem:[#allocation7 + $0x1d4] ss:$8 sps:$4 sm:$0xff]   ;;  %v3909_v1 = vld [vmem:[#allocation7 + $0x1e4] ss:$8 sps:$4 sm:$0xff]   ;;  %v3942_v3 = vld [vmem:[#allocation7 + $0x290] ss:$8 sps:$4 sm:$0xff]  }
 0x11d   : > { %v3193_v35 = vpop.permute.xlu1 %3192  ;;  %1376 = vmatprep.subr.bf16.mxu1 %v3906_v18  ;;  %v3947_v29 = vld [vmem:[#allocation7 + $0x2a4] ss:$8 sps:$4 sm:$0xff]   ;;  %v3954_v18 = vld [vmem:[#allocation7 + $0x2d0] ss:$8 sps:$4 sm:$0xff]  }
 0x11e   : > { %v3227_v55 = vmul.f32 %v4653_v62, %v3193_v35  ;;  %v3950_v35 = vld [vmem:[#allocation7 + $0x2b4] ss:$8 sps:$4 sm:$0xff]  }
 0x11f   : > { %1377 = vmatpush1.bf16.msra.mxu1 %v3908_v45  ;;  %v747_v45 = vld [vmem:[%s5348_s8] ss:$8 sm:$0x3] }
 0x120   : > { %v4713_v51 = vadd.f32 %v3227_v55, %v4656_v47  ;;  %1378 = vmatprep.subr.bf16.mxu1 %v3909_v1  ;;  %v3915_v47 = vld [vmem:[#allocation7 + $0x200] ss:$8 sps:$4 sm:$0xff]   ;;  %v3953_v55 = vld [vmem:[#allocation7 + $0x2c4] ss:$8 sps:$4 sm:$0xff]   ;;  %v4723_v1 = vrot.slane %v747_v45, %v4509_v36 }
 0x121   : > { %v3197_v17 = vpop.permute.xlu1 %3196  ;;  %1782 = vmatpush1.bf16.msra.mxu0 %v3915_v47 }
 0x122   : > { %v3229_v46 = vmul.f32 %v4653_v62, %v3197_v17  ;;  %v3918_v62 = vld [vmem:[#allocation7 + $0x210] ss:$8 sps:$4 sm:$0xff]   ;;  %1783 = vmatprep.subr.bf16.mxu0 %v3920_v2  ;;  %v3951_v17 = vld [vmem:[#allocation7 + $0x2c0] ss:$8 sps:$4 sm:$0xff]  }
 0x123   : > { %1379 = vmatpush1.bf16.msra.mxu1 %v3911_v48  ;;  %v4726_v48 = vrot.slane %v747_v45, %v4504_v34 }
 0x124   : > { %v4717_v4 = vadd.f32 %v3229_v46, %v4664_v38  ;;  %1380 = vmatprep.subr.bf16.mxu1 %v3912_v0  ;;  %v3923_v38 = vld [vmem:[#allocation7 + $0x224] ss:$8 sps:$4 sm:$0xff]   ;;  %v3956_v46 = vld [vmem:[#allocation7 + $0x2d4] ss:$8 sps:$4 sm:$0xff]  }
 0x125   : > { %1784 = vmatpush1.bf16.msra.mxu0 %v3918_v62 }
 0x126   : > { %1785 = vmatprep.subr.bf16.mxu0 %v3923_v38 }
 0x127   : > { %1381 = vmatpush1.bf16.msra.mxu1 %v3914_v42 }
 0x129   : > { %1786 = vmatpush1.bf16.msra.mxu0 %v3921_v22 }
 0x12a   : > { %1787 = vmatprep.subr.bf16.mxu0 %v3926_v14 }
 0x12d   : > { %1788 = vmatpush1.bf16.msra.mxu0 %v3924_v54 }
 0x12e   : > { %1789 = vmatprep.subr.bf16.mxu0 %v3929_v57 }
 0x131   : > { %1790 = vmatpush1.bf16.msra.mxu0 %v3927_v40 }
 0x132   : > { %1791 = vmatprep.subr.bf16.mxu0 %v3932_v52 }
 0x135   : > { %1792 = vmatpush1.bf16.msra.mxu0 %v3930_v12 }
 0x136   : > { %1793 = vmatprep.subr.bf16.mxu0 %v3935_v59 }
 0x139   : > { %1794 = vmatpush1.bf16.msra.mxu0 %v3933_v39 }
 0x13a   : > { %1795 = vmatprep.subr.bf16.mxu0 %v3938_v13 }
 0x13d   : > { %1796 = vmatpush1.bf16.msra.mxu0 %v3936_v49 }
 0x13e   : > { %1797 = vmatprep.subr.bf16.mxu0 %v3941_v33 }
 0x141   : > { %1798 = vmatpush1.bf16.msra.mxu0 %v3939_v25 }
 0x142   : > { %1799 = vmatprep.subr.bf16.mxu0 %v3944_v37 }
 0x145   : > { %1800 = vmatpush1.bf16.msra.mxu0 %v3942_v3 }
 0x146   : > { %1801 = vmatprep.subr.bf16.mxu0 %v3947_v29 }
 0x149   : > { %1802 = vmatpush1.bf16.msra.mxu0 %v3945_v44 }
 0x14a   : > { %1803 = vmatprep.subr.bf16.mxu0 %v3950_v35 }
 0x14d   : > { %1804 = vmatpush1.bf16.msra.mxu0 %v3948_v30 }
 0x14e   : > { %1805 = vmatprep.subr.bf16.mxu0 %v3953_v55 }
 0x151   : > { %1806 = vmatpush1.bf16.msra.mxu0 %v3951_v17 }
 0x152   : > { %1807 = vmatprep.subr.bf16.mxu0 %v3956_v46 }
 0x155   : > { %1808 = vmatpush1.bf16.msra.mxu0 %v3954_v18 }
 0x1a3   : > { %v953_v0 = vpop.f32.mrb[0].mxu0 }
 0x1a4   : > { %v954_v42 = vadd.f32 %v953_v0, %v4723_v1  ;;  %v955_v47 = vpop.f32.mrb[1].mxu0 }
 0x1a5   : > { %v956_v41 = vadd.f32 %v955_v47, %v4726_v48  ;;  %v957_v2 = vpop.f32.mrb[2].mxu0 }
 0x1a6   : > { %v1064_v62 = vmul.f32 0.01, %v954_v42  ;;  %v958_v38 = vadd.f32 %v957_v2, %v4723_v1  ;;  %v959_v22 = vpop.f32.mrb[3].mxu0  ;;  %vm1032_vm0 = vcmp.gt.f32.partialorder %v954_v42, 0.0 }
 0x1a7   : > { %v1065_v14 = vmul.f32 0.01, %v956_v41  ;;  %v960_v54 = vadd.f32 %v959_v22, %v4726_v48  ;;  %vm1033_vm2 = vcmp.gt.f32.partialorder %v956_v41, 0.0 }
 0x1a8   : > { %vm1034_vm1 = vcmp.gt.f32.partialorder %v958_v38, 0.0  ;;  %v1066_v57 = vmul.f32 0.01, %v958_v38  ;;  %v1096_v52 = vsel %vm1032_vm0, %v954_v42, %v1064_v62 }
 0x1a9   : > { %v1067_v40 = vmul.f32 0.01, %v960_v54  ;;  %vm1035_vm3 = vcmp.gt.f32.partialorder %v960_v54, 0.0  ;;  %v1097_v39 = vsel %vm1033_vm2, %v956_v41, %v1065_v14 }
 0x1aa   : > { %v1098_v12 = vsel %vm1034_vm1, %v958_v38, %v1066_v57 }
 0x1ab   : > { %v963_v59 = vpop.f32.mrb[4].mxu0  ;;  %v1099_v13 = vsel %vm1035_vm3, %v960_v54, %v1067_v40  ;;  %v1128_v49 = vpack.c.bf16 %v1098_v12, %v1096_v52 }
 0x1ac   : > { %v964_v33 = vadd.f32 %v963_v59, %v4723_v1  ;;  %v965_v25 = vpop.f32.mrb[5].mxu0  ;;  %v1129_v37 = vpack.c.bf16 %v1099_v13, %v1097_v39 }
 0x1ad   : > { %v966_v3 = vadd.f32 %v965_v25, %v4726_v48  ;;  %v967_v29 = vpop.f32.mrb[6].mxu0 }
 0x1ae   : > { %v1068_v44 = vmul.f32 0.01, %v964_v33  ;;  %v968_v35 = vadd.f32 %v967_v29, %v4723_v1  ;;  %v969_v30 = vpop.f32.mrb[7].mxu0  ;;  %1382 = vmatprep.mubr.bf16.mxu1 %v1129_v37  ;;  %vm1036_vm4 = vcmp.gt.f32.partialorder %v964_v33, 0.0 }
 0x1af   : > { %v1069_v55 = vmul.f32 0.01, %v966_v3  ;;  %v970_v17 = vadd.f32 %v969_v30, %v4726_v48  ;;  %1383 = vmatmul.mubr.bf16.vlgmr.msra.gmra.mrb[0].mxu1 %v1128_v49  ;;  %vm1037_vm5 = vcmp.gt.f32.partialorder %v966_v3, 0.0 }
 0x1b0   : > { %vm1038_vm6 = vcmp.gt.f32.partialorder %v968_v35, 0.0  ;;  %v1070_v46 = vmul.f32 0.01, %v968_v35  ;;  %v1100_v45 = vsel %vm1036_vm4, %v964_v33, %v1068_v44 }
 0x1b1   : > { %vm1039_vm7 = vcmp.gt.f32.partialorder %v970_v17, 0.0  ;;  %v1071_v18 = vmul.f32 0.01, %v970_v17  ;;  %v1101_v47 = vsel %vm1037_vm5, %v966_v3, %v1069_v55 }
 0x1b2   : > { %v1102_v0 = vsel %vm1038_vm6, %v968_v35, %v1070_v46 }
 0x1b3   : > { %v973_v42 = vpop.f32.mrb[8].mxu0  ;;  %v1103_v41 = vsel %vm1039_vm7, %v970_v17, %v1071_v18  ;;  %v1130_v2 = vpack.c.bf16 %v1102_v0, %v1100_v45 }
 0x1b4   : > { %v974_v62 = vadd.f32 %v973_v42, %v4723_v1  ;;  %v975_v38 = vpop.f32.mrb[9].mxu0  ;;  %v1131_v22 = vpack.c.bf16 %v1103_v41, %v1101_v47 }
 0x1b5   : > { %v976_v14 = vadd.f32 %v975_v38, %v4726_v48  ;;  %v977_v54 = vpop.f32.mrb[10].mxu0 }
 0x1b6   : > { %v1072_v57 = vmul.f32 0.01, %v974_v62  ;;  %v978_v40 = vadd.f32 %v977_v54, %v4723_v1  ;;  %v979_v52 = vpop.f32.mrb[11].mxu0  ;;  %1392 = vmatprep.mubr.bf16.mxu1 %v1131_v22  ;;  %vm1040_vm8 = vcmp.gt.f32.partialorder %v974_v62, 0.0 }
 0x1b7   : > { %v1073_v12 = vmul.f32 0.01, %v976_v14  ;;  %v980_v59 = vadd.f32 %v979_v52, %v4726_v48  ;;  %1393 = vmatmul.mubr.bf16.gmra.mrb[4].mxu1 %v1130_v2  ;;  %vm1041_vm9 = vcmp.gt.f32.partialorder %v976_v14, 0.0 }
 0x1b8   : > { %vm1042_vm10 = vcmp.gt.f32.partialorder %v978_v40, 0.0  ;;  %v1074_v39 = vmul.f32 0.01, %v978_v40  ;;  %v1104_v49 = vsel %vm1040_vm8, %v974_v62, %v1072_v57 }
 0x1b9   : > { %vm1043_vm11 = vcmp.gt.f32.partialorder %v980_v59, 0.0  ;;  %v1075_v13 = vmul.f32 0.01, %v980_v59  ;;  %v1105_v37 = vsel %vm1041_vm9, %v976_v14, %v1073_v12 }
 0x1ba   : > { %v1106_v33 = vsel %vm1042_vm10, %v978_v40, %v1074_v39 }
 0x1bb   : > { %v983_v25 = vpop.f32.mrb[12].mxu0  ;;  %v1107_v3 = vsel %vm1043_vm11, %v980_v59, %v1075_v13  ;;  %v1132_v29 = vpack.c.bf16 %v1106_v33, %v1104_v49 }
 0x1bc   : > { %v984_v44 = vadd.f32 %v983_v25, %v4723_v1  ;;  %v985_v35 = vpop.f32.mrb[13].mxu0  ;;  %v1133_v30 = vpack.c.bf16 %v1107_v3, %v1105_v37 }
 0x1bd   : > { %v986_v55 = vadd.f32 %v985_v35, %v4726_v48  ;;  %v987_v17 = vpop.f32.mrb[14].mxu0 }
 0x1be   : > { %v1076_v46 = vmul.f32 0.01, %v984_v44  ;;  %v988_v18 = vadd.f32 %v987_v17, %v4723_v1  ;;  %v989_v45 = vpop.f32.mrb[15].mxu0  ;;  %1402 = vmatprep.mubr.bf16.mxu1 %v1133_v30  ;;  %vm1044_vm12 = vcmp.gt.f32.partialorder %v984_v44, 0.0 }
 0x1bf   : > { %v1077_v0 = vmul.f32 0.01, %v986_v55  ;;  %v990_v42 = vadd.f32 %v989_v45, %v4726_v48  ;;  %1403 = vmatmul.mubr.bf16.gmra.mrb[8].mxu1 %v1132_v29  ;;  %vm1045_vm13 = vcmp.gt.f32.partialorder %v986_v55, 0.0 }
 0x1c0   : > { %vm1046_vm14 = vcmp.gt.f32.partialorder %v988_v18, 0.0  ;;  %v1078_v47 = vmul.f32 0.01, %v988_v18  ;;  %v1108_v2 = vsel %vm1044_vm12, %v984_v44, %v1076_v46 }
 0x1c1   : > { %vm1047_vm15 = vcmp.gt.f32.partialorder %v990_v42, 0.0  ;;  %v1079_v41 = vmul.f32 0.01, %v990_v42  ;;  %v1109_v22 = vsel %vm1045_vm13, %v986_v55, %v1077_v0 }
 0x1c2   : > { %v1110_v62 = vsel %vm1046_vm14, %v988_v18, %v1078_v47 }
 0x1c3   : > { %v993_v38 = vpop.f32.mrb[16].mxu0  ;;  %v1111_v14 = vsel %vm1047_vm15, %v990_v42, %v1079_v41  ;;  %v1134_v54 = vpack.c.bf16 %v1110_v62, %v1108_v2 }
 0x1c4   : > { %v994_v57 = vadd.f32 %v993_v38, %v4723_v1  ;;  %v995_v40 = vpop.f32.mrb[17].mxu0  ;;  %v1135_v52 = vpack.c.bf16 %v1111_v14, %v1109_v22 }
 0x1c5   : > { %v996_v12 = vadd.f32 %v995_v40, %v4726_v48  ;;  %v997_v59 = vpop.f32.mrb[18].mxu0 }
 0x1c6   : > { %v1080_v39 = vmul.f32 0.01, %v994_v57  ;;  %v998_v13 = vadd.f32 %v997_v59, %v4723_v1  ;;  %v999_v49 = vpop.f32.mrb[19].mxu0  ;;  %1412 = vmatprep.mubr.bf16.mxu1 %v1135_v52  ;;  %vm1048_vm0 = vcmp.gt.f32.partialorder %v994_v57, 0.0 }
 0x1c7   : > { %v1081_v33 = vmul.f32 0.01, %v996_v12  ;;  %v1000_v25 = vadd.f32 %v999_v49, %v4726_v48  ;;  %1413 = vmatmul.mubr.bf16.gmra.mrb[12].mxu1 %v1134_v54  ;;  %vm1049_vm1 = vcmp.gt.f32.partialorder %v996_v12, 0.0 }
 0x1c8   : > { %vm1050_vm2 = vcmp.gt.f32.partialorder %v998_v13, 0.0  ;;  %v1082_v37 = vmul.f32 0.01, %v998_v13  ;;  %v1112_v29 = vsel %vm1048_vm0, %v994_v57, %v1080_v39 }
 0x1c9   : > { %vm1051_vm3 = vcmp.gt.f32.partialorder %v1000_v25, 0.0  ;;  %v1083_v3 = vmul.f32 0.01, %v1000_v25  ;;  %v1113_v30 = vsel %vm1049_vm1, %v996_v12, %v1081_v33 }
 0x1ca   : > { %v1114_v44 = vsel %vm1050_vm2, %v998_v13, %v1082_v37 }
 0x1cb   : > { %v1003_v35 = vpop.f32.mrb[20].mxu0  ;;  %v1115_v55 = vsel %vm1051_vm3, %v1000_v25, %v1083_v3  ;;  %v1136_v17 = vpack.c.bf16 %v1114_v44, %v1112_v29 }
 0x1cc   : > { %v1004_v46 = vadd.f32 %v1003_v35, %v4723_v1  ;;  %v1005_v18 = vpop.f32.mrb[21].mxu0  ;;  %v1137_v45 = vpack.c.bf16 %v1115_v55, %v1113_v30 }
 0x1cd   : > { %v1006_v0 = vadd.f32 %v1005_v18, %v4726_v48  ;;  %v1007_v42 = vpop.f32.mrb[22].mxu0 }
 0x1ce   : > { %v1084_v47 = vmul.f32 0.01, %v1004_v46  ;;  %v1008_v41 = vadd.f32 %v1007_v42, %v4723_v1  ;;  %v1009_v2 = vpop.f32.mrb[23].mxu0  ;;  %1422 = vmatprep.mubr.bf16.mxu1 %v1137_v45  ;;  %vm1052_vm4 = vcmp.gt.f32.partialorder %v1004_v46, 0.0 }
 0x1cf   : > { %v1085_v62 = vmul.f32 0.01, %v1006_v0  ;;  %v1010_v38 = vadd.f32 %v1009_v2, %v4726_v48  ;;  %1423 = vmatmul.mubr.bf16.gmra.mrb[16].mxu1 %v1136_v17  ;;  %vm1053_vm5 = vcmp.gt.f32.partialorder %v1006_v0, 0.0 }
 0x1d0   : > { %vm1054_vm6 = vcmp.gt.f32.partialorder %v1008_v41, 0.0  ;;  %v1086_v22 = vmul.f32 0.01, %v1008_v41  ;;  %v1116_v54 = vsel %vm1052_vm4, %v1004_v46, %v1084_v47 }
 0x1d1   : > { %vm1055_vm7 = vcmp.gt.f32.partialorder %v1010_v38, 0.0  ;;  %v1087_v14 = vmul.f32 0.01, %v1010_v38  ;;  %v1117_v52 = vsel %vm1053_vm5, %v1006_v0, %v1085_v62 }
 0x1d2   : > { %v1118_v57 = vsel %vm1054_vm6, %v1008_v41, %v1086_v22 }
 0x1d3   : > { %v1013_v40 = vpop.f32.mrb[24].mxu0  ;;  %v1119_v12 = vsel %vm1055_vm7, %v1010_v38, %v1087_v14  ;;  %v1138_v59 = vpack.c.bf16 %v1118_v57, %v1116_v54 }
 0x1d4   : > { %v1014_v39 = vadd.f32 %v1013_v40, %v4723_v1  ;;  %v1015_v13 = vpop.f32.mrb[25].mxu0  ;;  %v1139_v49 = vpack.c.bf16 %v1119_v12, %v1117_v52 }
 0x1d5   : > { %v1016_v33 = vadd.f32 %v1015_v13, %v4726_v48  ;;  %v1017_v25 = vpop.f32.mrb[26].mxu0 }
 0x1d6   : > { %v1088_v37 = vmul.f32 0.01, %v1014_v39  ;;  %v1018_v3 = vadd.f32 %v1017_v25, %v4723_v1  ;;  %v1019_v29 = vpop.f32.mrb[27].mxu0  ;;  %1432 = vmatprep.mubr.bf16.mxu1 %v1139_v49  ;;  %vm1056_vm8 = vcmp.gt.f32.partialorder %v1014_v39, 0.0 }
 0x1d7   : > { %v1089_v44 = vmul.f32 0.01, %v1016_v33  ;;  %v1020_v35 = vadd.f32 %v1019_v29, %v4726_v48  ;;  %1433 = vmatmul.mubr.bf16.gmra.mrb[20].mxu1 %v1138_v59  ;;  %vm1057_vm9 = vcmp.gt.f32.partialorder %v1016_v33, 0.0  ;;  %v3963_v29 = vld [vmem:[#allocation7 + $0x300] ss:$8 sps:$4 sm:$0xff]  }
 0x1d8   : > { %vm1058_vm10 = vcmp.gt.f32.partialorder %v1018_v3, 0.0  ;;  %v1090_v30 = vmul.f32 0.01, %v1018_v3  ;;  %v1120_v17 = vsel %vm1056_vm8, %v1014_v39, %v1088_v37  ;;  %v3959_v37 = vld [vmem:[#allocation7 + $0x2e4] ss:$8 sps:$4 sm:$0xff]  }
 0x1d9   : > { %vm1059_vm11 = vcmp.gt.f32.partialorder %v1020_v35, 0.0  ;;  %v1091_v55 = vmul.f32 0.01, %v1020_v35  ;;  %v1121_v45 = vsel %vm1057_vm9, %v1016_v33, %v1089_v44  ;;  %1809 = vmatprep.subr.bf16.mxu0 %v3959_v37  ;;  %v3965_v44 = vld [vmem:[#allocation7 + $0x304] ss:$8 sps:$4 sm:$0xff]  }
 0x1da   : > { %v1122_v46 = vsel %vm1058_vm10, %v1018_v3, %v1090_v30  ;;  %v3962_v3 = vld [vmem:[#allocation7 + $0x2f4] ss:$8 sps:$4 sm:$0xff]   ;;  %2212 = vmatprep.subr.bf16.mxu1 %v3965_v44  ;;  %v3966_v30 = vld [vmem:[#allocation7 + $0x310] ss:$8 sps:$4 sm:$0xff]  }
 0x1db   : > { %v1023_v18 = vpop.f32.mrb[28].mxu0  ;;  %v1123_v0 = vsel %vm1059_vm11, %v1020_v35, %v1091_v55  ;;  %v1140_v42 = vpack.c.bf16 %v1122_v46, %v1120_v17  ;;  %v3968_v35 = vld [vmem:[#allocation7 + $0x314] ss:$8 sps:$4 sm:$0xff]   ;;  %2213 = vmatpush1.bf16.msra.mxu1 %v3963_v29  ;;  %v3971_v55 = vld [vmem:[#allocation7 + $0x324] ss:$8 sps:$4 sm:$0xff]  }
 0x1dc   : > { %v1024_v47 = vadd.f32 %v1023_v18, %v4723_v1  ;;  %v1025_v41 = vpop.f32.mrb[29].mxu0  ;;  %v1141_v2 = vpack.c.bf16 %v1123_v0, %v1121_v45  ;;  %2214 = vmatprep.subr.bf16.mxu1 %v3968_v35  ;;  %v3969_v17 = vld [vmem:[#allocation7 + $0x320] ss:$8 sps:$4 sm:$0xff]   ;;  %v3974_v46 = vld [vmem:[#allocation7 + $0x334] ss:$8 sps:$4 sm:$0xff]  }
 0x1dd   : > { %v1026_v62 = vadd.f32 %v1025_v41, %v4726_v48  ;;  %v1027_v38 = vpop.f32.mrb[30].mxu0  ;;  %v3972_v18 = vld [vmem:[#allocation7 + $0x330] ss:$8 sps:$4 sm:$0xff]   ;;  %v3977_v45 = vld [vmem:[#allocation7 + $0x344] ss:$8 sps:$4 sm:$0xff]  }
 0x1de   : > { %v1092_v22 = vmul.f32 0.01, %v1024_v47  ;;  %v1028_v14 = vadd.f32 %v1027_v38, %v4723_v1  ;;  %v1029_v54 = vpop.f32.mrb[31].mxu0  ;;  %1442 = vmatprep.mubr.bf16.mxu1 %v1141_v2  ;;  %vm1060_vm12 = vcmp.gt.f32.partialorder %v1024_v47, 0.0  ;;  %v3957_v1 = vld [vmem:[#allocation7 + $0x2e0] ss:$8 sps:$4 sm:$0xff]  }
 0x1df   : > { %v1093_v57 = vmul.f32 0.01, %v1026_v62  ;;  %v1030_v40 = vadd.f32 %v1029_v54, %v4726_v48  ;;  %1443 = vmatmul.mubr.bf16.gmra.mrb[24].mxu1 %v1140_v42  ;;  %vm1061_vm13 = vcmp.gt.f32.partialorder %v1026_v62, 0.0  ;;  %1810 = vmatpush1.bf16.msra.mxu0 %v3957_v1  ;;  %v3960_v48 = vld [vmem:[#allocation7 + $0x2f0] ss:$8 sps:$4 sm:$0xff]  }
 0x1e0   : > { %vm1062_vm14 = vcmp.gt.f32.partialorder %v1028_v14, 0.0  ;;  %v1094_v52 = vmul.f32 0.01, %v1028_v14  ;;  %v1124_v59 = vsel %vm1060_vm12, %v1024_v47, %v1092_v22  ;;  %1811 = vmatprep.subr.bf16.mxu0 %v3962_v3  ;;  %2215 = vmatpush1.bf16.msra.mxu1 %v3966_v30  ;;  %v3975_v0 = vld [vmem:[#allocation7 + $0x340] ss:$8 sps:$4 sm:$0xff]  }
 0x1e1   : > { %vm1063_vm15 = vcmp.gt.f32.partialorder %v1030_v40, 0.0  ;;  %v1095_v12 = vmul.f32 0.01, %v1030_v40  ;;  %v1125_v13 = vsel %vm1061_vm13, %v1026_v62, %v1093_v57  ;;  %2216 = vmatprep.subr.bf16.mxu1 %v3971_v55  ;;  %v3980_v42 = vld [vmem:[#allocation7 + $0x354] ss:$8 sps:$4 sm:$0xff]  }
 0x1e2   : > { %v1126_v39 = vsel %vm1062_vm14, %v1028_v14, %v1094_v52  ;;  %v3978_v47 = vld [vmem:[#allocation7 + $0x350] ss:$8 sps:$4 sm:$0xff]   ;;  %v3983_v41 = vld [vmem:[#allocation7 + $0x364] ss:$8 sps:$4 sm:$0xff]   ;;  %v3981_v2 = vld [vmem:[#allocation7 + $0x360] ss:$8 sps:$4 sm:$0xff]  }
 0x1e3   : > { %v1127_v49 = vsel %vm1063_vm15, %v1030_v40, %v1095_v12  ;;  %v1142_v33 = vpack.c.bf16 %v1126_v39, %v1124_v59  ;;  %1812 = vmatpush1.bf16.msra.mxu0 %v3960_v48  ;;  %v3986_v62 = vld [vmem:[#allocation7 + $0x374] ss:$8 sps:$4 sm:$0xff]   ;;  %v3984_v38 = vld [vmem:[#allocation7 + $0x370] ss:$8 sps:$4 sm:$0xff]   ;;  %v3989_v22 = vld [vmem:[#allocation7 + $0x384] ss:$8 sps:$4 sm:$0xff]  }
 0x1e4   : > { %v1143_v25 = vpack.c.bf16 %v1127_v49, %v1125_v13  ;;  %2217 = vmatpush1.bf16.msra.mxu1 %v3969_v17  ;;  %v3987_v14 = vld [vmem:[#allocation7 + $0x380] ss:$8 sps:$4 sm:$0xff]   ;;  %v3992_v54 = vld [vmem:[#allocation7 + $0x394] ss:$8 sps:$4 sm:$0xff]   ;;  %v3990_v57 = vld [vmem:[#allocation7 + $0x390] ss:$8 sps:$4 sm:$0xff]  }
 0x1e5   : > { %2218 = vmatprep.subr.bf16.mxu1 %v3974_v46  ;;  %v3995_v40 = vld [vmem:[#allocation7 + $0x3a4] ss:$8 sps:$4 sm:$0xff]   ;;  %v3993_v52 = vld [vmem:[#allocation7 + $0x3a0] ss:$8 sps:$4 sm:$0xff]   ;;  %v3998_v12 = vld [vmem:[#allocation7 + $0x3b4] ss:$8 sps:$4 sm:$0xff]  }
 0x1e6   : > { %1452 = vmatprep.mubr.bf16.mxu1 %v1143_v25  ;;  %v3996_v59 = vld [vmem:[#allocation7 + $0x3b0] ss:$8 sps:$4 sm:$0xff]   ;;  %v4001_v39 = vld [vmem:[#allocation7 + $0x3c4] ss:$8 sps:$4 sm:$0xff]   ;;  %v3999_v13 = vld [vmem:[#allocation7 + $0x3c0] ss:$8 sps:$4 sm:$0xff]  }
 0x1e7   : > { %1453 = vmatmul.mubr.bf16.gmra.mrb[28].mxu1 %v1142_v33  ;;  %v4004_v49 = vld [vmem:[#allocation7 + $0x3d4] ss:$8 sps:$4 sm:$0xff]   ;;  %v4002_v33 = vld [vmem:[#allocation7 + $0x3d0] ss:$8 sps:$4 sm:$0xff]  }
 0x1e8   : > { %2219 = vmatpush1.bf16.msra.mxu1 %v3972_v18  ;;  %v3587_v25 = vld [vmem:[%s5348_s8 + $0x1] ss:$8 sm:$0x3] }
 0x1e9   : > { %2220 = vmatprep.subr.bf16.mxu1 %v3977_v45  ;;  %v4764_v1 = vrot.slane %v3587_v25, %v4509_v36  ;;  %v4767_v37 = vrot.slane %v3587_v25, %v4504_v34 }
 0x1ec   : > { %2221 = vmatpush1.bf16.msra.mxu1 %v3975_v0 }
 0x1ed   : > { %2222 = vmatprep.subr.bf16.mxu1 %v3980_v42 }
 0x1f0   : > { %2223 = vmatpush1.bf16.msra.mxu1 %v3978_v47 }
 0x1f1   : > { %2224 = vmatprep.subr.bf16.mxu1 %v3983_v41 }
 0x1f4   : > { %2225 = vmatpush1.bf16.msra.mxu1 %v3981_v2 }
 0x1f5   : > { %2226 = vmatprep.subr.bf16.mxu1 %v3986_v62 }
 0x1f8   : > { %2227 = vmatpush1.bf16.msra.mxu1 %v3984_v38 }
 0x1f9   : > { %2228 = vmatprep.subr.bf16.mxu1 %v3989_v22 }
 0x1fc   : > { %2229 = vmatpush1.bf16.msra.mxu1 %v3987_v14 }
 0x1fd   : > { %2230 = vmatprep.subr.bf16.mxu1 %v3992_v54 }
 0x200   : > { %2231 = vmatpush1.bf16.msra.mxu1 %v3990_v57 }
 0x201   : > { %2232 = vmatprep.subr.bf16.mxu1 %v3995_v40 }
 0x204   : > { %2233 = vmatpush1.bf16.msra.mxu1 %v3993_v52 }
 0x205   : > { %2234 = vmatprep.subr.bf16.mxu1 %v3998_v12 }
 0x208   : > { %2235 = vmatpush1.bf16.msra.mxu1 %v3996_v59 }
 0x209   : > { %2236 = vmatprep.subr.bf16.mxu1 %v4001_v39 }
 0x20c   : > { %2237 = vmatpush1.bf16.msra.mxu1 %v3999_v13 }
 0x20d   : > { %2238 = vmatprep.subr.bf16.mxu1 %v4004_v49 }
 0x210   : > { %2239 = vmatpush1.bf16.msra.mxu1 %v4002_v33 }
 0x282   : > { %v1384_v3 = vpop.f32.mrb[0].mxu1 }
 0x283   : > { %v1385_v48 = vadd.f32 %v1384_v3, %v4764_v1  ;;  %v1386_v29 = vpop.f32.mrb[1].mxu1 }
 0x284   : > { %v1387_v44 = vadd.f32 %v1386_v29, %v4767_v37  ;;  %v1388_v35 = vpop.f32.mrb[2].mxu1 }
 0x285   : > { %v1495_v30 = vmul.f32 0.01, %v1385_v48  ;;  %v1389_v55 = vadd.f32 %v1388_v35, %v4764_v1  ;;  %v1390_v17 = vpop.f32.mrb[3].mxu1  ;;  %vm1463_vm0 = vcmp.gt.f32.partialorder %v1385_v48, 0.0 }
 0x286   : > { %v1496_v46 = vmul.f32 0.01, %v1387_v44  ;;  %v1391_v18 = vadd.f32 %v1390_v17, %v4767_v37  ;;  %vm1464_vm1 = vcmp.gt.f32.partialorder %v1387_v44, 0.0 }
 0x287   : > { %vm1465_vm2 = vcmp.gt.f32.partialorder %v1389_v55, 0.0  ;;  %v1497_v45 = vmul.f32 0.01, %v1389_v55  ;;  %v1527_v42 = vsel %vm1463_vm0, %v1385_v48, %v1495_v30 }
 0x288   : > { %vm1466_vm3 = vcmp.gt.f32.partialorder %v1391_v18, 0.0  ;;  %v1498_v0 = vmul.f32 0.01, %v1391_v18  ;;  %v1528_v62 = vsel %vm1464_vm1, %v1387_v44, %v1496_v46 }
 0x289   : > { %v1529_v47 = vsel %vm1465_vm2, %v1389_v55, %v1497_v45 }
 0x28a   : > { %v1559_v41 = vpack.c.bf16 %v1529_v47, %v1527_v42  ;;  %v1394_v2 = vpop.f32.mrb[4].mxu1  ;;  %v1530_v38 = vsel %vm1466_vm3, %v1391_v18, %v1498_v0 }
 0x28b   : > { %v1395_v22 = vadd.f32 %v1394_v2, %v4764_v1  ;;  %v1396_v14 = vpop.f32.mrb[5].mxu1  ;;  %v1560_v54 = vpack.c.bf16 %v1530_v38, %v1528_v62 }
 0x28c   : > { %v1397_v57 = vadd.f32 %v1396_v14, %v4767_v37  ;;  %v1398_v40 = vpop.f32.mrb[6].mxu1 }
 0x28d   : > { %v1499_v52 = vmul.f32 0.01, %v1395_v22  ;;  %v1399_v12 = vadd.f32 %v1398_v40, %v4764_v1  ;;  %v1400_v59 = vpop.f32.mrb[7].mxu1  ;;  %1813 = vmatprep.mubr.bf16.mxu0 %v1560_v54  ;;  %vm1467_vm4 = vcmp.gt.f32.partialorder %v1395_v22, 0.0 }
 0x28e   : > { %v1500_v39 = vmul.f32 0.01, %v1397_v57  ;;  %v1401_v13 = vadd.f32 %v1400_v59, %v4767_v37  ;;  %1814 = vmatmul.mubr.bf16.vlgmr.msra.gmra.mrb[32].mxu0 %v1559_v41  ;;  %vm1468_vm5 = vcmp.gt.f32.partialorder %v1397_v57, 0.0 }
 0x28f   : > { %vm1469_vm6 = vcmp.gt.f32.partialorder %v1399_v12, 0.0  ;;  %v1501_v49 = vmul.f32 0.01, %v1399_v12  ;;  %v1531_v25 = vsel %vm1467_vm4, %v1395_v22, %v1499_v52 }
 0x290   : > { %vm1470_vm7 = vcmp.gt.f32.partialorder %v1401_v13, 0.0  ;;  %v1502_v33 = vmul.f32 0.01, %v1401_v13  ;;  %v1532_v29 = vsel %vm1468_vm5, %v1397_v57, %v1500_v39 }
 0x291   : > { %v1533_v3 = vsel %vm1469_vm6, %v1399_v12, %v1501_v49 }
 0x292   : > { %v1404_v48 = vpop.f32.mrb[8].mxu1  ;;  %v1534_v44 = vsel %vm1470_vm7, %v1401_v13, %v1502_v33  ;;  %v1561_v35 = vpack.c.bf16 %v1533_v3, %v1531_v25 }
 0x293   : > { %v1405_v30 = vadd.f32 %v1404_v48, %v4764_v1  ;;  %v1406_v55 = vpop.f32.mrb[9].mxu1  ;;  %v1562_v17 = vpack.c.bf16 %v1534_v44, %v1532_v29 }
 0x294   : > { %v1407_v46 = vadd.f32 %v1406_v55, %v4767_v37  ;;  %v1408_v18 = vpop.f32.mrb[10].mxu1 }
 0x295   : > { %v1503_v45 = vmul.f32 0.01, %v1405_v30  ;;  %v1409_v0 = vadd.f32 %v1408_v18, %v4764_v1  ;;  %v1410_v42 = vpop.f32.mrb[11].mxu1  ;;  %1823 = vmatprep.mubr.bf16.mxu0 %v1562_v17  ;;  %vm1471_vm8 = vcmp.gt.f32.partialorder %v1405_v30, 0.0 }
 0x296   : > { %v1504_v47 = vmul.f32 0.01, %v1407_v46  ;;  %v1411_v41 = vadd.f32 %v1410_v42, %v4767_v37  ;;  %1824 = vmatmul.mubr.bf16.gmra.mrb[36].mxu0 %v1561_v35  ;;  %vm1472_vm9 = vcmp.gt.f32.partialorder %v1407_v46, 0.0 }
 0x297   : > { %vm1473_vm10 = vcmp.gt.f32.partialorder %v1409_v0, 0.0  ;;  %v1505_v2 = vmul.f32 0.01, %v1409_v0  ;;  %v1535_v38 = vsel %vm1471_vm8, %v1405_v30, %v1503_v45 }
 0x298   : > { %vm1474_vm11 = vcmp.gt.f32.partialorder %v1411_v41, 0.0  ;;  %v1506_v62 = vmul.f32 0.01, %v1411_v41  ;;  %v1536_v54 = vsel %vm1472_vm9, %v1407_v46, %v1504_v47 }
 0x299   : > { %v1537_v22 = vsel %vm1473_vm10, %v1409_v0, %v1505_v2 }
 0x29a   : > { %v1414_v14 = vpop.f32.mrb[12].mxu1  ;;  %v1538_v57 = vsel %vm1474_vm11, %v1411_v41, %v1506_v62  ;;  %v1563_v40 = vpack.c.bf16 %v1537_v22, %v1535_v38 }
 0x29b   : > { %v1415_v52 = vadd.f32 %v1414_v14, %v4764_v1  ;;  %v1416_v12 = vpop.f32.mrb[13].mxu1  ;;  %v1564_v59 = vpack.c.bf16 %v1538_v57, %v1536_v54 }
 0x29c   : > { %v1417_v39 = vadd.f32 %v1416_v12, %v4767_v37  ;;  %v1418_v13 = vpop.f32.mrb[14].mxu1 }
 0x29d   : > { %v1507_v49 = vmul.f32 0.01, %v1415_v52  ;;  %v1419_v33 = vadd.f32 %v1418_v13, %v4764_v1  ;;  %v1420_v25 = vpop.f32.mrb[15].mxu1  ;;  %1833 = vmatprep.mubr.bf16.mxu0 %v1564_v59  ;;  %vm1475_vm12 = vcmp.gt.f32.partialorder %v1415_v52, 0.0 }
 0x29e   : > { %v1508_v3 = vmul.f32 0.01, %v1417_v39  ;;  %v1421_v48 = vadd.f32 %v1420_v25, %v4767_v37  ;;  %1834 = vmatmul.mubr.bf16.gmra.mrb[40].mxu0 %v1563_v40  ;;  %vm1476_vm13 = vcmp.gt.f32.partialorder %v1417_v39, 0.0 }
 0x29f   : > { %vm1477_vm14 = vcmp.gt.f32.partialorder %v1419_v33, 0.0  ;;  %v1509_v29 = vmul.f32 0.01, %v1419_v33  ;;  %v1539_v35 = vsel %vm1475_vm12, %v1415_v52, %v1507_v49 }
 0x2a0   : > { %vm1478_vm15 = vcmp.gt.f32.partialorder %v1421_v48, 0.0  ;;  %v1510_v44 = vmul.f32 0.01, %v1421_v48  ;;  %v1540_v17 = vsel %vm1476_vm13, %v1417_v39, %v1508_v3 }
 0x2a1   : > { %v1541_v30 = vsel %vm1477_vm14, %v1419_v33, %v1509_v29 }
 0x2a2   : > { %v1424_v55 = vpop.f32.mrb[16].mxu1  ;;  %v1542_v46 = vsel %vm1478_vm15, %v1421_v48, %v1510_v44  ;;  %v1565_v18 = vpack.c.bf16 %v1541_v30, %v1539_v35 }
 0x2a3   : > { %v1425_v45 = vadd.f32 %v1424_v55, %v4764_v1  ;;  %v1426_v0 = vpop.f32.mrb[17].mxu1  ;;  %v1566_v42 = vpack.c.bf16 %v1542_v46, %v1540_v17 }
 0x2a4   : > { %v1427_v47 = vadd.f32 %v1426_v0, %v4767_v37  ;;  %v1428_v41 = vpop.f32.mrb[18].mxu1 }
 0x2a5   : > { %v1511_v2 = vmul.f32 0.01, %v1425_v45  ;;  %v1429_v62 = vadd.f32 %v1428_v41, %v4764_v1  ;;  %v1430_v38 = vpop.f32.mrb[19].mxu1  ;;  %1843 = vmatprep.mubr.bf16.mxu0 %v1566_v42  ;;  %vm1479_vm0 = vcmp.gt.f32.partialorder %v1425_v45, 0.0 }
 0x2a6   : > { %v1512_v22 = vmul.f32 0.01, %v1427_v47  ;;  %v1431_v14 = vadd.f32 %v1430_v38, %v4767_v37  ;;  %1844 = vmatmul.mubr.bf16.gmra.mrb[44].mxu0 %v1565_v18  ;;  %vm1480_vm1 = vcmp.gt.f32.partialorder %v1427_v47, 0.0 }
 0x2a7   : > { %vm1481_vm2 = vcmp.gt.f32.partialorder %v1429_v62, 0.0  ;;  %v1513_v54 = vmul.f32 0.01, %v1429_v62  ;;  %v1543_v40 = vsel %vm1479_vm0, %v1425_v45, %v1511_v2 }
 0x2a8   : > { %vm1482_vm3 = vcmp.gt.f32.partialorder %v1431_v14, 0.0  ;;  %v1514_v57 = vmul.f32 0.01, %v1431_v14  ;;  %v1544_v59 = vsel %vm1480_vm1, %v1427_v47, %v1512_v22 }
 0x2a9   : > { %v1545_v52 = vsel %vm1481_vm2, %v1429_v62, %v1513_v54 }
 0x2aa   : > { %v1434_v12 = vpop.f32.mrb[20].mxu1  ;;  %v1546_v39 = vsel %vm1482_vm3, %v1431_v14, %v1514_v57  ;;  %v1567_v13 = vpack.c.bf16 %v1545_v52, %v1543_v40 }
 0x2ab   : > { %v1435_v49 = vadd.f32 %v1434_v12, %v4764_v1  ;;  %v1436_v33 = vpop.f32.mrb[21].mxu1  ;;  %v1568_v25 = vpack.c.bf16 %v1546_v39, %v1544_v59 }
 0x2ac   : > { %v1437_v3 = vadd.f32 %v1436_v33, %v4767_v37  ;;  %v1438_v48 = vpop.f32.mrb[22].mxu1 }
 0x2ad   : > { %v1515_v29 = vmul.f32 0.01, %v1435_v49  ;;  %v1439_v44 = vadd.f32 %v1438_v48, %v4764_v1  ;;  %v1440_v35 = vpop.f32.mrb[23].mxu1  ;;  %1853 = vmatprep.mubr.bf16.mxu0 %v1568_v25  ;;  %vm1483_vm4 = vcmp.gt.f32.partialorder %v1435_v49, 0.0 }
 0x2ae   : > { %v1516_v30 = vmul.f32 0.01, %v1437_v3  ;;  %v1441_v55 = vadd.f32 %v1440_v35, %v4767_v37  ;;  %1854 = vmatmul.mubr.bf16.gmra.mrb[48].mxu0 %v1567_v13  ;;  %vm1484_vm5 = vcmp.gt.f32.partialorder %v1437_v3, 0.0 }
 0x2af   : > { %vm1485_vm6 = vcmp.gt.f32.partialorder %v1439_v44, 0.0  ;;  %v1517_v17 = vmul.f32 0.01, %v1439_v44  ;;  %v1547_v18 = vsel %vm1483_vm4, %v1435_v49, %v1515_v29 }
 0x2b0   : > { %vm1486_vm7 = vcmp.gt.f32.partialorder %v1441_v55, 0.0  ;;  %v1518_v46 = vmul.f32 0.01, %v1441_v55  ;;  %v1548_v42 = vsel %vm1484_vm5, %v1437_v3, %v1516_v30 }
 0x2b1   : > { %v1549_v45 = vsel %vm1485_vm6, %v1439_v44, %v1517_v17 }
 0x2b2   : > { %v1444_v0 = vpop.f32.mrb[24].mxu1  ;;  %v1550_v47 = vsel %vm1486_vm7, %v1441_v55, %v1518_v46  ;;  %v1569_v41 = vpack.c.bf16 %v1549_v45, %v1547_v18 }
 0x2b3   : > { %v1445_v2 = vadd.f32 %v1444_v0, %v4764_v1  ;;  %v1446_v62 = vpop.f32.mrb[25].mxu1  ;;  %v1570_v38 = vpack.c.bf16 %v1550_v47, %v1548_v42 }
 0x2b4   : > { %v1447_v22 = vadd.f32 %v1446_v62, %v4767_v37  ;;  %v1448_v14 = vpop.f32.mrb[26].mxu1 }
 0x2b5   : > { %v1519_v54 = vmul.f32 0.01, %v1445_v2  ;;  %v1449_v57 = vadd.f32 %v1448_v14, %v4764_v1  ;;  %v1450_v40 = vpop.f32.mrb[27].mxu1  ;;  %1863 = vmatprep.mubr.bf16.mxu0 %v1570_v38  ;;  %vm1487_vm8 = vcmp.gt.f32.partialorder %v1445_v2, 0.0 }
 0x2b6   : > { %v1520_v52 = vmul.f32 0.01, %v1447_v22  ;;  %v1451_v12 = vadd.f32 %v1450_v40, %v4767_v37  ;;  %1864 = vmatmul.mubr.bf16.gmra.mrb[52].mxu0 %v1569_v41  ;;  %vm1488_vm9 = vcmp.gt.f32.partialorder %v1447_v22, 0.0  ;;  %v4801_v40 = vld [vmem:[#allocation7 + $0x400] ss:$8 sps:$4 sm:$0xff]  }
 0x2b7   : > { %vm1489_vm10 = vcmp.gt.f32.partialorder %v1449_v57, 0.0  ;;  %v1521_v59 = vmul.f32 0.01, %v1449_v57  ;;  %v1551_v13 = vsel %vm1487_vm8, %v1445_v2, %v1519_v54  ;;  %v4007_v54 = vld [vmem:[#allocation7 + $0x3e4] ss:$8 sps:$4 sm:$0xff]  }
 0x2b8   : > { %vm1490_vm11 = vcmp.gt.f32.partialorder %v1451_v12, 0.0  ;;  %v1522_v39 = vmul.f32 0.01, %v1451_v12  ;;  %v1552_v25 = vsel %vm1488_vm9, %v1447_v22, %v1520_v52  ;;  %2240 = vmatprep.subr.bf16.mxu1 %v4007_v54  ;;  %v4013_v52 = vld [vmem:[#allocation7 + $0x404] ss:$8 sps:$4 sm:$0xff]  }
 0x2b9   : > { %v1553_v49 = vsel %vm1489_vm10, %v1449_v57, %v1521_v59  ;;  %v4010_v57 = vld [vmem:[#allocation7 + $0x3f4] ss:$8 sps:$4 sm:$0xff]   ;;  %2643 = vmatprep.subr.bf16.mxu0 %v4013_v52  ;;  %v4806_v59 = vld [vmem:[#allocation7 + $0x410] ss:$8 sps:$4 sm:$0xff]  }
 0x2ba   : > { %v1454_v33 = vpop.f32.mrb[28].mxu1  ;;  %v1554_v3 = vsel %vm1490_vm11, %v1451_v12, %v1522_v39  ;;  %v1571_v48 = vpack.c.bf16 %v1553_v49, %v1551_v13  ;;  %v4803_v12 = vld [vmem:[#allocation7 + $0x414] ss:$8 sps:$4 sm:$0xff]   ;;  %2644 = vmatpush1.bf16.msra.mxu0 %v4801_v40  ;;  %v4809_v39 = vld [vmem:[#allocation7 + $0x424] ss:$8 sps:$4 sm:$0xff]  }
 0x2bb   : > { %v1455_v29 = vadd.f32 %v1454_v33, %v4764_v1  ;;  %v1456_v44 = vpop.f32.mrb[29].mxu1  ;;  %v1572_v35 = vpack.c.bf16 %v1554_v3, %v1552_v25  ;;  %2645 = vmatprep.subr.bf16.mxu0 %v4803_v12  ;;  %v4812_v13 = vld [vmem:[#allocation7 + $0x420] ss:$8 sps:$4 sm:$0xff]   ;;  %v4815_v49 = vld [vmem:[#allocation7 + $0x434] ss:$8 sps:$4 sm:$0xff]  }
 0x2bc   : > { %v1457_v30 = vadd.f32 %v1456_v44, %v4767_v37  ;;  %v1458_v55 = vpop.f32.mrb[30].mxu1  ;;  %v4818_v33 = vld [vmem:[#allocation7 + $0x430] ss:$8 sps:$4 sm:$0xff]   ;;  %v4821_v25 = vld [vmem:[#allocation7 + $0x444] ss:$8 sps:$4 sm:$0xff]  }
 0x2bd   : > { %v1523_v17 = vmul.f32 0.01, %v1455_v29  ;;  %v1459_v46 = vadd.f32 %v1458_v55, %v4764_v1  ;;  %v1460_v18 = vpop.f32.mrb[31].mxu1  ;;  %1873 = vmatprep.mubr.bf16.mxu0 %v1572_v35  ;;  %vm1491_vm12 = vcmp.gt.f32.partialorder %v1455_v29, 0.0  ;;  %v4005_v1 = vld [vmem:[#allocation7 + $0x3e0] ss:$8 sps:$4 sm:$0xff]  }
 0x2be   : > { %v1524_v45 = vmul.f32 0.01, %v1457_v30  ;;  %v1461_v0 = vadd.f32 %v1460_v18, %v4767_v37  ;;  %1874 = vmatmul.mubr.bf16.gmra.mrb[56].mxu0 %v1571_v48  ;;  %vm1492_vm13 = vcmp.gt.f32.partialorder %v1457_v30, 0.0  ;;  %2241 = vmatpush1.bf16.msra.mxu1 %v4005_v1  ;;  %v4008_v37 = vld [vmem:[#allocation7 + $0x3f0] ss:$8 sps:$4 sm:$0xff]  }
 0x2bf   : > { %vm1493_vm14 = vcmp.gt.f32.partialorder %v1459_v46, 0.0  ;;  %v1525_v42 = vmul.f32 0.01, %v1459_v46  ;;  %v1555_v41 = vsel %vm1491_vm12, %v1455_v29, %v1523_v17  ;;  %2242 = vmatprep.subr.bf16.mxu1 %v4010_v57  ;;  %2646 = vmatpush1.bf16.msra.mxu0 %v4806_v59  ;;  %v4824_v3 = vld [vmem:[#allocation7 + $0x440] ss:$8 sps:$4 sm:$0xff]  }
 0x2c0   : > { %vm1494_vm15 = vcmp.gt.f32.partialorder %v1461_v0, 0.0  ;;  %v1526_v47 = vmul.f32 0.01, %v1461_v0  ;;  %v1556_v62 = vsel %vm1492_vm13, %v1457_v30, %v1524_v45  ;;  %2647 = vmatprep.subr.bf16.mxu0 %v4809_v39  ;;  %v4827_v48 = vld [vmem:[#allocation7 + $0x454] ss:$8 sps:$4 sm:$0xff]  }
 0x2c1   : > { %v1557_v2 = vsel %vm1493_vm14, %v1459_v46, %v1525_v42  ;;  %v4830_v29 = vld [vmem:[#allocation7 + $0x450] ss:$8 sps:$4 sm:$0xff]   ;;  %v4833_v44 = vld [vmem:[#allocation7 + $0x464] ss:$8 sps:$4 sm:$0xff]   ;;  %v4836_v35 = vld [vmem:[#allocation7 + $0x460] ss:$8 sps:$4 sm:$0xff]  }
 0x2c2   : > { %v1558_v38 = vsel %vm1494_vm15, %v1461_v0, %v1526_v47  ;;  %v1573_v22 = vpack.c.bf16 %v1557_v2, %v1555_v41  ;;  %2243 = vmatpush1.bf16.msra.mxu1 %v4008_v37  ;;  %v4839_v30 = vld [vmem:[#allocation7 + $0x474] ss:$8 sps:$4 sm:$0xff]   ;;  %v4842_v55 = vld [vmem:[#allocation7 + $0x470] ss:$8 sps:$4 sm:$0xff]   ;;  %v4845_v17 = vld [vmem:[#allocation7 + $0x484] ss:$8 sps:$4 sm:$0xff]  }
 0x2c3   : > { %v1574_v14 = vpack.c.bf16 %v1558_v38, %v1556_v62  ;;  %3729 = vmatprep.subr.bf16.mxu1 %v4013_v52  ;;  %2648 = vmatpush1.bf16.msra.mxu0 %v4812_v13  ;;  %v4848_v46 = vld [vmem:[#allocation7 + $0x480] ss:$8 sps:$4 sm:$0xff]   ;;  %v4851_v18 = vld [vmem:[#allocation7 + $0x494] ss:$8 sps:$4 sm:$0xff]   ;;  %v4854_v45 = vld [vmem:[#allocation7 + $0x490] ss:$8 sps:$4 sm:$0xff]  }
 0x2c4   : > { %2649 = vmatprep.subr.bf16.mxu0 %v4815_v49  ;;  %v4857_v0 = vld [vmem:[#allocation7 + $0x4a4] ss:$8 sps:$4 sm:$0xff]   ;;  %v4860_v42 = vld [vmem:[#allocation7 + $0x4a0] ss:$8 sps:$4 sm:$0xff]   ;;  %v4863_v47 = vld [vmem:[#allocation7 + $0x4b4] ss:$8 sps:$4 sm:$0xff]  }
 0x2c5   : > { %1883 = vmatprep.mubr.bf16.mxu0 %v1574_v14  ;;  %v4866_v41 = vld [vmem:[#allocation7 + $0x4b0] ss:$8 sps:$4 sm:$0xff]   ;;  %v4869_v2 = vld [vmem:[#allocation7 + $0x4c4] ss:$8 sps:$4 sm:$0xff]   ;;  %v4872_v62 = vld [vmem:[#allocation7 + $0x4c0] ss:$8 sps:$4 sm:$0xff]  }
 0x2c6   : > { %1884 = vmatmul.mubr.bf16.gmra.mrb[60].mxu0 %v1573_v22  ;;  %v3620_v38 = vld [vmem:[%s5348_s8 + $0x2] ss:$8 sm:$0x3] }
 0x2c7   : > { %2650 = vmatpush1.bf16.msra.mxu0 %v4818_v33  ;;  %v4880_v22 = vrot.slane %v3620_v38, %v4509_v36  ;;  %v4883_v14 = vrot.slane %v3620_v38, %v4504_v34 }
 0x2c8   : > { %2651 = vmatprep.subr.bf16.mxu0 %v4821_v25 }
 0x2cb   : > { %2652 = vmatpush1.bf16.msra.mxu0 %v4824_v3 }
 0x2cc   : > { %2653 = vmatprep.subr.bf16.mxu0 %v4827_v48 }
 0x2cf   : > { %2654 = vmatpush1.bf16.msra.mxu0 %v4830_v29 }
 0x2d0   : > { %2655 = vmatprep.subr.bf16.mxu0 %v4833_v44 }
 0x2d3   : > { %2656 = vmatpush1.bf16.msra.mxu0 %v4836_v35 }
 0x2d4   : > { %2657 = vmatprep.subr.bf16.mxu0 %v4839_v30 }
 0x2d7   : > { %2658 = vmatpush1.bf16.msra.mxu0 %v4842_v55 }
 0x2d8   : > { %2659 = vmatprep.subr.bf16.mxu0 %v4845_v17 }
 0x2db   : > { %2660 = vmatpush1.bf16.msra.mxu0 %v4848_v46 }
 0x2dc   : > { %2661 = vmatprep.subr.bf16.mxu0 %v4851_v18 }
 0x2df   : > { %2662 = vmatpush1.bf16.msra.mxu0 %v4854_v45 }
 0x2e0   : > { %2663 = vmatprep.subr.bf16.mxu0 %v4857_v0 }
 0x2e3   : > { %2664 = vmatpush1.bf16.msra.mxu0 %v4860_v42 }
 0x2e4   : > { %2665 = vmatprep.subr.bf16.mxu0 %v4863_v47 }
 0x2e7   : > { %2666 = vmatpush1.bf16.msra.mxu0 %v4866_v41 }
 0x2e8   : > { %2667 = vmatprep.subr.bf16.mxu0 %v4869_v2 }
 0x2eb   : > { %2668 = vmatpush1.bf16.msra.mxu0 %v4872_v62 }
 0x361   : > { %v1815_v1 = vpop.f32.mrb[32].mxu0 }
 0x362   : > { %v1816_v54 = vadd.f32 %v1815_v1, %v4880_v22  ;;  %v1817_v57 = vpop.f32.mrb[33].mxu0 }
 0x363   : > { %v1818_v37 = vadd.f32 %v1817_v57, %v4883_v14  ;;  %v1819_v52 = vpop.f32.mrb[34].mxu0 }
 0x364   : > { %v1926_v53 = vmul.f32 0.01, %v1816_v54  ;;  %v1820_v56 = vadd.f32 %v1819_v52, %v4880_v22  ;;  %v1821_v50 = vpop.f32.mrb[35].mxu0  ;;  %vm1894_vm0 = vcmp.gt.f32.partialorder %v1816_v54, 0.0 }
 0x365   : > { %v1927_v31 = vmul.f32 0.01, %v1818_v37  ;;  %v1822_v32 = vadd.f32 %v1821_v50, %v4883_v14  ;;  %vm1895_vm1 = vcmp.gt.f32.partialorder %v1818_v37, 0.0 }
 0x366   : > { %vm1896_vm2 = vcmp.gt.f32.partialorder %v1820_v56, 0.0  ;;  %v1928_v27 = vmul.f32 0.01, %v1820_v56  ;;  %v1958_v28 = vsel %vm1894_vm0, %v1816_v54, %v1926_v53 }
 0x367   : > { %vm1897_vm3 = vcmp.gt.f32.partialorder %v1822_v32, 0.0  ;;  %v1929_v38 = vmul.f32 0.01, %v1822_v32  ;;  %v1959_v19 = vsel %vm1895_vm1, %v1818_v37, %v1927_v31 }
 0x368   : > { %v1960_v23 = vsel %vm1896_vm2, %v1820_v56, %v1928_v27 }
 0x369   : > { %v1990_v1 = vpack.c.bf16 %v1960_v23, %v1958_v28  ;;  %v1825_v24 = vpop.f32.mrb[36].mxu0  ;;  %v1961_v57 = vsel %vm1897_vm3, %v1822_v32, %v1929_v38 }
 0x36a   : > { %v1826_v20 = vadd.f32 %v1825_v24, %v4880_v22  ;;  %v1827_v15 = vpop.f32.mrb[37].mxu0  ;;  %v1991_v52 = vpack.c.bf16 %v1961_v57, %v1959_v19 }
 0x36b   : > { %v1828_v16 = vadd.f32 %v1827_v15, %v4883_v14  ;;  %v1829_v10 = vpop.f32.mrb[38].mxu0 }
 0x36c   : > { %v1930_v11 = vmul.f32 0.01, %v1826_v20  ;;  %v1830_v50 = vadd.f32 %v1829_v10, %v4880_v22  ;;  %v1831_v8 = vpop.f32.mrb[39].mxu0  ;;  %2244 = vmatprep.mubr.bf16.mxu1 %v1991_v52  ;;  %vm1898_vm4 = vcmp.gt.f32.partialorder %v1826_v20, 0.0 }
 0x36d   : > { %v1931_v6 = vmul.f32 0.01, %v1828_v16  ;;  %v1832_v27 = vadd.f32 %v1831_v8, %v4883_v14  ;;  %2245 = vmatmul.mubr.bf16.vlgmr.msra.gmra.mrb[32].mxu1 %v1990_v1  ;;  %vm1899_vm5 = vcmp.gt.f32.partialorder %v1828_v16, 0.0 }
 0x36e   : > { %vm1900_vm6 = vcmp.gt.f32.partialorder %v1830_v50, 0.0  ;;  %v1932_v23 = vmul.f32 0.01, %v1830_v50  ;;  %3745 = vmatpush1.bf16.msra.mxu1 %v4801_v40  ;;  %v1962_v15 = vsel %vm1898_vm4, %v1826_v20, %v1930_v11 }
 0x36f   : > { %vm1901_vm7 = vcmp.gt.f32.partialorder %v1832_v27, 0.0  ;;  %v1933_v19 = vmul.f32 0.01, %v1832_v27  ;;  %3730 = vmatprep.subr.bf16.mxu1 %v4803_v12  ;;  %v1963_v10 = vsel %vm1899_vm5, %v1828_v16, %v1931_v6 }
 0x370   : > { %v1964_v24 = vsel %vm1900_vm6, %v1830_v50, %v1932_v23 }
 0x371   : > { %v1835_v28 = vpop.f32.mrb[40].mxu0  ;;  %v1965_v31 = vsel %vm1901_vm7, %v1832_v27, %v1933_v19  ;;  %v1992_v32 = vpack.c.bf16 %v1964_v24, %v1962_v15 }
 0x372   : > { %v1836_v53 = vadd.f32 %v1835_v28, %v4880_v22  ;;  %v1837_v56 = vpop.f32.mrb[41].mxu0  ;;  %v1993_v8 = vpack.c.bf16 %v1965_v31, %v1963_v10  ;;  %3746 = vmatpush1.bf16.msra.mxu1 %v4806_v59 }
 0x373   : > { %v1838_v54 = vadd.f32 %v1837_v56, %v4883_v14  ;;  %v1839_v37 = vpop.f32.mrb[42].mxu0  ;;  %3731 = vmatprep.subr.bf16.mxu1 %v4809_v39 }
 0x374   : > { %v1934_v40 = vmul.f32 0.01, %v1836_v53  ;;  %v1840_v12 = vadd.f32 %v1839_v37, %v4880_v22  ;;  %v1841_v11 = vpop.f32.mrb[43].mxu0  ;;  %2254 = vmatprep.mubr.bf16.mxu1 %v1993_v8  ;;  %vm1902_vm8 = vcmp.gt.f32.partialorder %v1836_v53, 0.0 }
 0x375   : > { %v1935_v6 = vmul.f32 0.01, %v1838_v54  ;;  %v1842_v16 = vadd.f32 %v1841_v11, %v4883_v14  ;;  %2255 = vmatmul.mubr.bf16.gmra.mrb[36].mxu1 %v1992_v32  ;;  %vm1903_vm9 = vcmp.gt.f32.partialorder %v1838_v54, 0.0 }
 0x376   : > { %vm1904_vm10 = vcmp.gt.f32.partialorder %v1840_v12, 0.0  ;;  %v1936_v20 = vmul.f32 0.01, %v1840_v12  ;;  %3747 = vmatpush1.bf16.msra.mxu1 %v4812_v13  ;;  %v1966_v39 = vsel %vm1902_vm8, %v1836_v53, %v1934_v40 }
 0x377   : > { %vm1905_vm11 = vcmp.gt.f32.partialorder %v1842_v16, 0.0  ;;  %v1937_v59 = vmul.f32 0.01, %v1842_v16  ;;  %3732 = vmatprep.subr.bf16.mxu1 %v4815_v49  ;;  %v1967_v57 = vsel %vm1903_vm9, %v1838_v54, %v1935_v6 }
 0x378   : > { %v1968_v38 = vsel %vm1904_vm10, %v1840_v12, %v1936_v20 }
 0x379   : > { %v1845_v1 = vpop.f32.mrb[44].mxu0  ;;  %v1969_v52 = vsel %vm1905_vm11, %v1842_v16, %v1937_v59  ;;  %v1994_v50 = vpack.c.bf16 %v1968_v38, %v1966_v39 }
 0x37a   : > { %v1846_v27 = vadd.f32 %v1845_v1, %v4880_v22  ;;  %v1847_v23 = vpop.f32.mrb[45].mxu0  ;;  %v1995_v19 = vpack.c.bf16 %v1969_v52, %v1967_v57  ;;  %3748 = vmatpush1.bf16.msra.mxu1 %v4818_v33 }
 0x37b   : > { %v1848_v15 = vadd.f32 %v1847_v23, %v4883_v14  ;;  %v1849_v24 = vpop.f32.mrb[46].mxu0  ;;  %3733 = vmatprep.subr.bf16.mxu1 %v4821_v25 }
 0x37c   : > { %v1938_v13 = vmul.f32 0.01, %v1846_v27  ;;  %v1850_v49 = vadd.f32 %v1849_v24, %v4880_v22  ;;  %v1851_v28 = vpop.f32.mrb[47].mxu0  ;;  %2264 = vmatprep.mubr.bf16.mxu1 %v1995_v19  ;;  %vm1906_vm12 = vcmp.gt.f32.partialorder %v1846_v27, 0.0 }
 0x37d   : > { %v1939_v10 = vmul.f32 0.01, %v1848_v15  ;;  %v1852_v31 = vadd.f32 %v1851_v28, %v4883_v14  ;;  %2265 = vmatmul.mubr.bf16.gmra.mrb[40].mxu1 %v1994_v50  ;;  %vm1907_vm13 = vcmp.gt.f32.partialorder %v1848_v15, 0.0 }
 0x37e   : > { %vm1908_vm14 = vcmp.gt.f32.partialorder %v1850_v49, 0.0  ;;  %v1940_v32 = vmul.f32 0.01, %v1850_v49  ;;  %3749 = vmatpush1.bf16.msra.mxu1 %v4824_v3  ;;  %v1970_v25 = vsel %vm1906_vm12, %v1846_v27, %v1938_v13 }
 0x37f   : > { %vm1909_vm15 = vcmp.gt.f32.partialorder %v1852_v31, 0.0  ;;  %v1941_v33 = vmul.f32 0.01, %v1852_v31  ;;  %3734 = vmatprep.subr.bf16.mxu1 %v4827_v48  ;;  %v1971_v8 = vsel %vm1907_vm13, %v1848_v15, %v1939_v10 }
 0x380   : > { %v1972_v53 = vsel %vm1908_vm14, %v1850_v49, %v1940_v32 }
 0x381   : > { %v1855_v56 = vpop.f32.mrb[48].mxu0  ;;  %v1973_v54 = vsel %vm1909_vm15, %v1852_v31, %v1941_v33  ;;  %v1996_v37 = vpack.c.bf16 %v1972_v53, %v1970_v25 }
 0x382   : > { %v1856_v40 = vadd.f32 %v1855_v56, %v4880_v22  ;;  %v1857_v12 = vpop.f32.mrb[49].mxu0  ;;  %v1997_v11 = vpack.c.bf16 %v1973_v54, %v1971_v8  ;;  %3750 = vmatpush1.bf16.msra.mxu1 %v4830_v29 }
 0x383   : > { %v1858_v6 = vadd.f32 %v1857_v12, %v4883_v14  ;;  %v1859_v16 = vpop.f32.mrb[50].mxu0  ;;  %3735 = vmatprep.subr.bf16.mxu1 %v4833_v44 }
 0x384   : > { %v1942_v3 = vmul.f32 0.01, %v1856_v40  ;;  %v1860_v48 = vadd.f32 %v1859_v16, %v4880_v22  ;;  %v1861_v20 = vpop.f32.mrb[51].mxu0  ;;  %2274 = vmatprep.mubr.bf16.mxu1 %v1997_v11  ;;  %vm1910_vm0 = vcmp.gt.f32.partialorder %v1856_v40, 0.0 }
 0x385   : > { %v1943_v59 = vmul.f32 0.01, %v1858_v6  ;;  %v1862_v39 = vadd.f32 %v1861_v20, %v4883_v14  ;;  %2275 = vmatmul.mubr.bf16.gmra.mrb[44].mxu1 %v1996_v37  ;;  %vm1911_vm1 = vcmp.gt.f32.partialorder %v1858_v6, 0.0 }
 0x386   : > { %vm1912_vm2 = vcmp.gt.f32.partialorder %v1860_v48, 0.0  ;;  %v1944_v38 = vmul.f32 0.01, %v1860_v48  ;;  %3751 = vmatpush1.bf16.msra.mxu1 %v4836_v35  ;;  %v1974_v44 = vsel %vm1910_vm0, %v1856_v40, %v1942_v3 }
 0x387   : > { %vm1913_vm3 = vcmp.gt.f32.partialorder %v1862_v39, 0.0  ;;  %v1945_v29 = vmul.f32 0.01, %v1862_v39  ;;  %3736 = vmatprep.subr.bf16.mxu1 %v4839_v30  ;;  %v1975_v52 = vsel %vm1911_vm1, %v1858_v6, %v1943_v59 }
 0x388   : > { %v1976_v1 = vsel %vm1912_vm2, %v1860_v48, %v1944_v38 }
 0x389   : > { %v1865_v57 = vpop.f32.mrb[52].mxu0  ;;  %v1977_v50 = vsel %vm1913_vm3, %v1862_v39, %v1945_v29  ;;  %v1998_v27 = vpack.c.bf16 %v1976_v1, %v1974_v44 }
 0x38a   : > { %v1866_v23 = vadd.f32 %v1865_v57, %v4880_v22  ;;  %v1867_v19 = vpop.f32.mrb[53].mxu0  ;;  %v1999_v15 = vpack.c.bf16 %v1977_v50, %v1975_v52  ;;  %3752 = vmatpush1.bf16.msra.mxu1 %v4842_v55 }
 0x38b   : > { %v1868_v24 = vadd.f32 %v1867_v19, %v4883_v14  ;;  %v1869_v13 = vpop.f32.mrb[54].mxu0  ;;  %3737 = vmatprep.subr.bf16.mxu1 %v4845_v17 }
 0x38c   : > { %v1946_v35 = vmul.f32 0.01, %v1866_v23  ;;  %v1870_v30 = vadd.f32 %v1869_v13, %v4880_v22  ;;  %v1871_v49 = vpop.f32.mrb[55].mxu0  ;;  %2284 = vmatprep.mubr.bf16.mxu1 %v1999_v15  ;;  %vm1914_vm4 = vcmp.gt.f32.partialorder %v1866_v23, 0.0 }
 0x38d   : > { %v1947_v28 = vmul.f32 0.01, %v1868_v24  ;;  %v1872_v10 = vadd.f32 %v1871_v49, %v4883_v14  ;;  %2285 = vmatmul.mubr.bf16.gmra.mrb[48].mxu1 %v1998_v27  ;;  %vm1915_vm5 = vcmp.gt.f32.partialorder %v1868_v24, 0.0  ;;  %v4052_v49 = vld [vmem:[#allocation7 + $0x4d4] ss:$8 sps:$4 sm:$0xff]  }
 0x38e   : > { %vm1916_vm6 = vcmp.gt.f32.partialorder %v1870_v30, 0.0  ;;  %v1948_v31 = vmul.f32 0.01, %v1870_v30  ;;  %3753 = vmatpush1.bf16.msra.mxu1 %v4848_v46  ;;  %v1978_v17 = vsel %vm1914_vm4, %v1866_v23, %v1946_v35  ;;  %2669 = vmatprep.subr.bf16.mxu0 %v4052_v49 }
 0x38f   : > { %vm1917_vm7 = vcmp.gt.f32.partialorder %v1872_v10, 0.0  ;;  %v1949_v55 = vmul.f32 0.01, %v1872_v10  ;;  %3738 = vmatprep.subr.bf16.mxu1 %v4851_v18  ;;  %v1979_v25 = vsel %vm1915_vm5, %v1868_v24, %v1947_v28  ;;  %v4055_v28 = vld [vmem:[#allocation7 + $0x4e4] ss:$8 sps:$4 sm:$0xff]  }
 0x390   : > { %v1980_v32 = vsel %vm1916_vm6, %v1870_v30, %v1948_v31  ;;  %v4050_v30 = vld [vmem:[#allocation7 + $0x4d0] ss:$8 sps:$4 sm:$0xff]   ;;  %v3653_v31 = vld [vmem:[%s5348_s8 + $0x3] ss:$8 sm:$0x3] }
 0x391   : > { %v1875_v33 = vpop.f32.mrb[56].mxu0  ;;  %v1981_v53 = vsel %vm1917_vm7, %v1872_v10, %v1949_v55  ;;  %v2000_v56 = vpack.c.bf16 %v1980_v32, %v1978_v17  ;;  %2670 = vmatpush1.bf16.msra.mxu0 %v4050_v30  ;;  %v4056_v10 = vld [vmem:[#allocation7 + $0x4f0] ss:$8 sps:$4 sm:$0xff]   ;;  %v4946_v55 = vrot.slane %v3653_v31, %v4509_v36  ;;  %v4949_v17 = vrot.slane %v3653_v31, %v4504_v34 }
 0x392   : > { %v1876_v8 = vadd.f32 %v1875_v33, %v4880_v22  ;;  %v1877_v54 = vpop.f32.mrb[57].mxu0  ;;  %v2001_v37 = vpack.c.bf16 %v1981_v53, %v1979_v25  ;;  %3754 = vmatpush1.bf16.msra.mxu1 %v4854_v45  ;;  %2671 = vmatprep.subr.bf16.mxu0 %v4055_v28 }
 0x393   : > { %v1878_v40 = vadd.f32 %v1877_v54, %v4883_v14  ;;  %v1879_v12 = vpop.f32.mrb[58].mxu0  ;;  %3739 = vmatprep.subr.bf16.mxu1 %v4857_v0 }
 0x394   : > { %v1950_v46 = vmul.f32 0.01, %v1876_v8  ;;  %v1880_v18 = vadd.f32 %v1879_v12, %v4880_v22  ;;  %v1881_v11 = vpop.f32.mrb[59].mxu0  ;;  %2294 = vmatprep.mubr.bf16.mxu1 %v2001_v37  ;;  %vm1918_vm8 = vcmp.gt.f32.partialorder %v1876_v8, 0.0 }
 0x395   : > { %v1951_v6 = vmul.f32 0.01, %v1878_v40  ;;  %v1882_v16 = vadd.f32 %v1881_v11, %v4883_v14  ;;  %2295 = vmatmul.mubr.bf16.gmra.mrb[52].mxu1 %v2000_v56  ;;  %vm1919_vm9 = vcmp.gt.f32.partialorder %v1878_v40, 0.0 }
 0x396   : > { %vm1920_vm10 = vcmp.gt.f32.partialorder %v1880_v18, 0.0  ;;  %v1952_v3 = vmul.f32 0.01, %v1880_v18  ;;  %3755 = vmatpush1.bf16.msra.mxu1 %v4860_v42  ;;  %v1982_v0 = vsel %vm1918_vm8, %v1876_v8, %v1950_v46 }
 0x397   : > { %vm1921_vm11 = vcmp.gt.f32.partialorder %v1882_v16, 0.0  ;;  %v1953_v45 = vmul.f32 0.01, %v1882_v16  ;;  %3740 = vmatprep.subr.bf16.mxu1 %v4863_v47  ;;  %v1983_v59 = vsel %vm1919_vm9, %v1878_v40, %v1951_v6 }
 0x398   : > { %v1984_v48 = vsel %vm1920_vm10, %v1880_v18, %v1952_v3 }
 0x399   : > { %v1885_v20 = vpop.f32.mrb[60].mxu0  ;;  %v1985_v39 = vsel %vm1921_vm11, %v1882_v16, %v1953_v45  ;;  %v2002_v38 = vpack.c.bf16 %v1984_v48, %v1982_v0 }
 0x39a   : > { %v1886_v29 = vadd.f32 %v1885_v20, %v4880_v22  ;;  %v1887_v44 = vpop.f32.mrb[61].mxu0  ;;  %v2003_v1 = vpack.c.bf16 %v1985_v39, %v1983_v59  ;;  %3756 = vmatpush1.bf16.msra.mxu1 %v4866_v41 }
 0x39b   : > { %v1888_v57 = vadd.f32 %v1887_v44, %v4883_v14  ;;  %v1889_v52 = vpop.f32.mrb[62].mxu0  ;;  %3741 = vmatprep.subr.bf16.mxu1 %v4869_v2 }
 0x39c   : > { %v1954_v42 = vmul.f32 0.01, %v1886_v29  ;;  %v1890_v47 = vadd.f32 %v1889_v52, %v4880_v22  ;;  %v1891_v50 = vpop.f32.mrb[63].mxu0  ;;  %2304 = vmatprep.mubr.bf16.mxu1 %v2003_v1  ;;  %vm1922_vm12 = vcmp.gt.f32.partialorder %v1886_v29, 0.0 }
 0x39d   : > { %v1955_v27 = vmul.f32 0.01, %v1888_v57  ;;  %v1892_v23 = vadd.f32 %v1891_v50, %v4883_v14  ;;  %2305 = vmatmul.mubr.bf16.gmra.mrb[56].mxu1 %v2002_v38  ;;  %vm1923_vm13 = vcmp.gt.f32.partialorder %v1888_v57, 0.0  ;;  %v4053_v14 = vld [vmem:[#allocation7 + $0x4e0] ss:$8 sps:$4 sm:$0xff]  }
 0x39e   : > { %vm1924_vm14 = vcmp.gt.f32.partialorder %v1890_v47, 0.0  ;;  %v1956_v19 = vmul.f32 0.01, %v1890_v47  ;;  %3757 = vmatpush1.bf16.msra.mxu1 %v4872_v62  ;;  %v1986_v15 = vsel %vm1922_vm12, %v1886_v29, %v1954_v42  ;;  %v4058_v62 = vld [vmem:[#allocation7 + $0x4f4] ss:$8 sps:$4 sm:$0xff]   ;;  %2672 = vmatpush1.bf16.msra.mxu0 %v4053_v14 }
 0x39f   : > { %vm1925_vm15 = vcmp.gt.f32.partialorder %v1892_v23, 0.0  ;;  %v1957_v41 = vmul.f32 0.01, %v1892_v23  ;;  %v1987_v2 = vsel %vm1923_vm13, %v1888_v57, %v1955_v27  ;;  %3742 = vmatprep.subr.bf16.mxu1 %v4052_v49  ;;  %2673 = vmatprep.subr.bf16.mxu0 %v4058_v62 }
 0x3a0   : > { %v1988_v24 = vsel %vm1924_vm14, %v1890_v47, %v1956_v19 }
 0x3a1   : > { %v1989_v13 = vsel %vm1925_vm15, %v1892_v23, %v1957_v41  ;;  %v2004_v35 = vpack.c.bf16 %v1988_v24, %v1986_v15 }
 0x3a2   : > { %v2005_v22 = vpack.c.bf16 %v1989_v13, %v1987_v2  ;;  %3758 = vmatpush1.bf16.msra.mxu1 %v4050_v30  ;;  %2674 = vmatpush1.bf16.msra.mxu0 %v4056_v10 }
 0x3a3   : > { %3743 = vmatprep.subr.bf16.mxu1 %v4055_v28 }
 0x3a4   : > { %2314 = vmatprep.mubr.bf16.mxu1 %v2005_v22 }
 0x3a5   : > { %2315 = vmatmul.mubr.bf16.gmra.mrb[60].mxu1 %v2004_v35 }
 0x3a6   : > { %3759 = vmatpush1.bf16.msra.mxu1 %v4053_v14 }
 0x3a7   : > { %3744 = vmatprep.subr.bf16.mxu1 %v4058_v62 }
 0x3aa   : > { %3760 = vmatpush1.bf16.msra.mxu1 %v4056_v10 }
 0x440   : > { %v2246_v32 = vpop.f32.mrb[32].mxu1 }
 0x441   : > { %v2247_v33 = vadd.f32 %v2246_v32, %v4946_v55  ;;  %v2248_v25 = vpop.f32.mrb[33].mxu1 }
 0x442   : > { %v2249_v53 = vadd.f32 %v2248_v25, %v4949_v17  ;;  %v2250_v56 = vpop.f32.mrb[34].mxu1 }
 0x443   : > { %v2357_v8 = vmul.f32 0.01, %v2247_v33  ;;  %v2251_v54 = vadd.f32 %v2250_v56, %v4946_v55  ;;  %v2252_v37 = vpop.f32.mrb[35].mxu1  ;;  %vm2325_vm0 = vcmp.gt.f32.partialorder %v2247_v33, 0.0 }
 0x444   : > { %v2358_v40 = vmul.f32 0.01, %v2249_v53  ;;  %v2253_v12 = vadd.f32 %v2252_v37, %v4949_v17  ;;  %vm2326_vm1 = vcmp.gt.f32.partialorder %v2249_v53, 0.0 }
 0x445   : > { %vm2327_vm2 = vcmp.gt.f32.partialorder %v2251_v54, 0.0  ;;  %v2359_v46 = vmul.f32 0.01, %v2251_v54  ;;  %v2389_v11 = vsel %vm2325_vm0, %v2247_v33, %v2357_v8 }
 0x446   : > { %vm2328_vm3 = vcmp.gt.f32.partialorder %v2253_v12, 0.0  ;;  %v2360_v18 = vmul.f32 0.01, %v2253_v12  ;;  %v2390_v45 = vsel %vm2326_vm1, %v2249_v53, %v2358_v40 }
 0x447   : > { %v2391_v6 = vsel %vm2327_vm2, %v2251_v54, %v2359_v46 }
 0x448   : > { %v2421_v16 = vpack.c.bf16 %v2391_v6, %v2389_v11  ;;  %v2256_v3 = vpop.f32.mrb[36].mxu1  ;;  %v2392_v0 = vsel %vm2328_vm3, %v2253_v12, %v2360_v18 }
 0x449   : > { %v2257_v48 = vadd.f32 %v2256_v3, %v4946_v55  ;;  %v2258_v20 = vpop.f32.mrb[37].mxu1  ;;  %v2422_v59 = vpack.c.bf16 %v2392_v0, %v2390_v45 }
 0x44a   : > { %v2259_v39 = vadd.f32 %v2258_v20, %v4949_v17  ;;  %v2260_v38 = vpop.f32.mrb[38].mxu1 }
 0x44b   : > { %v2361_v29 = vmul.f32 0.01, %v2257_v48  ;;  %v2261_v44 = vadd.f32 %v2260_v38, %v4946_v55  ;;  %v2262_v1 = vpop.f32.mrb[39].mxu1  ;;  %2675 = vmatprep.mubr.bf16.mxu0 %v2422_v59  ;;  %vm2329_vm4 = vcmp.gt.f32.partialorder %v2257_v48, 0.0 }
 0x44c   : > { %v2362_v57 = vmul.f32 0.01, %v2259_v39  ;;  %v2263_v52 = vadd.f32 %v2262_v1, %v4949_v17  ;;  %2676 = vmatmul.mubr.bf16.vlgmr.msra.gmra.mrb[64].mxu0 %v2421_v16  ;;  %vm2330_vm5 = vcmp.gt.f32.partialorder %v2259_v39, 0.0 }
 0x44d   : > { %vm2331_vm6 = vcmp.gt.f32.partialorder %v2261_v44, 0.0  ;;  %v2363_v42 = vmul.f32 0.01, %v2261_v44  ;;  %v2393_v50 = vsel %vm2329_vm4, %v2257_v48, %v2361_v29 }
 0x44e   : > { %vm2332_vm7 = vcmp.gt.f32.partialorder %v2263_v52, 0.0  ;;  %v2364_v47 = vmul.f32 0.01, %v2263_v52  ;;  %v2394_v19 = vsel %vm2330_vm5, %v2259_v39, %v2362_v57 }
 0x44f   : > { %v2395_v27 = vsel %vm2331_vm6, %v2261_v44, %v2363_v42 }
 0x450   : > { %v2266_v23 = vpop.f32.mrb[40].mxu1  ;;  %v2396_v41 = vsel %vm2332_vm7, %v2263_v52, %v2364_v47  ;;  %v2423_v15 = vpack.c.bf16 %v2395_v27, %v2393_v50 }
 0x451   : > { %v2267_v24 = vadd.f32 %v2266_v23, %v4946_v55  ;;  %v2268_v2 = vpop.f32.mrb[41].mxu1  ;;  %v2424_v13 = vpack.c.bf16 %v2396_v41, %v2394_v19 }
 0x452   : > { %v2269_v35 = vadd.f32 %v2268_v2, %v4949_v17  ;;  %v2270_v22 = vpop.f32.mrb[42].mxu1 }
 0x453   : > { %v2365_v30 = vmul.f32 0.01, %v2267_v24  ;;  %v2271_v49 = vadd.f32 %v2270_v22, %v4946_v55  ;;  %v2272_v14 = vpop.f32.mrb[43].mxu1  ;;  %2685 = vmatprep.mubr.bf16.mxu0 %v2424_v13  ;;  %vm2333_vm8 = vcmp.gt.f32.partialorder %v2267_v24, 0.0 }
 0x454   : > { %v2366_v28 = vmul.f32 0.01, %v2269_v35  ;;  %v2273_v62 = vadd.f32 %v2272_v14, %v4949_v17  ;;  %2686 = vmatmul.mubr.bf16.gmra.mrb[68].mxu0 %v2423_v15  ;;  %vm2334_vm9 = vcmp.gt.f32.partialorder %v2269_v35, 0.0 }
 0x455   : > { %vm2335_vm10 = vcmp.gt.f32.partialorder %v2271_v49, 0.0  ;;  %v2367_v10 = vmul.f32 0.01, %v2271_v49  ;;  %v2397_v32 = vsel %vm2333_vm8, %v2267_v24, %v2365_v30 }
 0x456   : > { %vm2336_vm11 = vcmp.gt.f32.partialorder %v2273_v62, 0.0  ;;  %v2368_v31 = vmul.f32 0.01, %v2273_v62  ;;  %v2398_v53 = vsel %vm2334_vm9, %v2269_v35, %v2366_v28 }
 0x457   : > { %v2399_v33 = vsel %vm2335_vm10, %v2271_v49, %v2367_v10 }
 0x458   : > { %v2276_v25 = vpop.f32.mrb[44].mxu1  ;;  %v2400_v56 = vsel %vm2336_vm11, %v2273_v62, %v2368_v31  ;;  %v2425_v8 = vpack.c.bf16 %v2399_v33, %v2397_v32 }
 0x459   : > { %v2277_v54 = vadd.f32 %v2276_v25, %v4946_v55  ;;  %v2278_v37 = vpop.f32.mrb[45].mxu1  ;;  %v2426_v40 = vpack.c.bf16 %v2400_v56, %v2398_v53 }
 0x45a   : > { %v2279_v12 = vadd.f32 %v2278_v37, %v4949_v17  ;;  %v2280_v46 = vpop.f32.mrb[46].mxu1 }
 0x45b   : > { %v2369_v18 = vmul.f32 0.01, %v2277_v54  ;;  %v2281_v11 = vadd.f32 %v2280_v46, %v4946_v55  ;;  %v2282_v6 = vpop.f32.mrb[47].mxu1  ;;  %2695 = vmatprep.mubr.bf16.mxu0 %v2426_v40  ;;  %vm2337_vm12 = vcmp.gt.f32.partialorder %v2277_v54, 0.0 }
 0x45c   : > { %v2370_v16 = vmul.f32 0.01, %v2279_v12  ;;  %v2283_v3 = vadd.f32 %v2282_v6, %v4949_v17  ;;  %2696 = vmatmul.mubr.bf16.gmra.mrb[72].mxu0 %v2425_v8  ;;  %vm2338_vm13 = vcmp.gt.f32.partialorder %v2279_v12, 0.0 }
 0x45d   : > { %vm2339_vm14 = vcmp.gt.f32.partialorder %v2281_v11, 0.0  ;;  %v2371_v45 = vmul.f32 0.01, %v2281_v11  ;;  %v2401_v48 = vsel %vm2337_vm12, %v2277_v54, %v2369_v18 }
 0x45e   : > { %vm2340_vm15 = vcmp.gt.f32.partialorder %v2283_v3, 0.0  ;;  %v2372_v0 = vmul.f32 0.01, %v2283_v3  ;;  %v2402_v39 = vsel %vm2338_vm13, %v2279_v12, %v2370_v16 }
 0x45f   : > { %v2403_v20 = vsel %vm2339_vm14, %v2281_v11, %v2371_v45 }
 0x460   : > { %v2286_v59 = vpop.f32.mrb[48].mxu1  ;;  %v2404_v38 = vsel %vm2340_vm15, %v2283_v3, %v2372_v0  ;;  %v2427_v29 = vpack.c.bf16 %v2403_v20, %v2401_v48 }
 0x461   : > { %v2287_v44 = vadd.f32 %v2286_v59, %v4946_v55  ;;  %v2288_v1 = vpop.f32.mrb[49].mxu1  ;;  %v2428_v57 = vpack.c.bf16 %v2404_v38, %v2402_v39 }
 0x462   : > { %v2289_v52 = vadd.f32 %v2288_v1, %v4949_v17  ;;  %v2290_v42 = vpop.f32.mrb[50].mxu1 }
 0x463   : > { %v2373_v47 = vmul.f32 0.01, %v2287_v44  ;;  %v2291_v50 = vadd.f32 %v2290_v42, %v4946_v55  ;;  %v2292_v27 = vpop.f32.mrb[51].mxu1  ;;  %2705 = vmatprep.mubr.bf16.mxu0 %v2428_v57  ;;  %vm2341_vm0 = vcmp.gt.f32.partialorder %v2287_v44, 0.0 }
 0x464   : > { %v2374_v23 = vmul.f32 0.01, %v2289_v52  ;;  %v2293_v19 = vadd.f32 %v2292_v27, %v4949_v17  ;;  %2706 = vmatmul.mubr.bf16.gmra.mrb[76].mxu0 %v2427_v29  ;;  %vm2342_vm1 = vcmp.gt.f32.partialorder %v2289_v52, 0.0 }
 0x465   : > { %vm2343_vm2 = vcmp.gt.f32.partialorder %v2291_v50, 0.0  ;;  %v2375_v41 = vmul.f32 0.01, %v2291_v50  ;;  %v2405_v24 = vsel %vm2341_vm0, %v2287_v44, %v2373_v47 }
 0x466   : > { %vm2344_vm3 = vcmp.gt.f32.partialorder %v2293_v19, 0.0  ;;  %v2376_v15 = vmul.f32 0.01, %v2293_v19  ;;  %v2406_v22 = vsel %vm2342_vm1, %v2289_v52, %v2374_v23 }
 0x467   : > { %v2407_v2 = vsel %vm2343_vm2, %v2291_v50, %v2375_v41 }
 0x468   : > { %v2429_v13 = vpack.c.bf16 %v2407_v2, %v2405_v24  ;;  %v2296_v35 = vpop.f32.mrb[52].mxu1  ;;  %v2408_v30 = vsel %vm2344_vm3, %v2293_v19, %v2376_v15 }
 0x469   : > { %v2297_v49 = vadd.f32 %v2296_v35, %v4946_v55  ;;  %v2298_v14 = vpop.f32.mrb[53].mxu1  ;;  %v2430_v28 = vpack.c.bf16 %v2408_v30, %v2406_v22 }
 0x46a   : > { %v2299_v62 = vadd.f32 %v2298_v14, %v4949_v17  ;;  %v2300_v10 = vpop.f32.mrb[54].mxu1 }
 0x46b   : > { %v2377_v31 = vmul.f32 0.01, %v2297_v49  ;;  %v2301_v32 = vadd.f32 %v2300_v10, %v4946_v55  ;;  %v2302_v33 = vpop.f32.mrb[55].mxu1  ;;  %2715 = vmatprep.mubr.bf16.mxu1 %v2430_v28  ;;  %vm2345_vm4 = vcmp.gt.f32.partialorder %v2297_v49, 0.0 }
 0x46c   : > { %v2378_v25 = vmul.f32 0.01, %v2299_v62  ;;  %v2303_v53 = vadd.f32 %v2302_v33, %v4949_v17  ;;  %2716 = vmatmul.mubr.bf16.vlgmr.msra.gmra.mrb[64].mxu1 %v2429_v13  ;;  %vm2346_vm5 = vcmp.gt.f32.partialorder %v2299_v62, 0.0  ;;  %v435_v33 = vld [vmem:[%s5349_s9] sm:$0x3] }
 0x46d   : > { %vm2347_vm6 = vcmp.gt.f32.partialorder %v2301_v32, 0.0  ;;  %v2379_v56 = vmul.f32 0.01, %v2301_v32  ;;  %v2409_v54 = vsel %vm2345_vm4, %v2297_v49, %v2377_v31 }
 0x46e   : > { %vm2348_vm7 = vcmp.gt.f32.partialorder %v2303_v53, 0.0  ;;  %v2380_v8 = vmul.f32 0.01, %v2303_v53  ;;  %v2410_v12 = vsel %vm2346_vm5, %v2299_v62, %v2378_v25 }
 0x46f   : > { %v2411_v37 = vsel %vm2347_vm6, %v2301_v32, %v2379_v56 }
 0x470   : > { %v2306_v40 = vpop.f32.mrb[56].mxu1  ;;  %v2412_v46 = vsel %vm2348_vm7, %v2303_v53, %v2380_v8  ;;  %v2431_v18 = vpack.c.bf16 %v2411_v37, %v2409_v54  ;;  %v4998_v37 = vrot.slane %v435_v33, %v4509_v36 }
 0x471   : > { %v2307_v11 = vadd.f32 %v2306_v40, %v4946_v55  ;;  %v2308_v6 = vpop.f32.mrb[57].mxu1  ;;  %v2432_v16 = vpack.c.bf16 %v2412_v46, %v2410_v12 }
 0x472   : > { %v2309_v3 = vadd.f32 %v2308_v6, %v4949_v17  ;;  %v2310_v45 = vpop.f32.mrb[58].mxu1 }
 0x473   : > { %v2381_v0 = vmul.f32 0.01, %v2307_v11  ;;  %v2311_v48 = vadd.f32 %v2310_v45, %v4946_v55  ;;  %v2312_v20 = vpop.f32.mrb[59].mxu1  ;;  %2725 = vmatprep.mubr.bf16.mxu1 %v2432_v16  ;;  %vm2349_vm8 = vcmp.gt.f32.partialorder %v2307_v11, 0.0 }
 0x474   : > { %v2382_v59 = vmul.f32 0.01, %v2309_v3  ;;  %v2313_v39 = vadd.f32 %v2312_v20, %v4949_v17  ;;  %2726 = vmatmul.mubr.bf16.gmra.mrb[68].mxu1 %v2431_v18  ;;  %vm2350_vm9 = vcmp.gt.f32.partialorder %v2309_v3, 0.0  ;;  %v5002_v18 = vrot.slane %v435_v33, %v4504_v34 }
 0x475   : > { %vm2351_vm10 = vcmp.gt.f32.partialorder %v2311_v48, 0.0  ;;  %v2383_v38 = vmul.f32 0.01, %v2311_v48  ;;  %v2413_v44 = vsel %vm2349_vm8, %v2307_v11, %v2381_v0 }
 0x476   : > { %vm2352_vm11 = vcmp.gt.f32.partialorder %v2313_v39, 0.0  ;;  %v2384_v29 = vmul.f32 0.01, %v2313_v39  ;;  %v2414_v52 = vsel %vm2350_vm9, %v2309_v3, %v2382_v59 }
 0x477   : > { %v2415_v1 = vsel %vm2351_vm10, %v2311_v48, %v2383_v38 }
 0x478   : > { %v2316_v57 = vpop.f32.mrb[60].mxu1  ;;  %v2416_v42 = vsel %vm2352_vm11, %v2313_v39, %v2384_v29  ;;  %v2433_v47 = vpack.c.bf16 %v2415_v1, %v2413_v44 }
 0x479   : > { %v2317_v50 = vadd.f32 %v2316_v57, %v4946_v55  ;;  %v2318_v27 = vpop.f32.mrb[61].mxu1  ;;  %v2434_v23 = vpack.c.bf16 %v2416_v42, %v2414_v52 }
 0x47a   : > { %v2319_v19 = vadd.f32 %v2318_v27, %v4949_v17  ;;  %v2320_v41 = vpop.f32.mrb[62].mxu1 }
 0x47b   : > { %v2385_v15 = vmul.f32 0.01, %v2317_v50  ;;  %v2321_v24 = vadd.f32 %v2320_v41, %v4946_v55  ;;  %v2322_v2 = vpop.f32.mrb[63].mxu1  ;;  %2735 = vmatprep.mubr.bf16.mxu1 %v2434_v23  ;;  %vm2353_vm12 = vcmp.gt.f32.partialorder %v2317_v50, 0.0 }
 0x47c   : > { %v2386_v13 = vmul.f32 0.01, %v2319_v19  ;;  %v2323_v35 = vadd.f32 %v2322_v2, %v4949_v17  ;;  %2736 = vmatmul.mubr.bf16.gmra.mrb[72].mxu1 %v2433_v47  ;;  %vm2354_vm13 = vcmp.gt.f32.partialorder %v2319_v19, 0.0  ;;  %v3686_v55 = vld [vmem:[%s5348_s8 + $0x4] ss:$8 sm:$0x3] }
 0x47d   : > { %vm2355_vm14 = vcmp.gt.f32.partialorder %v2321_v24, 0.0  ;;  %v2387_v22 = vmul.f32 0.01, %v2321_v24  ;;  %v2417_v49 = vsel %vm2353_vm12, %v2317_v50, %v2385_v15  ;;  %v4987_v17 = vrot.slane %v3686_v55, %v4509_v36 }
 0x47e   : > { %vm2356_vm15 = vcmp.gt.f32.partialorder %v2323_v35, 0.0  ;;  %v2388_v30 = vmul.f32 0.01, %v2323_v35  ;;  %v2418_v28 = vsel %vm2354_vm13, %v2319_v19, %v2386_v13  ;;  %v4990_v32 = vrot.slane %v3686_v55, %v4504_v34 }
 0x47f   : > { %v2419_v14 = vsel %vm2355_vm14, %v2321_v24, %v2387_v22 }
 0x480   : > { %v2420_v62 = vsel %vm2356_vm15, %v2323_v35, %v2388_v30  ;;  %v2435_v10 = vpack.c.bf16 %v2419_v14, %v2417_v49 }
 0x481   : > { %v2436_v31 = vpack.c.bf16 %v2420_v62, %v2418_v28 }
 0x483   : > { %2745 = vmatprep.mubr.bf16.mxu1 %v2436_v31 }
 0x484   : > { %2746 = vmatmul.mubr.bf16.gmra.mrb[76].mxu1 %v2435_v10 }
 0x51f   : > { %v2677_v25 = vpop.f32.mrb[64].mxu0 }
 0x520   : > { %v2678_v53 = vadd.f32 %v2677_v25, %v4987_v17  ;;  %v2679_v56 = vpop.f32.mrb[65].mxu0 }
 0x521   : > { %v2680_v8 = vadd.f32 %v2679_v56, %v4990_v32  ;;  %v2681_v54 = vpop.f32.mrb[66].mxu0 }
 0x522   : > { %vm2756_vm0 = vcmp.gt.f32.partialorder %v2678_v53, 0.0  ;;  %v2788_v40 = vmul.f32 0.01, %v2678_v53  ;;  %v2682_v12 = vadd.f32 %v2681_v54, %v4987_v17  ;;  %v2683_v46 = vpop.f32.mrb[67].mxu0 }
 0x523   : > { %vm2757_vm1 = vcmp.gt.f32.partialorder %v2680_v8, 0.0  ;;  %v2789_v11 = vmul.f32 0.01, %v2680_v8  ;;  %v2684_v6 = vadd.f32 %v2683_v46, %v4990_v32 }
 0x524   : > { %vm2758_vm2 = vcmp.gt.f32.partialorder %v2682_v12, 0.0  ;;  %v2790_v16 = vmul.f32 0.01, %v2682_v12  ;;  %v2820_v3 = vsel %vm2756_vm0, %v2678_v53, %v2788_v40 }
 0x525   : > { %vm2759_vm3 = vcmp.gt.f32.partialorder %v2684_v6, 0.0  ;;  %v2791_v45 = vmul.f32 0.01, %v2684_v6  ;;  %v2821_v0 = vsel %vm2757_vm1, %v2680_v8, %v2789_v11  ;;  %v2863_v36 = vmul.f32 %v4998_v37, %v2820_v3 }
 0x526   : > { %v2864_v48 = vmul.f32 %v5002_v18, %v2821_v0  ;;  %v2822_v20 = vsel %vm2758_vm2, %v2682_v12, %v2790_v16 }
 0x527   : > { %v2687_v59 = vpop.f32.mrb[68].mxu0  ;;  %v2823_v39 = vsel %vm2759_vm3, %v2684_v6, %v2791_v45  ;;  %v2865_v34 = vmul.f32 %v4998_v37, %v2822_v20 }
 0x528   : > { %v2688_v38 = vadd.f32 %v2687_v59, %v4987_v17  ;;  %v2689_v29 = vpop.f32.mrb[69].mxu0  ;;  %v2895_v44 = vadd.f32 %v2864_v48, %v2863_v36  ;;  %v2866_v1 = vmul.f32 %v5002_v18, %v2823_v39 }
 0x529   : > { %v2690_v57 = vadd.f32 %v2689_v29, %v4990_v32  ;;  %v2691_v52 = vpop.f32.mrb[70].mxu0 }
 0x52a   : > { %vm2760_vm4 = vcmp.gt.f32.partialorder %v2688_v38, 0.0  ;;  %v2792_v42 = vmul.f32 0.01, %v2688_v38  ;;  %v2692_v47 = vadd.f32 %v2691_v52, %v4987_v17  ;;  %v2693_v50 = vpop.f32.mrb[71].mxu0  ;;  %2896 = vadd.xlane.f32.xlu0 %v2895_v44  ;;  %v2898_v27 = vadd.f32 %v2866_v1, %v2865_v34 }
 0x52b   : > { %vm2761_vm5 = vcmp.gt.f32.partialorder %v2690_v57, 0.0  ;;  %v2793_v23 = vmul.f32 0.01, %v2690_v57  ;;  %v2694_v19 = vadd.f32 %v2693_v50, %v4990_v32 }
 0x52c   : > { %vm2762_vm6 = vcmp.gt.f32.partialorder %v2692_v47, 0.0  ;;  %v2794_v41 = vmul.f32 0.01, %v2692_v47  ;;  %2899 = vadd.xlane.f32.xlu1 %v2898_v27  ;;  %v2824_v15 = vsel %vm2760_vm4, %v2688_v38, %v2792_v42 }
 0x52d   : > { %vm2763_vm7 = vcmp.gt.f32.partialorder %v2694_v19, 0.0  ;;  %v2795_v24 = vmul.f32 0.01, %v2694_v19  ;;  %v2825_v2 = vsel %vm2761_vm5, %v2690_v57, %v2793_v23  ;;  %v2867_v13 = vmul.f32 %v4998_v37, %v2824_v15 }
 0x52e   : > { %v2868_v35 = vmul.f32 %v5002_v18, %v2825_v2  ;;  %v2826_v22 = vsel %vm2762_vm6, %v2692_v47, %v2794_v41 }
 0x52f   : > { %v2697_v30 = vpop.f32.mrb[72].mxu0  ;;  %v2827_v49 = vsel %vm2763_vm7, %v2694_v19, %v2795_v24  ;;  %v2869_v14 = vmul.f32 %v4998_v37, %v2826_v22 }
 0x530   : > { %v2698_v28 = vadd.f32 %v2697_v30, %v4987_v17  ;;  %v2699_v62 = vpop.f32.mrb[73].mxu0  ;;  %v2901_v10 = vadd.f32 %v2868_v35, %v2867_v13  ;;  %v2870_v31 = vmul.f32 %v5002_v18, %v2827_v49 }
 0x531   : > { %v2700_v55 = vadd.f32 %v2699_v62, %v4990_v32  ;;  %v2701_v33 = vpop.f32.mrb[74].mxu0 }
 0x532   : > { %vm2764_vm8 = vcmp.gt.f32.partialorder %v2698_v28, 0.0  ;;  %v2796_v25 = vmul.f32 0.01, %v2698_v28  ;;  %v2702_v53 = vadd.f32 %v2701_v33, %v4987_v17  ;;  %v2703_v56 = vpop.f32.mrb[75].mxu0  ;;  %2902 = vadd.xlane.f32.xlu0 %v2901_v10  ;;  %v2904_v8 = vadd.f32 %v2870_v31, %v2869_v14 }
 0x533   : > { %vm2765_vm9 = vcmp.gt.f32.partialorder %v2700_v55, 0.0  ;;  %v2797_v54 = vmul.f32 0.01, %v2700_v55  ;;  %v2704_v40 = vadd.f32 %v2703_v56, %v4990_v32 }
 0x534   : > { %vm2766_vm10 = vcmp.gt.f32.partialorder %v2702_v53, 0.0  ;;  %v2798_v12 = vmul.f32 0.01, %v2702_v53  ;;  %v2828_v46 = vsel %vm2764_vm8, %v2698_v28, %v2796_v25 }
 0x535   : > { %vm2767_vm11 = vcmp.gt.f32.partialorder %v2704_v40, 0.0  ;;  %v2799_v11 = vmul.f32 0.01, %v2704_v40  ;;  %v2829_v6 = vsel %vm2765_vm9, %v2700_v55, %v2797_v54  ;;  %v2871_v16 = vmul.f32 %v4998_v37, %v2828_v46 }
 0x536   : > { %2905 = vadd.xlane.f32.xlu0 %v2904_v8  ;;  %v2872_v3 = vmul.f32 %v5002_v18, %v2829_v6  ;;  %v2830_v45 = vsel %vm2766_vm10, %v2702_v53, %v2798_v12 }
 0x537   : > { %v2707_v0 = vpop.f32.mrb[76].mxu0  ;;  %v2831_v36 = vsel %vm2767_vm11, %v2704_v40, %v2799_v11  ;;  %v2873_v48 = vmul.f32 %v4998_v37, %v2830_v45 }
 0x538   : > { %v2708_v20 = vadd.f32 %v2707_v0, %v4987_v17  ;;  %v2709_v59 = vpop.f32.mrb[77].mxu0  ;;  %v2907_v39 = vadd.f32 %v2872_v3, %v2871_v16  ;;  %v2874_v34 = vmul.f32 %v5002_v18, %v2831_v36 }
 0x539   : > { %v2710_v38 = vadd.f32 %v2709_v59, %v4990_v32  ;;  %v2711_v29 = vpop.f32.mrb[78].mxu0 }
 0x53a   : > { %vm2768_vm12 = vcmp.gt.f32.partialorder %v2708_v20, 0.0  ;;  %v2800_v44 = vmul.f32 0.01, %v2708_v20  ;;  %v2712_v1 = vadd.f32 %v2711_v29, %v4987_v17  ;;  %v2713_v57 = vpop.f32.mrb[79].mxu0  ;;  %2908 = vadd.xlane.f32.xlu1 %v2907_v39  ;;  %v2910_v52 = vadd.f32 %v2874_v34, %v2873_v48 }
 0x53b   : > { %vm2769_vm13 = vcmp.gt.f32.partialorder %v2710_v38, 0.0  ;;  %v2801_v42 = vmul.f32 0.01, %v2710_v38  ;;  %v2714_v47 = vadd.f32 %v2713_v57, %v4990_v32 }
 0x53c   : > { %vm2770_vm14 = vcmp.gt.f32.partialorder %v2712_v1, 0.0  ;;  %v2802_v50 = vmul.f32 0.01, %v2712_v1  ;;  %2911 = vadd.xlane.f32.xlu0 %v2910_v52  ;;  %v2832_v27 = vsel %vm2768_vm12, %v2708_v20, %v2800_v44 }
 0x53d   : > { %vm2771_vm15 = vcmp.gt.f32.partialorder %v2714_v47, 0.0  ;;  %v2803_v23 = vmul.f32 0.01, %v2714_v47  ;;  %v2833_v19 = vsel %vm2769_vm13, %v2710_v38, %v2801_v42  ;;  %v2875_v41 = vmul.f32 %v4998_v37, %v2832_v27 }
 0x53e   : > { %v2876_v15 = vmul.f32 %v5002_v18, %v2833_v19  ;;  %v2834_v24 = vsel %vm2770_vm14, %v2712_v1, %v2802_v50 }
 0x53f   : > { %v2717_v2 = vpop.f32.mrb[64].mxu1  ;;  %v2835_v13 = vsel %vm2771_vm15, %v2714_v47, %v2803_v23  ;;  %v2877_v35 = vmul.f32 %v4998_v37, %v2834_v24 }
 0x540   : > { %v2718_v22 = vadd.f32 %v2717_v2, %v4987_v17  ;;  %v2719_v30 = vpop.f32.mrb[65].mxu1  ;;  %v2913_v49 = vadd.f32 %v2876_v15, %v2875_v41  ;;  %v2878_v14 = vmul.f32 %v5002_v18, %v2835_v13 }
 0x541   : > { %v2720_v28 = vadd.f32 %v2719_v30, %v4990_v32  ;;  %v2721_v62 = vpop.f32.mrb[66].mxu1 }
 0x542   : > { %vm2772_vm0 = vcmp.gt.f32.partialorder %v2718_v22, 0.0  ;;  %v2804_v10 = vmul.f32 0.01, %v2718_v22  ;;  %v2722_v31 = vadd.f32 %v2721_v62, %v4987_v17  ;;  %v2723_v55 = vpop.f32.mrb[67].mxu1  ;;  %2914 = vadd.xlane.f32.xlu1 %v2913_v49  ;;  %v2916_v33 = vadd.f32 %v2878_v14, %v2877_v35 }
 0x543   : > { %vm2773_vm1 = vcmp.gt.f32.partialorder %v2720_v28, 0.0  ;;  %v2805_v25 = vmul.f32 0.01, %v2720_v28  ;;  %v2724_v53 = vadd.f32 %v2723_v55, %v4990_v32 }
 0x544   : > { %vm2774_vm2 = vcmp.gt.f32.partialorder %v2722_v31, 0.0  ;;  %v2806_v56 = vmul.f32 0.01, %v2722_v31  ;;  %2917 = vadd.xlane.f32.xlu0 %v2916_v33  ;;  %v2836_v8 = vsel %vm2772_vm0, %v2718_v22, %v2804_v10 }
 0x545   : > { %vm2775_vm3 = vcmp.gt.f32.partialorder %v2724_v53, 0.0  ;;  %v2807_v54 = vmul.f32 0.01, %v2724_v53  ;;  %v2837_v40 = vsel %vm2773_vm1, %v2720_v28, %v2805_v25  ;;  %v2879_v12 = vmul.f32 %v4998_v37, %v2836_v8 }
 0x546   : > { %v2880_v46 = vmul.f32 %v5002_v18, %v2837_v40  ;;  %v2838_v11 = vsel %vm2774_vm2, %v2722_v31, %v2806_v56 }
 0x547   : > { %v2727_v6 = vpop.f32.mrb[68].mxu1  ;;  %v2839_v16 = vsel %vm2775_vm3, %v2724_v53, %v2807_v54  ;;  %v2881_v3 = vmul.f32 %v4998_v37, %v2838_v11 }
 0x548   : > { %v2728_v45 = vadd.f32 %v2727_v6, %v4987_v17  ;;  %v2729_v0 = vpop.f32.mrb[69].mxu1  ;;  %v2919_v36 = vadd.f32 %v2880_v46, %v2879_v12  ;;  %v2882_v48 = vmul.f32 %v5002_v18, %v2839_v16 }
 0x549   : > { %v2730_v20 = vadd.f32 %v2729_v0, %v4990_v32  ;;  %v2731_v59 = vpop.f32.mrb[70].mxu1 }
 0x54a   : > { %vm2776_vm4 = vcmp.gt.f32.partialorder %v2728_v45, 0.0  ;;  %v2808_v39 = vmul.f32 0.01, %v2728_v45  ;;  %v2732_v34 = vadd.f32 %v2731_v59, %v4987_v17  ;;  %v2733_v38 = vpop.f32.mrb[71].mxu1  ;;  %2920 = vadd.xlane.f32.xlu1 %v2919_v36  ;;  %v2922_v29 = vadd.f32 %v2882_v48, %v2881_v3 }
 0x54b   : > { %vm2777_vm5 = vcmp.gt.f32.partialorder %v2730_v20, 0.0  ;;  %v2809_v44 = vmul.f32 0.01, %v2730_v20  ;;  %v2734_v1 = vadd.f32 %v2733_v38, %v4990_v32 }
 0x54c   : > { %vm2778_vm6 = vcmp.gt.f32.partialorder %v2732_v34, 0.0  ;;  %v2810_v57 = vmul.f32 0.01, %v2732_v34  ;;  %2923 = vadd.xlane.f32.xlu0 %v2922_v29  ;;  %v2840_v52 = vsel %vm2776_vm4, %v2728_v45, %v2808_v39 }
 0x54d   : > { %vm2779_vm7 = vcmp.gt.f32.partialorder %v2734_v1, 0.0  ;;  %v2811_v42 = vmul.f32 0.01, %v2734_v1  ;;  %v2841_v47 = vsel %vm2777_vm5, %v2730_v20, %v2809_v44  ;;  %v2883_v50 = vmul.f32 %v4998_v37, %v2840_v52 }
 0x54e   : > { %v2884_v27 = vmul.f32 %v5002_v18, %v2841_v47  ;;  %v2842_v23 = vsel %vm2778_vm6, %v2732_v34, %v2810_v57 }
 0x54f   : > { %v2737_v19 = vpop.f32.mrb[72].mxu1  ;;  %v2843_v41 = vsel %vm2779_vm7, %v2734_v1, %v2811_v42  ;;  %v2885_v15 = vmul.f32 %v4998_v37, %v2842_v23  ;;  %v5096_v23 = vld [vmem:[#allocation6] ss:$0 sm:$0xff] }
 0x550   : > { %v2738_v24 = vadd.f32 %v2737_v19, %v4987_v17  ;;  %v2739_v2 = vpop.f32.mrb[73].mxu1  ;;  %v2925_v13 = vadd.f32 %v2884_v27, %v2883_v50  ;;  %v2886_v35 = vmul.f32 %v5002_v18, %v2843_v41  ;;  %v5411_v19 = vsub.f32 1.0, %v4355_v9 }
 0x551   : > { %v2740_v22 = vadd.f32 %v2739_v2, %v4990_v32  ;;  %v2741_v30 = vpop.f32.mrb[74].mxu1 }
 0x552   : > { %vm2780_vm8 = vcmp.gt.f32.partialorder %v2738_v24, 0.0  ;;  %v2812_v49 = vmul.f32 0.01, %v2738_v24  ;;  %v2742_v14 = vadd.f32 %v2741_v30, %v4987_v17  ;;  %v2743_v28 = vpop.f32.mrb[75].mxu1  ;;  %2926 = vadd.xlane.f32.xlu1 %v2925_v13  ;;  %v2928_v62 = vadd.f32 %v2886_v35, %v2885_v15  ;;  %v4060_v15 = vld [vmem:[%s4341_s17 + $0x8] sm:$0xff] }
 0x553   : > { %vm2781_vm9 = vcmp.gt.f32.partialorder %v2740_v22, 0.0  ;;  %v2813_v10 = vmul.f32 0.01, %v2740_v22  ;;  %v2744_v31 = vadd.f32 %v2743_v28, %v4990_v32 }
 0x554   : > { %vm2782_vm10 = vcmp.gt.f32.partialorder %v2742_v14, 0.0  ;;  %v2814_v55 = vmul.f32 0.01, %v2742_v14  ;;  %2929 = vadd.xlane.f32.xlu0 %v2928_v62  ;;  %v2844_v33 = vsel %vm2780_vm8, %v2738_v24, %v2812_v49 }
 0x555   : > { %vm2783_vm11 = vcmp.gt.f32.partialorder %v2744_v31, 0.0  ;;  %v2815_v25 = vmul.f32 0.01, %v2744_v31  ;;  %v2845_v53 = vsel %vm2781_vm9, %v2740_v22, %v2813_v10  ;;  %v2887_v56 = vmul.f32 %v4998_v37, %v2844_v33 }
 0x556   : > { %v2888_v8 = vmul.f32 %v5002_v18, %v2845_v53  ;;  %v2846_v54 = vsel %vm2782_vm10, %v2742_v14, %v2814_v55  ;;  %v5412_v14 = vld [vmem:[#allocation13_spill] sm:$0xff]  ;;  %v5414_v53 = vld [vmem:[#allocation14_spill] sm:$0xff] }
 0x557   : > { %v2747_v40 = vpop.f32.mrb[76].mxu1  ;;  %v2847_v12 = vsel %vm2783_vm11, %v2744_v31, %v2815_v25  ;;  %v2889_v46 = vmul.f32 %v4998_v37, %v2846_v54  ;;  %v5413_v28 = vsub.f32 1.0, %v5412_v14  ;;  %v4061_v31 = vld [vmem:[%s4341_s17 + $0x10] sm:$0xff] }
 0x558   : > { %v2748_v11 = vadd.f32 %v2747_v40, %v4987_v17  ;;  %v2749_v6 = vpop.f32.mrb[77].mxu1  ;;  %v2931_v16 = vadd.f32 %v2888_v8, %v2887_v56  ;;  %v2890_v3 = vmul.f32 %v5002_v18, %v2847_v12  ;;  %v5415_v56 = vsub.f32 1.0, %v5414_v53  ;;  %v4062_v12 = vld [vmem:[%s4341_s17 + $0x18] sm:$0xff] }
 0x559   : > { %v2750_v45 = vadd.f32 %v2749_v6, %v4990_v32  ;;  %v2751_v0 = vpop.f32.mrb[78].mxu1  ;;  %v5416_v6 = vld [vmem:[#allocation16_spill] sm:$0xff] }
 0x55a   : > { %vm2784_vm12 = vcmp.gt.f32.partialorder %v2748_v11, 0.0  ;;  %v2816_v36 = vmul.f32 0.01, %v2748_v11  ;;  %v2752_v48 = vadd.f32 %v2751_v0, %v4987_v17  ;;  %v2753_v20 = vpop.f32.mrb[79].mxu1  ;;  %2932 = vadd.xlane.f32.xlu1 %v2931_v16  ;;  %v2934_v59 = vadd.f32 %v2890_v3, %v2889_v46 }
 0x55b   : > { %vm2785_vm13 = vcmp.gt.f32.partialorder %v2750_v45, 0.0  ;;  %v2817_v39 = vmul.f32 0.01, %v2750_v45  ;;  %v2754_v34 = vadd.f32 %v2753_v20, %v4990_v32  ;;  %v5417_v16 = vsub.f32 1.0, %v5416_v6  ;;  %v4063_v20 = vld [vmem:[%s4341_s17 + $0x20] sm:$0xff] }
 0x55c   : > { %vm2786_vm14 = vcmp.gt.f32.partialorder %v2752_v48, 0.0  ;;  %v2818_v38 = vmul.f32 0.01, %v2752_v48  ;;  %2935 = vadd.xlane.f32.xlu0 %v2934_v59  ;;  %v2848_v29 = vsel %vm2784_vm12, %v2748_v11, %v2816_v36 }
 0x55d   : > { %vm2787_vm15 = vcmp.gt.f32.partialorder %v2754_v34, 0.0  ;;  %v2819_v44 = vmul.f32 0.01, %v2754_v34  ;;  %v2849_v1 = vsel %vm2785_vm13, %v2750_v45, %v2817_v39  ;;  %v2891_v57 = vmul.f32 %v4998_v37, %v2848_v29  ;;  %v5418_v39 = vld [vmem:[#allocation15_spill] sm:$0xff] }
 0x55e   : > { %v2892_v52 = vmul.f32 %v5002_v18, %v2849_v1  ;;  %v2850_v42 = vsel %vm2786_vm14, %v2752_v48, %v2818_v38 }
 0x55f   : > { %v2851_v17 = vsel %vm2787_vm15, %v2754_v34, %v2819_v44  ;;  %v2893_v47 = vmul.f32 %v4998_v37, %v2850_v42  ;;  %v4059_v37 = vld [vmem:[%s4341_s17] sm:$0xff]  ;;  %v5419_v34 = vsub.f32 1.0, %v5418_v39  ;;  %v4064_v44 = vld [vmem:[%s4341_s17 + $0x28] sm:$0xff] }
 0x560   : > { %v2937_v50 = vadd.f32 %v2892_v52, %v2891_v57  ;;  %v2894_v27 = vmul.f32 %v5002_v18, %v2851_v17 }
 0x562   : > { %2938 = vadd.xlane.f32.xlu1 %v2937_v50  ;;  %v2940_v32 = vadd.f32 %v2894_v27, %v2893_v47 }
 0x564   : > { %2941 = vadd.xlane.f32.xlu0 %v2940_v32 }
 0x573   : > { %3287 = vperm.xlu1 %3818, %v4690_v43   ;;  %v5075_v43 = vpop.permute.xlu0 %3252 }
 0x577   : > { %3297 = vperm.xlu1 %3818, %v4698_v26   ;;  %v5077_v26 = vpop.permute.xlu1 %3257 }
 0x57a   : > { %3282 = vperm.xlu0 %3817, %v4680_v21   ;;  %v5079_v21 = vpop.permute.xlu0 %3262 }
 0x57b   : > { %3307 = vperm.xlu1 %3818, %v4706_v5   ;;  %v5081_v5 = vpop.permute.xlu1 %3267 }
 0x57e   : > { %3292 = vperm.xlu0 %3817, %v4685_v58   ;;  %v5083_v58 = vld [vmem:[#allocation2] ss:$0 sm:$0xff] }
 0x57f   : > { %3317 = vperm.xlu1 %3818, %v4713_v51   ;;  %v5085_v51 = vld [vmem:[#allocation3] ss:$0 sm:$0xff]  ;;  %v5094_v18 = vpop.permute.xlu1 %3277  ;;  %v2988_v41 = vmul.f32 %v5083_v58, %v5411_v19  ;;  %v2989_v62 = vmul.f32 %v5083_v58, %v5413_v28  ;;  %v2990_v8 = vmul.f32 %v5083_v58, %v5415_v56  ;;  %v2991_v3 = vmul.f32 %v5083_v58, %v5417_v16 }
 0x580   : > { %v3010_v24 = vmul.f32 %v4060_v15, %v5085_v51  ;;  %v3011_v55 = vmul.f32 %v4061_v31, %v5085_v51  ;;  %v3012_v46 = vmul.f32 %v4062_v12, %v5085_v51  ;;  %v3013_v59 = vmul.f32 %v4063_v20, %v5085_v51  ;;  %v5424_v31 = vld [vmem:[#allocation20_spill] sm:$0xff] }
 0x581   : > { %v2992_v38 = vmul.f32 %v5083_v58, %v5419_v34  ;;  %v3014_v1 = vmul.f32 %v4064_v44, %v5085_v51  ;;  %v4067_v56 = vld [vmem:[%s4341_s17 + $0x40] sm:$0xff]  ;;  %v4069_v44 = vld [vmem:[%s4341_s17 + $0x50] sm:$0xff] }
 0x582   : > { %3302 = vperm.xlu0 %3817, %v4693_v63   ;;  %v5087_v63 = vpop.permute.xlu0 %3272  ;;  %v3026_v30 = vsub.f32 %v2988_v41, %v3010_v24  ;;  %v3027_v54 = vsub.f32 %v2989_v62, %v3011_v55  ;;  %v3028_v36 = vsub.f32 %v2990_v8, %v3012_v46  ;;  %v3029_v42 = vsub.f32 %v2991_v3, %v3013_v59  ;;  %v4065_v41 = vld [vmem:[%s4341_s17 + $0x30] sm:$0xff]  ;;  %v5422_v24 = vld [vmem:[#allocation17_spill] sm:$0xff] }
 0x583   : > { %3327 = vperm.xlu1 %3818, %v4717_v4   ;;  %v5410_v4 = vsub.f32 1.0, %v4347_v7  ;;  %v3030_v27 = vsub.f32 %v2992_v38, %v3014_v1  ;;  %v3015_v15 = vmul.f32 %v4065_v41, %v5085_v51  ;;  %v5425_v55 = vsub.f32 1.0, %v5424_v31  ;;  %v5428_v59 = vld [vmem:[#allocation22_spill] sm:$0xff]  ;;  %v5432_v41 = vld [vmem:[#allocation24_spill] sm:$0xff] }
 0x584   : > { %v3017_v8 = vmul.f32 %v4067_v56, %v5085_v51  ;;  %v5429_v39 = vsub.f32 1.0, %v5428_v59  ;;  %v3019_v1 = vmul.f32 %v4069_v44, %v5085_v51  ;;  %v5436_v56 = vld [vmem:[#allocation26_spill] sm:$0xff] }
 0x586   : > { %3312 = vperm.xlu0 %3817, %v4701_v61   ;;  %v2987_v61 = vmul.f32 %v5083_v58, %v5410_v4  ;;  %v5420_v4 = vld [vmem:[#allocation18_spill] sm:$0xff]  ;;  %v2997_v34 = vmul.f32 %v5083_v58, %v5429_v39 }
 0x58a   : > { %3322 = vperm.xlu0 %3817, %v4709_v60   ;;  %v3009_v60 = vmul.f32 %v4059_v37, %v5085_v51 }
 0x58c   : > { %v3025_v13 = vsub.f32 %v2987_v61, %v3009_v60  ;;  %v5421_v61 = vsub.f32 1.0, %v5420_v4 }
 0x58e   : > { %v2993_v37 = vmul.f32 %v5083_v58, %v5421_v61 }
 0x5b7   : > { %v2897_v2 = vpop.xlane.xlu0 %2896 }
 0x5b8   : > { %v2949_v7 = vadd.f32 %v5096_v23, %v2897_v2  ;;  %v5423_v2 = vsub.f32 1.0, %v5422_v24 }
 0x5b9   : > { %v2900_v35 = vpop.xlane.xlu1 %2899 }
 0x5ba   : > { %v3041_v22 = vmul.f32 0.001, %v2949_v7  ;;  %v2950_v49 = vadd.f32 %v5096_v23, %v2900_v35  ;;  %v2994_v7 = vmul.f32 %v5083_v58, %v5423_v2  ;;  %v4066_v35 = vld [vmem:[%s4341_s17 + $0x38] sm:$0xff] }
 0x5bc   : > { %v3057_v9 = vadd.f32 %v3041_v22, %v3025_v13  ;;  %v3042_v10 = vmul.f32 0.001, %v2950_v49  ;;  %v3016_v22 = vmul.f32 %v4066_v35, %v5085_v51  ;;  %v3031_v49 = vsub.f32 %v2993_v37, %v3015_v15 }
 0x5bd   : > { %v5433_v15 = vsub.f32 1.0, %v5432_v41 }
 0x5be   : > { %v3058_v33 = vadd.f32 %v3042_v10, %v3026_v30  ;;  %3348 = vperm.xlu0 %3817, %v3057_v9   ;;  %v3032_v9 = vsub.f32 %v2994_v7, %v3016_v22  ;;  %v5434_v22 = vld [vmem:[#allocation23_spill] sm:$0xff] }
 0x5bf   : > { %v2903_v25 = vpop.xlane.xlu0 %2902  ;;  %v2999_v24 = vmul.f32 %v5083_v58, %v5433_v15 }
 0x5c0   : > { %v2951_v40 = vadd.f32 %v5096_v23, %v2903_v25  ;;  %3353 = vperm.xlu1 %3818, %v3058_v33   ;;  %v2995_v33 = vmul.f32 %v5083_v58, %v5425_v55 }
 0x5c2   : > { %v3043_v11 = vmul.f32 0.001, %v2951_v40  ;;  %v3033_v3 = vsub.f32 %v2995_v33, %v3017_v8  ;;  %v5437_v8 = vsub.f32 1.0, %v5436_v56 }
 0x5c3   : > { %v2906_v45 = vpop.xlane.xlu0 %2905 }
 0x5c4   : > { %v3059_v0 = vadd.f32 %v3043_v11, %v3027_v54  ;;  %v2952_v48 = vadd.f32 %v5096_v23, %v2906_v45  ;;  %v5426_v54 = vld [vmem:[#allocation19_spill] sm:$0xff]  ;;  %v4068_v11 = vld [vmem:[%s4341_s17 + $0x48] sm:$0xff] }
 0x5c5   : > { %v5427_v40 = vsub.f32 1.0, %v5426_v54  ;;  %v3018_v6 = vmul.f32 %v4068_v11, %v5085_v51  ;;  %v3001_v54 = vmul.f32 %v5083_v58, %v5437_v8 }
 0x5c6   : > { %v3044_v29 = vmul.f32 0.001, %v2952_v48  ;;  %3358 = vperm.xlu0 %3817, %v3059_v0  }
 0x5c7   : > { %v2909_v57 = vpop.xlane.xlu1 %2908  ;;  %v2996_v12 = vmul.f32 %v5083_v58, %v5427_v40 }
 0x5c8   : > { %v3060_v52 = vadd.f32 %v3044_v29, %v3028_v36  ;;  %v2953_v17 = vadd.f32 %v5096_v23, %v2909_v57  ;;  %v5430_v57 = vld [vmem:[#allocation21_spill] sm:$0xff] }
 0x5c9   : > { %v2912_v47 = vpop.xlane.xlu0 %2911  ;;  %v3034_v48 = vsub.f32 %v2996_v12, %v3018_v6  ;;  %v5438_v6 = vld [vmem:[#allocation25_spill] sm:$0xff] }
 0x5ca   : > { %v3045_v50 = vmul.f32 0.001, %v2953_v17  ;;  %v2954_v32 = vadd.f32 %v5096_v23, %v2912_v47  ;;  %3363 = vperm.xlu1 %3818, %v3060_v52   ;;  %v5431_v52 = vsub.f32 1.0, %v5430_v57  ;;  %v4070_v47 = vld [vmem:[%s4341_s17 + $0x58] sm:$0xff] }
 0x5cc   : > { %v3061_v60 = vadd.f32 %v3045_v50, %v3029_v42  ;;  %v3046_v19 = vmul.f32 0.001, %v2954_v32  ;;  %v2998_v42 = vmul.f32 %v5083_v58, %v5431_v52  ;;  %v3020_v50 = vmul.f32 %v4070_v47, %v5085_v51 }
 0x5cd   : > { %v3035_v32 = vsub.f32 %v2997_v34, %v3019_v1 }
 0x5ce   : > { %v3062_v13 = vadd.f32 %v3046_v19, %v3030_v27  ;;  %3368 = vperm.xlu0 %3817, %v3061_v60   ;;  %v3036_v60 = vsub.f32 %v2998_v42, %v3020_v50 }
 0x5cf   : > { %v2915_v30 = vpop.xlane.xlu1 %2914 }
 0x5d0   : > { %v2955_v14 = vadd.f32 %v5096_v23, %v2915_v30  ;;  %3373 = vperm.xlu1 %3818, %v3062_v13   ;;  %v4071_v13 = vld [vmem:[%s4341_s17 + $0x60] sm:$0xff]  ;;  %v5435_v30 = vsub.f32 1.0, %v5434_v22 }
 0x5d1   : > { %v2918_v28 = vpop.xlane.xlu0 %2917  ;;  %v3021_v35 = vmul.f32 %v4071_v13, %v5085_v51 }
 0x5d2   : > { %v3047_v62 = vmul.f32 0.001, %v2955_v14  ;;  %v2956_v10 = vadd.f32 %v5096_v23, %v2918_v28  ;;  %v4072_v28 = vld [vmem:[%s4341_s17 + $0x68] sm:$0xff] }
 0x5d4   : > { %v3063_v25 = vadd.f32 %v3047_v62, %v3031_v49  ;;  %v3048_v53 = vmul.f32 0.001, %v2956_v10  ;;  %v3000_v49 = vmul.f32 %v5083_v58, %v5435_v30  ;;  %v3022_v62 = vmul.f32 %v4072_v28, %v5085_v51 }
 0x5d5   : > { %v3037_v10 = vsub.f32 %v2999_v24, %v3021_v35 }
 0x5d6   : > { %v3064_v46 = vadd.f32 %v3048_v53, %v3032_v9  ;;  %3378 = vperm.xlu0 %3817, %v3063_v25   ;;  %v3038_v25 = vsub.f32 %v3000_v49, %v3022_v62 }
 0x5d7   : > { %v2921_v16 = vpop.xlane.xlu1 %2920 }
 0x5d8   : > { %v2957_v45 = vadd.f32 %v5096_v23, %v2921_v16  ;;  %3383 = vperm.xlu1 %3818, %v3064_v46   ;;  %v4073_v46 = vld [vmem:[%s4341_s17 + $0x70] sm:$0xff]  ;;  %v5439_v16 = vsub.f32 1.0, %v5438_v6 }
 0x5d9   : > { %v2924_v0 = vpop.xlane.xlu0 %2923  ;;  %v3023_v11 = vmul.f32 %v4073_v46, %v5085_v51 }
 0x5da   : > { %v3049_v36 = vmul.f32 0.001, %v2957_v45  ;;  %v2958_v20 = vadd.f32 %v5096_v23, %v2924_v0  ;;  %v4074_v0 = vld [vmem:[%s4341_s17 + $0x78] sm:$0xff]  ;;  %s403_s17 = sand.u32 1, %s4161_s2  }
 0x5db   : > { %s3552_s24 = sshll.u32 %s403_s17, 7  ;;  %s5302_s4 = scalar_lea.sflag [#allocation9], %s403_s17 }
 0x5dc   : > { %v3065_v38 = vadd.f32 %v3049_v36, %v3033_v3  ;;  %v3050_v29 = vmul.f32 0.001, %v2958_v20  ;;  %v3002_v3 = vmul.f32 %v5083_v58, %v5439_v16  ;;  %v3024_v36 = vmul.f32 %v4074_v0, %v5085_v51  ;;  %s5209_s25 = scalar_lea.vmem [#allocation10], %s3552_s24 }
 0x5dd   : > { %v3039_v20 = vsub.f32 %v3001_v54, %v3023_v11  ;;  %s3472_s10 = sshll.u32 %s5209_s25, 4  ;;  %s5291_s10 = int_to_ptr.vmem [resolvable:$true] %s3472_s10 }
 0x5de   : > { %v3066_v17 = vadd.f32 %v3050_v29, %v3034_v48  ;;  %3388 = vperm.xlu0 %3817, %v3065_v38   ;;  %v3040_v38 = vsub.f32 %v3002_v3, %v3024_v36  ;;  %s4103_s19 = scalar_lea.vmem %s5291_s10, 2048  ;;  %p4110_p2 = scmp.lt.s32.totalorder %s5291_s10, %s4108_s20 }
 0x5df   : > { %v2927_v27 = vpop.xlane.xlu1 %2926  ;;  %p4104_p6 = scmp.ne.s32.totalorder %s5291_s10, %s4103_s19  ;;  %p4111_p3 = scmp.lt.s32.totalorder %s4109_s21, %s4103_s19 }
 0x5e0   : > { %v2959_v4 = vadd.f32 %v5096_v23, %v2927_v27  ;;  %3393 = vperm.xlu1 %3818, %v3066_v17  }
 0x5e1   : > { %v2930_v61 = vpop.xlane.xlu0 %2929  ;;  %p4105_p10 = pnand %p4104_p6, %p5441_p9  ;;  %p4112_p4 = por %p4111_p3, %p4110_p2 }
 0x5e2   : > { %v3051_v37 = vmul.f32 0.001, %v2959_v4  ;;  %v2960_v19 = vadd.f32 %v5096_v23, %v2930_v61 }
 0x5e3   : > { %p4106_p12 = pneg %p4105_p10 }
 0x5e4   : > { %v3067_v2 = vadd.f32 %v3051_v37, %v3035_v32  ;;  %v3052_v7 = vmul.f32 0.001, %v2960_v19  ;;  %v5440_v32 = vlaneseq }
 0x5e5   : > { %p4113_p7 = pnand %p4112_p4, %p4106_p12 }
 0x5e6   : > { %v3068_v14 = vadd.f32 %v3052_v7, %v3036_v60  ;;  %3398 = vperm.xlu0 %3817, %v3067_v2   ;;  %v5190_v4 = vand.u32 127, %v5440_v32 }
 0x5e7   : > { %v2933_v9 = vpop.xlane.xlu1 %2932 }
 0x5e8   : > { %v2961_v31 = vadd.f32 %v5096_v23, %v2933_v9  ;;  %3403 = vperm.xlu1 %3818, %v3068_v14   ;;  %vm3249_vm0 = vcmp.eq.s32.totalorder %v5190_v4, 1  ;;  %vm3248_vm1 = vcmp.eq.s32.totalorder %v5190_v4, 0 }
 0x5e9   : > { %v2936_v55 = vpop.xlane.xlu0 %2935  ;;  %v3330_v37 = vsel %vm3249_vm0, %v5075_v43, 0.0  ;;  %v3331_v41 = vsel %vm3249_vm0, %v5077_v26, 0.0  ;;  %v3332_v24 = vsel %vm3249_vm0, %v5079_v21, 0.0  ;;  %v3333_v7 = vsel %vm3249_vm0, %v5081_v5, 0.0 }
 0x5ea   : > { %v3053_v33 = vmul.f32 0.001, %v2961_v31  ;;  %v2962_v53 = vadd.f32 %v5096_v23, %v2936_v55  ;;  %v3334_v21 = vsel %vm3249_vm0, %v5087_v63, 0.0  ;;  %v3335_v49 = vsel %vm3249_vm0, %v5094_v18, 0.0 }
 0x5ec   : > { %v3069_v40 = vadd.f32 %v3053_v33, %v3037_v10  ;;  %v3054_v12 = vmul.f32 0.001, %v2962_v53 }
 0x5ee   : > { %v3070_v45 = vadd.f32 %v3054_v12, %v3038_v25  ;;  %3408 = vperm.xlu0 %3817, %v3069_v40  }
 0x5ef   : > { %v2939_v48 = vpop.xlane.xlu1 %2938 }
 0x5f0   : > { %v2963_v59 = vadd.f32 %v5096_v23, %v2939_v48  ;;  %3413 = vperm.xlu1 %3818, %v3070_v45  }
 0x5f1   : > { %v2942_v39 = vpop.xlane.xlu0 %2941 }
 0x5f2   : > { %v3055_v34 = vmul.f32 0.001, %v2963_v59  ;;  %v2964_v29 = vadd.f32 %v5096_v23, %v2942_v39 }
 0x5f3   : > { %v3288_v52 = vpop.permute.xlu1 %3287 }
 0x5f4   : > { %v3071_v44 = vadd.f32 %v3055_v34, %v3039_v20  ;;  %v3056_v1 = vmul.f32 0.001, %v2964_v29  ;;  %v3337_v9 = vsel %vm3249_vm0, %v3288_v52, 0.0 }
 0x5f6   : > { %v3072_v58 = vadd.f32 %v3056_v1, %v3040_v38  ;;  %3418 = vperm.xlu0 %3817, %v3071_v44  }
 0x5f7   : > { %v3298_v42 = vpop.permute.xlu1 %3297 }
 0x5f8   : > { %3423 = vperm.xlu1 %3818, %v3072_v58   ;;  %v3339_v25 = vsel %vm3249_vm0, %v3298_v42, 0.0 }
 0x5f9   : > { %v3283_v57 = vpop.permute.xlu0 %3282 }
 0x5fa   : > { %v3336_v28 = vsel %vm3249_vm0, %v3283_v57, 0.0 }
 0x5fb   : > { %v3308_v47 = vpop.permute.xlu1 %3307 }
 0x5fc   : > { %v3341_v12 = vsel %vm3249_vm0, %v3308_v47, 0.0 }
 0x5fd   : > { %v3293_v51 = vpop.permute.xlu0 %3292 }
 0x5fe   : > { %v3338_v31 = vsel %vm3249_vm0, %v3293_v51, 0.0 }
 0x5ff   : > { %v3318_v27 = vpop.permute.xlu1 %3317 }
 0x600   : > { %v3343_v45 = vsel %vm3249_vm0, %v3318_v27, 0.0 }
 0x601   : > { %v3303_v17 = vpop.permute.xlu0 %3302 }
 0x602   : > { %v3340_v8 = vsel %vm3249_vm0, %v3303_v17, 0.0 }
 0x603   : > { %v5198_v23 = vpop.permute.xlu1 %3327 }
 0x604   : > { %v3345_v39 = vsel %vm3249_vm0, %v5198_v23, 0.0 }
 0x605   : > { %v3313_v50 = vpop.permute.xlu0 %3312 }
 0x606   : > { %v3342_v6 = vsel %vm3249_vm0, %v3313_v50, 0.0 }
 0x609   : > { %v5193_v61 = vpop.permute.xlu0 %3322 }
 0x60a   : > { %v3344_v48 = vsel %vm3249_vm0, %v5193_v61, 0.0 }
 0x63d   : > { %v3349_v60 = vpop.permute.xlu0 %3348 }
 0x63e   : > { %v3426_v19 = vsel %vm3248_vm1, %v3349_v60, %v3330_v37 }
 0x63f   : > { %3442 = vst [vmem:[%s5209_s25] sm:$0xff] %v3426_v19  ;;  %v3354_v15 = vpop.permute.xlu1 %3353 }
 0x640   : > { %v3427_v43 = vsel %vm3248_vm1, %v3354_v15, %v3331_v41 }
 0x641   : > { %3443 = vst [vmem:[%s5209_s25 + $0x8] sm:$0xff] %v3427_v43 }
 0x645   : > { %v3359_v2 = vpop.permute.xlu0 %3358 }
 0x646   : > { %v3428_v26 = vsel %vm3248_vm1, %v3359_v2, %v3332_v24 }
 0x647   : > { %3444 = vst [vmem:[%s5209_s25 + $0x10] sm:$0xff] %v3428_v26 }
 0x649   : > { %v3364_v13 = vpop.permute.xlu1 %3363 }
 0x64a   : > { %v3429_v35 = vsel %vm3248_vm1, %v3364_v13, %v3333_v7 }
 0x64b   : > { %3445 = vst [vmem:[%s5209_s25 + $0x18] sm:$0xff] %v3429_v35 }
 0x64d   : > { %v3369_v22 = vpop.permute.xlu0 %3368 }
 0x64e   : > { %v3430_v30 = vsel %vm3248_vm1, %v3369_v22, %v3334_v21 }
 0x64f   : > { %3446 = vst [vmem:[%s5209_s25 + $0x20] sm:$0xff] %v3430_v30  ;;  %v3374_v5 = vpop.permute.xlu1 %3373 }
 0x650   : > { %v3431_v14 = vsel %vm3248_vm1, %v3374_v5, %v3335_v49 }
 0x651   : > { %3447 = vst [vmem:[%s5209_s25 + $0x28] sm:$0xff] %v3431_v14 }
 0x655   : > { %v3379_v63 = vpop.permute.xlu0 %3378 }
 0x656   : > { %v3432_v62 = vsel %vm3248_vm1, %v3379_v63, %v3336_v28 }
 0x657   : > { %3448 = vst [vmem:[%s5209_s25 + $0x30] sm:$0xff] %v3432_v62  ;;  %v3384_v18 = vpop.permute.xlu1 %3383 }
 0x658   : > { %v3433_v10 = vsel %vm3248_vm1, %v3384_v18, %v3337_v9 }
 0x659   : > { %3449 = vst [vmem:[%s5209_s25 + $0x38] sm:$0xff] %v3433_v10 }
 0x65d   : > { %v3389_v55 = vpop.permute.xlu0 %3388 }
 0x65e   : > { %v3434_v33 = vsel %vm3248_vm1, %v3389_v55, %v3338_v31 }
 0x65f   : > { %3450 = vst [vmem:[%s5209_s25 + $0x40] sm:$0xff] %v3434_v33  ;;  %v3394_v53 = vpop.permute.xlu1 %3393 }
 0x660   : > { %v3435_v56 = vsel %vm3248_vm1, %v3394_v53, %v3339_v25 }
 0x661   : > { %3451 = vst [vmem:[%s5209_s25 + $0x48] sm:$0xff] %v3435_v56 }
 0x665   : > { %v3399_v54 = vpop.permute.xlu0 %3398 }
 0x666   : > { %v3436_v40 = vsel %vm3248_vm1, %v3399_v54, %v3340_v8 }
 0x667   : > { %3452 = vst [vmem:[%s5209_s25 + $0x50] sm:$0xff] %v3436_v40  ;;  %v3404_v46 = vpop.permute.xlu1 %3403 }
 0x668   : > { %v3437_v11 = vsel %vm3248_vm1, %v3404_v46, %v3341_v12 }
 0x669   : > { %3453 = vst [vmem:[%s5209_s25 + $0x58] sm:$0xff] %v3437_v11 }
 0x66d   : > { %v3409_v16 = vpop.permute.xlu0 %3408 }
 0x66e   : > { %v3438_v3 = vsel %vm3248_vm1, %v3409_v16, %v3342_v6 }
 0x66f   : > { %3454 = vst [vmem:[%s5209_s25 + $0x60] sm:$0xff] %v3438_v3  ;;  %v3414_v0 = vpop.permute.xlu1 %3413 }
 0x670   : > { %v3439_v36 = vsel %vm3248_vm1, %v3414_v0, %v3343_v45 }
 0x671   : > { %3455 = vst [vmem:[%s5209_s25 + $0x68] sm:$0xff] %v3439_v36 }
 0x675   : > { %v3419_v20 = vpop.permute.xlu0 %3418 }
 0x676   : > { %v3440_v59 = vsel %vm3248_vm1, %v3419_v20, %v3344_v48 }
 0x677   : > { %3456 = vst [vmem:[%s5209_s25 + $0x70] sm:$0xff] %v3440_v59  ;;  %v3424_v34 = vpop.permute.xlu1 %3423 }
 0x678   : > { %v3441_v38 = vsel %vm3248_vm1, %v3424_v34, %v3345_v39 }
 0x679   : > { %3457 = vst [vmem:[%s5209_s25 + $0x78] sm:$0xff] %v3441_v38 }
 0x67a   : > { %4116 = shalt.err (!%p4113_p7)
}
 0x67b   : > { %s4117_s15 = scalar_lea.hbm %s5289_s16, 2048  ;;  %s4121_s17 = scalar_lea.hbm %s5350_s11, 4096 }
 0x67c   : > { %p4118_p8 = scmp.ne.s32.totalorder %s5289_s16, %s4117_s15  ;;  %p4122_p1 = scmp.lt.u32.totalorder %s5289_s16, %s5350_s11 }
 0x67d   : > { %p4123_p0 = scmp.lt.u32.totalorder %s4121_s17, %s4117_s15  ;;  %p4125_p6 = scmp.lt.u32.totalorder %s4117_s15, %s5289_s16 }
 0x67e   : > { %p4119_p11 = pnand %p4118_p8, %p5441_p9 }
 0x67f   : > { %p4124_p5 = por %p4123_p0, %p4122_p1 }
 0x680   : > { %p4120_p13 = pneg %p4119_p11 }
 0x681   : > { %p4126_p10 = por %p4125_p6, %p4124_p5 }
 0x683   : > { %p4127_p12 = pnand %p4126_p10, %p4120_p13 }
 0x685   : > { %4130 = shalt.err (!%p4127_p12)
}
 0x686   : > { %s4177_s26 = smov 128   ;;  %s4178_s29 = smov 8  }
 0x687   : > { %3765 = dma.vmem_to_hbm [thread:$0]  (%p5441_p9), %s5291_s10, 2048, %s5289_s16, %s5302_s4, %s4177_s26, %s4177_s26, %s4178_s29  }
 0x688 PF: > { %p3777_p2 = scmp.ge.s32.totalorder %s4169_s27, 2  ;;  %s3487_s30 = sand.u32 1, %s4157_s1  }
 0x689   : > { %p5442_p3 = scmp.ne.s32.totalorder %s5390_s14, 0  ;;  %s3488_s19 = scalar_lea.sflag [#allocation9], %s3487_s30 }
 0x68b   : > { %p3772_p4 = pnand %p3777_p2, %p5442_p3 }
 0x68d   : > { %4152 = dma.done.wait (!%p3772_p4), %s3488_s19, 2048  }
 0x68e   : > { %4154 = vsyncadd (!%p3772_p4), %s3488_s19, 4294965248  ;;  %p32_p7 = scmp.ge.s32.totalorder %s4279_s28, 4   ;;  %s5443_s1 = smov %s4161_s2 }
 0x68f   : > { %s5444_s2 = smov %s4165_s3  ;;  %s5445_s3 = smov %s4290_s12 }
 0x690   : > { %s5446_s27 = smov %s4279_s28  ;;  %34 = sbr.rel (!%p32_p7) target bundleno = 9 (0x9), region = 112 }
 0x697   :  { %3493 = vsyncpa [#allocation8], 1 }
 0x698   :  { %3495 = vsyncpa [#allocation8 + $0x1], 1 }
 0x699   :  { %3496 = vsyncpa [#allocation9], 1 }
 0x69a   :  { %3498 = vsyncpa [#allocation9 + $0x1], 1 }

</bundles_post_ra>
